<compile_context>
chip_gen: v6e
topology: v6e:2x2x1
jax: 0.10.0
libtpu: 0.0.40
codegen_flags: <defaults>
</compile_context>

<pallas_src>
import numpy as np
import jax
import jax.numpy as jnp
from jax import lax
from jax.experimental import pallas as pl
from jax.experimental.pallas import tpu as pltpu

C1 = 0.01 ** 2
C2 = 0.03 ** 2


def _gaussian_1d(window_size, sigma=1.5):
    x = np.arange(window_size, dtype=np.float32)
    g = np.exp(-((x - window_size // 2) ** 2) / (2.0 * sigma ** 2)).astype(np.float32)
    return (g / g.sum()).astype(np.float32)


def _gaussian_window(window_size, sigma=1.5):
    g = _gaussian_1d(window_size, sigma)
    return np.outer(g, g).astype(np.float32)          # (ws, ws), sums to 1


def _conv_operators(h, w, oh, ow, window_size, stride, pad):
    """Row/column operators folding stride + zero padding of the depthwise
    gaussian conv:  conv2d(x, outer(g,g), pad=pad, stride=stride) == R @ x @ C."""
    g = _gaussian_1d(window_size)
    r = np.zeros((oh, h), np.float32)
    c = np.zeros((w, ow), np.float32)
    for o in range(oh):
        for t in range(window_size):
            src = o * stride - pad + t
            if 0 <= src < h:
                r[o, src] = g[t]
    for o in range(ow):
        for t in range(window_size):
            src = o * stride - pad + t
            if 0 <= src < w:
                c[src, o] = g[t]
    return r, c


def _vmem_limit_bytes():
    """Per-generation scoped-VMEM budget: ~3/4 of physical VMEM (48 MiB on
    v7x's 64 MiB, ~96-100 MiB on v5e/v6e's 128 MiB)."""
    try:
        cap = int(pltpu.get_tpu_info().vmem_capacity_bytes)
    except Exception:                                   # older runtimes / interpret
        cap = 64 * 1024 * 1024
    return int(min(cap - cap // 4, 100 * 1024 * 1024))


def _make_ssim_kernel(k):
    """Per-grid-step kernel over k whole single-channel images."""
    f32 = jnp.float32
    prec = lax.Precision.HIGHEST

    def kernel(r_ref, c_ref, x1_ref, x2_ref, out_ref):
        R = r_ref[...]                                  # (OH, H)  f32
        Cm = c_ref[...]                                 # (W, OW)  f32

        def conv(t):
            # Separable depthwise conv on the (otherwise idle) MXU.
            y = jnp.dot(R, t, preferred_element_type=f32, precision=prec)
            return jnp.dot(y, Cm, preferred_element_type=f32, precision=prec)

        msum = None
        for i in range(k):                              # static unroll over images
            a = x1_ref[i].astype(f32)                   # (H, W)
            b = x2_ref[i].astype(f32)
            mu1 = conv(a)
            mu2 = conv(b)
            s11 = conv(a * a)
            s22 = conv(b * b)
            s12 = conv(a * b)
            mu1_sq = mu1 * mu1
            mu2_sq = mu2 * mu2
            mu1_mu2 = mu1 * mu2
            sigma1_sq = s11 - mu1_sq
            sigma2_sq = s22 - mu2_sq
            sigma12 = s12 - mu1_mu2
            num = (2.0 * mu1_mu2 + C1) * (2.0 * sigma12 + C2)
            den = (mu1_sq + mu2_sq + C1) * (sigma1_sq + sigma2_sq + C2)
            # Divide on the EUP: approx reciprocal + one Newton step (keeps 1e-5).
            rcp = pl.reciprocal(den, approx=True)
            rcp = rcp * (2.0 - den * rcp)
            m = num * rcp                               # (OH, OW) ssim map piece
            msum = m if msum is None else msum + m      # init-from-first (no zeros)
        total = jnp.sum(msum)                           # scalar partial for this step
        out_ref[...] = jnp.zeros((1, 8, 128), f32) + total

    return kernel


def ssim_pallas(img1, img2, window_size=3, stride=3, size_average=True):
    # TODO(synk): size_average=False (per-image mean) path not implemented; the
    # module default (True) is what the training script uses.
    assert size_average, "only size_average=True (the module default) is implemented"
    b, c, h, w = img1.shape
    pad = (window_size - 1) // 2
    oh = (h + 2 * pad - window_size) // stride + 1
    ow = (w + 2 * pad - window_size) // stride + 1
    bc = b * c
    n = bc * oh * ow

    r_np, c_np = _conv_operators(h, w, oh, ow, window_size, stride, pad)
    r_op = jnp.asarray(r_np)
    c_op = jnp.asarray(c_np)

    # Flatten batch x channel (free reshape -- no HBM copy).  Inputs stay in
    # their original dtype; the f32 cast happens inside the kernel.
    x1 = img1.reshape(bc, h, w)
    x2 = img2.reshape(bc, h, w)

    # Images per grid step: 2 inputs x 2 pipeline buffers + in-kernel f32
    # temporaries must fit the per-generation VMEM budget, and the grid must
    # have >= 2 steps whenever B*C >= 2 so both v7x TensorCores get work.
    vmem_limit = _vmem_limit_bytes()
    itemsize = jnp.dtype(img1.dtype).itemsize
    per_image_bytes = 4 * h * w * itemsize + 8 * h * w * 4
    usable = max(vmem_limit - 8 * 1024 * 1024, per_image_bytes)
    kmax = int(max(1, min(8, usable // per_image_bytes)))
    k = 1
    for d in range(1, bc + 1):
        if bc % d == 0 and d <= kmax and (bc < 2 or bc // d >= 2):
            k = d
    grid_steps = bc // k
    # TODO(synk): very large single frames (per-image buffers alone exceeding the
    # VMEM budget) would additionally need row tiling with a 1-row halo; typical
    # training patch sizes fit several whole images per step.

    flops_per_img = 3 * h * w + 10 * oh * h * w + 10 * oh * w * ow + 25 * oh * ow
    cost = pl.CostEstimate(
        flops=int(bc * flops_per_img),
        transcendentals=int(bc * oh * ow),
        bytes_accessed=int(2 * bc * h * w * itemsize
                           + (oh * h + w * ow) * 4
                           + grid_steps * 8 * 128 * 4),
    )

    partial = pl.pallas_call(
        _make_ssim_kernel(k),
        out_shape=jax.ShapeDtypeStruct((grid_steps, 8, 128), jnp.float32),
        grid=(grid_steps,),
        in_specs=[
            pl.BlockSpec((oh, h), lambda i: (0, 0)),        # row operator (resident)
            pl.BlockSpec((w, ow), lambda i: (0, 0)),        # column operator (resident)
            pl.BlockSpec((k, h, w), lambda i: (i, 0, 0)),   # img1: k whole images
            pl.BlockSpec((k, h, w), lambda i: (i, 0, 0)),   # img2: k whole images
        ],
        out_specs=pl.BlockSpec((1, 8, 128), lambda i: (i, 0, 0)),
        compiler_params=pltpu.CompilerParams(
            dimension_semantics=("parallel",),              # independent per-step partials
            vmem_limit_bytes=vmem_limit,
        ),
        cost_estimate=cost,
    )(r_op, c_op, x1, x2)

    return jnp.sum(partial[:, 0, 0]) / n


def ssim_reference(img1, img2, window_size=3, stride=3):
    """Pure-JAX reference mirroring the PyTorch _ssim() (depthwise conv2d)."""
    b, c, h, w = img1.shape
    pad = (window_size - 1) // 2
    w2d = _gaussian_window(window_size)
    kern = jnp.asarray(np.broadcast_to(w2d, (c, 1, window_size, window_size)).copy())

    def conv(x):
        return lax.conv_general_dilated(
            x, kern, window_strides=(stride, stride),
            padding=[(pad, pad), (pad, pad)],
            dimension_numbers=("NCHW", "OIHW", "NCHW"),
            feature_group_count=c)

    mu1 = conv(img1)
    mu2 = conv(img2)
    mu1_sq = mu1 ** 2
    mu2_sq = mu2 ** 2
    mu1_mu2 = mu1 * mu2
    sigma1_sq = conv(img1 * img1) - mu1_sq
    sigma2_sq = conv(img2 * img2) - mu2_sq
    sigma12 = conv(img1 * img2) - mu1_mu2
    ssim_map = ((2 * mu1_mu2 + C1) * (2 * sigma12 + C2)) / (
        (mu1_sq + mu2_sq + C1) * (sigma1_sq + sigma2_sq + C2))
    return ssim_map.mean()


if __name__ == "__main__":
    key = jax.random.PRNGKey(0)
    k1, k2 = jax.random.split(key)
    img1 = jax.random.uniform(k1, (2, 4, 16, 16), dtype=jnp.float32)
    img2 = jax.random.uniform(k2, (2, 4, 16, 16), dtype=jnp.float32)

    out = jax.block_until_ready(jax.jit(ssim_pallas)(img1, img2))
    ref = jax.block_until_ready(ssim_reference(img1, img2))
    assert jnp.allclose(out, ref, atol=1e-5, rtol=1e-5), (float(out), float(ref))
    print("KERNEL_OK")
</pallas_src>

<mosaic_0001>
module attributes {stable_mosaic.version = 11 : i64} {
  func.func @kernel(%arg0: i32, %arg1: memref<6x16xf32, #tpu.memory_space<vmem>>, %arg2: memref<16x6xf32, #tpu.memory_space<vmem>>, %arg3: memref<4x16x16xf32, #tpu.memory_space<vmem>>, %arg4: memref<4x16x16xf32, #tpu.memory_space<vmem>>, %arg5: memref<1x8x128xf32, #tpu.memory_space<vmem>>) attributes {dimension_semantics = [#tpu.dimension_semantics<parallel>], iteration_bounds = array<i64: 2>, scalar_prefetch = 0 : i64, scratch_operands = 0 : i64, tpu.core_type = #tpu.core_type<tc>, window_params = [{pipeline_mode = #tpu.pipeline_mode<synchronous>, transform_indices = @transform_0, window_bounds = array<i64: 6, 16>}, {pipeline_mode = #tpu.pipeline_mode<synchronous>, transform_indices = @transform_1, window_bounds = array<i64: 16, 6>}, {transform_indices = @transform_2, window_bounds = array<i64: 4, 16, 16>}, {transform_indices = @transform_3, window_bounds = array<i64: 4, 16, 16>}, {transform_indices = @transform_4, window_bounds = array<i64: 1, 8, 128>}]} {
    %c0 = arith.constant 0 : index
    %c0_0 = arith.constant 0 : index
    %0 = vector.load %arg1[%c0, %c0_0] : memref<6x16xf32, #tpu.memory_space<vmem>>, vector<6x16xf32>
    %c0_1 = arith.constant 0 : index
    %c0_2 = arith.constant 0 : index
    %1 = vector.load %arg2[%c0_1, %c0_2] : memref<16x6xf32, #tpu.memory_space<vmem>>, vector<16x6xf32>
    %c0_3 = arith.constant 0 : index
    %c0_4 = arith.constant 0 : index
    %c0_5 = arith.constant 0 : index
    %2 = vector.load %arg3[%c0_3, %c0_4, %c0_5] : memref<4x16x16xf32, #tpu.memory_space<vmem>>, vector<1x16x16xf32>
    %3 = vector.shape_cast %2 : vector<1x16x16xf32> to vector<16x16xf32>
    %c0_6 = arith.constant 0 : index
    %c0_7 = arith.constant 0 : index
    %c0_8 = arith.constant 0 : index
    %4 = vector.load %arg4[%c0_6, %c0_7, %c0_8] : memref<4x16x16xf32, #tpu.memory_space<vmem>>, vector<1x16x16xf32>
    %5 = vector.shape_cast %4 : vector<1x16x16xf32> to vector<16x16xf32>
    %cst = arith.constant dense<0.000000e+00> : vector<6x16xf32>
    %6 = tpu.matmul %0, %3, %cst {dimension_numbers = #tpu.dot_dimension_numbers<[1], [0], [0], [1], [0, 0, 1, 1], [], []>, precision = #tpu.contract_precision<fp32>} : vector<6x16xf32>, vector<16x16xf32>, vector<6x16xf32> -> vector<6x16xf32>
    %cst_9 = arith.constant dense<0.000000e+00> : vector<6x6xf32>
    %7 = tpu.matmul %6, %1, %cst_9 {dimension_numbers = #tpu.dot_dimension_numbers<[1], [0], [0], [1], [0, 0, 1, 1], [], []>, precision = #tpu.contract_precision<fp32>} : vector<6x16xf32>, vector<16x6xf32>, vector<6x6xf32> -> vector<6x6xf32>
    %cst_10 = arith.constant dense<0.000000e+00> : vector<6x16xf32>
    %8 = tpu.matmul %0, %5, %cst_10 {dimension_numbers = #tpu.dot_dimension_numbers<[1], [0], [0], [1], [0, 0, 1, 1], [], []>, precision = #tpu.contract_precision<fp32>} : vector<6x16xf32>, vector<16x16xf32>, vector<6x16xf32> -> vector<6x16xf32>
    %cst_11 = arith.constant dense<0.000000e+00> : vector<6x6xf32>
    %9 = tpu.matmul %8, %1, %cst_11 {dimension_numbers = #tpu.dot_dimension_numbers<[1], [0], [0], [1], [0, 0, 1, 1], [], []>, precision = #tpu.contract_precision<fp32>} : vector<6x16xf32>, vector<16x6xf32>, vector<6x6xf32> -> vector<6x6xf32>
    %10 = arith.mulf %3, %3 : vector<16x16xf32>
    %cst_12 = arith.constant dense<0.000000e+00> : vector<6x16xf32>
    %11 = tpu.matmul %0, %10, %cst_12 {dimension_numbers = #tpu.dot_dimension_numbers<[1], [0], [0], [1], [0, 0, 1, 1], [], []>, precision = #tpu.contract_precision<fp32>} : vector<6x16xf32>, vector<16x16xf32>, vector<6x16xf32> -> vector<6x16xf32>
    %cst_13 = arith.constant dense<0.000000e+00> : vector<6x6xf32>
    %12 = tpu.matmul %11, %1, %cst_13 {dimension_numbers = #tpu.dot_dimension_numbers<[1], [0], [0], [1], [0, 0, 1, 1], [], []>, precision = #tpu.contract_precision<fp32>} : vector<6x16xf32>, vector<16x6xf32>, vector<6x6xf32> -> vector<6x6xf32>
    %13 = arith.mulf %5, %5 : vector<16x16xf32>
    %cst_14 = arith.constant dense<0.000000e+00> : vector<6x16xf32>
    %14 = tpu.matmul %0, %13, %cst_14 {dimension_numbers = #tpu.dot_dimension_numbers<[1], [0], [0], [1], [0, 0, 1, 1], [], []>, precision = #tpu.contract_precision<fp32>} : vector<6x16xf32>, vector<16x16xf32>, vector<6x16xf32> -> vector<6x16xf32>
    %cst_15 = arith.constant dense<0.000000e+00> : vector<6x6xf32>
    %15 = tpu.matmul %14, %1, %cst_15 {dimension_numbers = #tpu.dot_dimension_numbers<[1], [0], [0], [1], [0, 0, 1, 1], [], []>, precision = #tpu.contract_precision<fp32>} : vector<6x16xf32>, vector<16x6xf32>, vector<6x6xf32> -> vector<6x6xf32>
    %16 = arith.mulf %3, %5 : vector<16x16xf32>
    %cst_16 = arith.constant dense<0.000000e+00> : vector<6x16xf32>
    %17 = tpu.matmul %0, %16, %cst_16 {dimension_numbers = #tpu.dot_dimension_numbers<[1], [0], [0], [1], [0, 0, 1, 1], [], []>, precision = #tpu.contract_precision<fp32>} : vector<6x16xf32>, vector<16x16xf32>, vector<6x16xf32> -> vector<6x16xf32>
    %cst_17 = arith.constant dense<0.000000e+00> : vector<6x6xf32>
    %18 = tpu.matmul %17, %1, %cst_17 {dimension_numbers = #tpu.dot_dimension_numbers<[1], [0], [0], [1], [0, 0, 1, 1], [], []>, precision = #tpu.contract_precision<fp32>} : vector<6x16xf32>, vector<16x6xf32>, vector<6x6xf32> -> vector<6x6xf32>
    %19 = arith.mulf %7, %7 : vector<6x6xf32>
    %20 = arith.mulf %9, %9 : vector<6x6xf32>
    %21 = arith.mulf %7, %9 : vector<6x6xf32>
    %22 = arith.subf %12, %19 : vector<6x6xf32>
    %23 = arith.subf %15, %20 : vector<6x6xf32>
    %24 = arith.subf %18, %21 : vector<6x6xf32>
    %cst_18 = arith.constant 2.000000e+00 : f32
    %25 = vector.broadcast %cst_18 : f32 to vector<6x6xf32>
    %26 = arith.mulf %25, %21 : vector<6x6xf32>
    %cst_19 = arith.constant 9.99999974E-5 : f32
    %27 = vector.broadcast %cst_19 : f32 to vector<6x6xf32>
    %28 = arith.addf %26, %27 : vector<6x6xf32>
    %cst_20 = arith.constant 2.000000e+00 : f32
    %29 = vector.broadcast %cst_20 : f32 to vector<6x6xf32>
    %30 = arith.mulf %29, %24 : vector<6x6xf32>
    %cst_21 = arith.constant 8.99999984E-4 : f32
    %31 = vector.broadcast %cst_21 : f32 to vector<6x6xf32>
    %32 = arith.addf %30, %31 : vector<6x6xf32>
    %33 = arith.mulf %28, %32 : vector<6x6xf32>
    %34 = arith.addf %19, %20 : vector<6x6xf32>
    %cst_22 = arith.constant 9.99999974E-5 : f32
    %35 = vector.broadcast %cst_22 : f32 to vector<6x6xf32>
    %36 = arith.addf %34, %35 : vector<6x6xf32>
    %37 = arith.addf %22, %23 : vector<6x6xf32>
    %cst_23 = arith.constant 8.99999984E-4 : f32
    %38 = vector.broadcast %cst_23 : f32 to vector<6x6xf32>
    %39 = arith.addf %37, %38 : vector<6x6xf32>
    %40 = arith.mulf %36, %39 : vector<6x6xf32>
    %41 = tpu.reciprocal %40 {approx = true} : vector<6x6xf32> -> vector<6x6xf32>
    %42 = arith.mulf %40, %41 : vector<6x6xf32>
    %cst_24 = arith.constant 2.000000e+00 : f32
    %43 = vector.broadcast %cst_24 : f32 to vector<6x6xf32>
    %44 = arith.subf %43, %42 : vector<6x6xf32>
    %45 = arith.mulf %41, %44 : vector<6x6xf32>
    %46 = arith.mulf %33, %45 : vector<6x6xf32>
    %c1 = arith.constant 1 : index
    %c0_25 = arith.constant 0 : index
    %c0_26 = arith.constant 0 : index
    %47 = vector.load %arg3[%c1, %c0_25, %c0_26] : memref<4x16x16xf32, #tpu.memory_space<vmem>>, vector<1x16x16xf32>
    %48 = vector.shape_cast %47 : vector<1x16x16xf32> to vector<16x16xf32>
    %c1_27 = arith.constant 1 : index
    %c0_28 = arith.constant 0 : index
    %c0_29 = arith.constant 0 : index
    %49 = vector.load %arg4[%c1_27, %c0_28, %c0_29] : memref<4x16x16xf32, #tpu.memory_space<vmem>>, vector<1x16x16xf32>
    %50 = vector.shape_cast %49 : vector<1x16x16xf32> to vector<16x16xf32>
    %cst_30 = arith.constant dense<0.000000e+00> : vector<6x16xf32>
    %51 = tpu.matmul %0, %48, %cst_30 {dimension_numbers = #tpu.dot_dimension_numbers<[1], [0], [0], [1], [0, 0, 1, 1], [], []>, precision = #tpu.contract_precision<fp32>} : vector<6x16xf32>, vector<16x16xf32>, vector<6x16xf32> -> vector<6x16xf32>
    %cst_31 = arith.constant dense<0.000000e+00> : vector<6x6xf32>
    %52 = tpu.matmul %51, %1, %cst_31 {dimension_numbers = #tpu.dot_dimension_numbers<[1], [0], [0], [1], [0, 0, 1, 1], [], []>, precision = #tpu.contract_precision<fp32>} : vector<6x16xf32>, vector<16x6xf32>, vector<6x6xf32> -> vector<6x6xf32>
    %cst_32 = arith.constant dense<0.000000e+00> : vector<6x16xf32>
    %53 = tpu.matmul %0, %50, %cst_32 {dimension_numbers = #tpu.dot_dimension_numbers<[1], [0], [0], [1], [0, 0, 1, 1], [], []>, precision = #tpu.contract_precision<fp32>} : vector<6x16xf32>, vector<16x16xf32>, vector<6x16xf32> -> vector<6x16xf32>
    %cst_33 = arith.constant dense<0.000000e+00> : vector<6x6xf32>
    %54 = tpu.matmul %53, %1, %cst_33 {dimension_numbers = #tpu.dot_dimension_numbers<[1], [0], [0], [1], [0, 0, 1, 1], [], []>, precision = #tpu.contract_precision<fp32>} : vector<6x16xf32>, vector<16x6xf32>, vector<6x6xf32> -> vector<6x6xf32>
    %55 = arith.mulf %48, %48 : vector<16x16xf32>
    %cst_34 = arith.constant dense<0.000000e+00> : vector<6x16xf32>
    %56 = tpu.matmul %0, %55, %cst_34 {dimension_numbers = #tpu.dot_dimension_numbers<[1], [0], [0], [1], [0, 0, 1, 1], [], []>, precision = #tpu.contract_precision<fp32>} : vector<6x16xf32>, vector<16x16xf32>, vector<6x16xf32> -> vector<6x16xf32>
    %cst_35 = arith.constant dense<0.000000e+00> : vector<6x6xf32>
    %57 = tpu.matmul %56, %1, %cst_35 {dimension_numbers = #tpu.dot_dimension_numbers<[1], [0], [0], [1], [0, 0, 1, 1], [], []>, precision = #tpu.contract_precision<fp32>} : vector<6x16xf32>, vector<16x6xf32>, vector<6x6xf32> -> vector<6x6xf32>
    %58 = arith.mulf %50, %50 : vector<16x16xf32>
    %cst_36 = arith.constant dense<0.000000e+00> : vector<6x16xf32>
    %59 = tpu.matmul %0, %58, %cst_36 {dimension_numbers = #tpu.dot_dimension_numbers<[1], [0], [0], [1], [0, 0, 1, 1], [], []>, precision = #tpu.contract_precision<fp32>} : vector<6x16xf32>, vector<16x16xf32>, vector<6x16xf32> -> vector<6x16xf32>
    %cst_37 = arith.constant dense<0.000000e+00> : vector<6x6xf32>
    %60 = tpu.matmul %59, %1, %cst_37 {dimension_numbers = #tpu.dot_dimension_numbers<[1], [0], [0], [1], [0, 0, 1, 1], [], []>, precision = #tpu.contract_precision<fp32>} : vector<6x16xf32>, vector<16x6xf32>, vector<6x6xf32> -> vector<6x6xf32>
    %61 = arith.mulf %48, %50 : vector<16x16xf32>
    %cst_38 = arith.constant dense<0.000000e+00> : vector<6x16xf32>
    %62 = tpu.matmul %0, %61, %cst_38 {dimension_numbers = #tpu.dot_dimension_numbers<[1], [0], [0], [1], [0, 0, 1, 1], [], []>, precision = #tpu.contract_precision<fp32>} : vector<6x16xf32>, vector<16x16xf32>, vector<6x16xf32> -> vector<6x16xf32>
    %cst_39 = arith.constant dense<0.000000e+00> : vector<6x6xf32>
    %63 = tpu.matmul %62, %1, %cst_39 {dimension_numbers = #tpu.dot_dimension_numbers<[1], [0], [0], [1], [0, 0, 1, 1], [], []>, precision = #tpu.contract_precision<fp32>} : vector<6x16xf32>, vector<16x6xf32>, vector<6x6xf32> -> vector<6x6xf32>
    %64 = arith.mulf %52, %52 : vector<6x6xf32>
    %65 = arith.mulf %54, %54 : vector<6x6xf32>
    %66 = arith.mulf %52, %54 : vector<6x6xf32>
    %67 = arith.subf %57, %64 : vector<6x6xf32>
    %68 = arith.subf %60, %65 : vector<6x6xf32>
    %69 = arith.subf %63, %66 : vector<6x6xf32>
    %cst_40 = arith.constant 2.000000e+00 : f32
    %70 = vector.broadcast %cst_40 : f32 to vector<6x6xf32>
    %71 = arith.mulf %70, %66 : vector<6x6xf32>
    %cst_41 = arith.constant 9.99999974E-5 : f32
    %72 = vector.broadcast %cst_41 : f32 to vector<6x6xf32>
    %73 = arith.addf %71, %72 : vector<6x6xf32>
    %cst_42 = arith.constant 2.000000e+00 : f32
    %74 = vector.broadcast %cst_42 : f32 to vector<6x6xf32>
    %75 = arith.mulf %74, %69 : vector<6x6xf32>
    %cst_43 = arith.constant 8.99999984E-4 : f32
    %76 = vector.broadcast %cst_43 : f32 to vector<6x6xf32>
    %77 = arith.addf %75, %76 : vector<6x6xf32>
    %78 = arith.mulf %73, %77 : vector<6x6xf32>
    %79 = arith.addf %64, %65 : vector<6x6xf32>
    %cst_44 = arith.constant 9.99999974E-5 : f32
    %80 = vector.broadcast %cst_44 : f32 to vector<6x6xf32>
    %81 = arith.addf %79, %80 : vector<6x6xf32>
    %82 = arith.addf %67, %68 : vector<6x6xf32>
    %cst_45 = arith.constant 8.99999984E-4 : f32
    %83 = vector.broadcast %cst_45 : f32 to vector<6x6xf32>
    %84 = arith.addf %82, %83 : vector<6x6xf32>
    %85 = arith.mulf %81, %84 : vector<6x6xf32>
    %86 = tpu.reciprocal %85 {approx = true} : vector<6x6xf32> -> vector<6x6xf32>
    %87 = arith.mulf %85, %86 : vector<6x6xf32>
    %cst_46 = arith.constant 2.000000e+00 : f32
    %88 = vector.broadcast %cst_46 : f32 to vector<6x6xf32>
    %89 = arith.subf %88, %87 : vector<6x6xf32>
    %90 = arith.mulf %86, %89 : vector<6x6xf32>
    %91 = arith.mulf %78, %90 : vector<6x6xf32>
    %92 = arith.addf %46, %91 : vector<6x6xf32>
    %c2 = arith.constant 2 : index
    %c0_47 = arith.constant 0 : index
    %c0_48 = arith.constant 0 : index
    %93 = vector.load %arg3[%c2, %c0_47, %c0_48] : memref<4x16x16xf32, #tpu.memory_space<vmem>>, vector<1x16x16xf32>
    %94 = vector.shape_cast %93 : vector<1x16x16xf32> to vector<16x16xf32>
    %c2_49 = arith.constant 2 : index
    %c0_50 = arith.constant 0 : index
    %c0_51 = arith.constant 0 : index
    %95 = vector.load %arg4[%c2_49, %c0_50, %c0_51] : memref<4x16x16xf32, #tpu.memory_space<vmem>>, vector<1x16x16xf32>
    %96 = vector.shape_cast %95 : vector<1x16x16xf32> to vector<16x16xf32>
    %cst_52 = arith.constant dense<0.000000e+00> : vector<6x16xf32>
    %97 = tpu.matmul %0, %94, %cst_52 {dimension_numbers = #tpu.dot_dimension_numbers<[1], [0], [0], [1], [0, 0, 1, 1], [], []>, precision = #tpu.contract_precision<fp32>} : vector<6x16xf32>, vector<16x16xf32>, vector<6x16xf32> -> vector<6x16xf32>
    %cst_53 = arith.constant dense<0.000000e+00> : vector<6x6xf32>
    %98 = tpu.matmul %97, %1, %cst_53 {dimension_numbers = #tpu.dot_dimension_numbers<[1], [0], [0], [1], [0, 0, 1, 1], [], []>, precision = #tpu.contract_precision<fp32>} : vector<6x16xf32>, vector<16x6xf32>, vector<6x6xf32> -> vector<6x6xf32>
    %cst_54 = arith.constant dense<0.000000e+00> : vector<6x16xf32>
    %99 = tpu.matmul %0, %96, %cst_54 {dimension_numbers = #tpu.dot_dimension_numbers<[1], [0], [0], [1], [0, 0, 1, 1], [], []>, precision = #tpu.contract_precision<fp32>} : vector<6x16xf32>, vector<16x16xf32>, vector<6x16xf32> -> vector<6x16xf32>
    %cst_55 = arith.constant dense<0.000000e+00> : vector<6x6xf32>
    %100 = tpu.matmul %99, %1, %cst_55 {dimension_numbers = #tpu.dot_dimension_numbers<[1], [0], [0], [1], [0, 0, 1, 1], [], []>, precision = #tpu.contract_precision<fp32>} : vector<6x16xf32>, vector<16x6xf32>, vector<6x6xf32> -> vector<6x6xf32>
    %101 = arith.mulf %94, %94 : vector<16x16xf32>
    %cst_56 = arith.constant dense<0.000000e+00> : vector<6x16xf32>
    %102 = tpu.matmul %0, %101, %cst_56 {dimension_numbers = #tpu.dot_dimension_numbers<[1], [0], [0], [1], [0, 0, 1, 1], [], []>, precision = #tpu.contract_precision<fp32>} : vector<6x16xf32>, vector<16x16xf32>, vector<6x16xf32> -> vector<6x16xf32>
    %cst_57 = arith.constant dense<0.000000e+00> : vector<6x6xf32>
    %103 = tpu.matmul %102, %1, %cst_57 {dimension_numbers = #tpu.dot_dimension_numbers<[1], [0], [0], [1], [0, 0, 1, 1], [], []>, precision = #tpu.contract_precision<fp32>} : vector<6x16xf32>, vector<16x6xf32>, vector<6x6xf32> -> vector<6x6xf32>
    %104 = arith.mulf %96, %96 : vector<16x16xf32>
    %cst_58 = arith.constant dense<0.000000e+00> : vector<6x16xf32>
    %105 = tpu.matmul %0, %104, %cst_58 {dimension_numbers = #tpu.dot_dimension_numbers<[1], [0], [0], [1], [0, 0, 1, 1], [], []>, precision = #tpu.contract_precision<fp32>} : vector<6x16xf32>, vector<16x16xf32>, vector<6x16xf32> -> vector<6x16xf32>
    %cst_59 = arith.constant dense<0.000000e+00> : vector<6x6xf32>
    %106 = tpu.matmul %105, %1, %cst_59 {dimension_numbers = #tpu.dot_dimension_numbers<[1], [0], [0], [1], [0, 0, 1, 1], [], []>, precision = #tpu.contract_precision<fp32>} : vector<6x16xf32>, vector<16x6xf32>, vector<6x6xf32> -> vector<6x6xf32>
    %107 = arith.mulf %94, %96 : vector<16x16xf32>
    %cst_60 = arith.constant dense<0.000000e+00> : vector<6x16xf32>
    %108 = tpu.matmul %0, %107, %cst_60 {dimension_numbers = #tpu.dot_dimension_numbers<[1], [0], [0], [1], [0, 0, 1, 1], [], []>, precision = #tpu.contract_precision<fp32>} : vector<6x16xf32>, vector<16x16xf32>, vector<6x16xf32> -> vector<6x16xf32>
    %cst_61 = arith.constant dense<0.000000e+00> : vector<6x6xf32>
    %109 = tpu.matmul %108, %1, %cst_61 {dimension_numbers = #tpu.dot_dimension_numbers<[1], [0], [0], [1], [0, 0, 1, 1], [], []>, precision = #tpu.contract_precision<fp32>} : vector<6x16xf32>, vector<16x6xf32>, vector<6x6xf32> -> vector<6x6xf32>
    %110 = arith.mulf %98, %98 : vector<6x6xf32>
    %111 = arith.mulf %100, %100 : vector<6x6xf32>
    %112 = arith.mulf %98, %100 : vector<6x6xf32>
    %113 = arith.subf %103, %110 : vector<6x6xf32>
    %114 = arith.subf %106, %111 : vector<6x6xf32>
    %115 = arith.subf %109, %112 : vector<6x6xf32>
    %cst_62 = arith.constant 2.000000e+00 : f32
    %116 = vector.broadcast %cst_62 : f32 to vector<6x6xf32>
    %117 = arith.mulf %116, %112 : vector<6x6xf32>
    %cst_63 = arith.constant 9.99999974E-5 : f32
    %118 = vector.broadcast %cst_63 : f32 to vector<6x6xf32>
    %119 = arith.addf %117, %118 : vector<6x6xf32>
    %cst_64 = arith.constant 2.000000e+00 : f32
    %120 = vector.broadcast %cst_64 : f32 to vector<6x6xf32>
    %121 = arith.mulf %120, %115 : vector<6x6xf32>
    %cst_65 = arith.constant 8.99999984E-4 : f32
    %122 = vector.broadcast %cst_65 : f32 to vector<6x6xf32>
    %123 = arith.addf %121, %122 : vector<6x6xf32>
    %124 = arith.mulf %119, %123 : vector<6x6xf32>
    %125 = arith.addf %110, %111 : vector<6x6xf32>
    %cst_66 = arith.constant 9.99999974E-5 : f32
    %126 = vector.broadcast %cst_66 : f32 to vector<6x6xf32>
    %127 = arith.addf %125, %126 : vector<6x6xf32>
    %128 = arith.addf %113, %114 : vector<6x6xf32>
    %cst_67 = arith.constant 8.99999984E-4 : f32
    %129 = vector.broadcast %cst_67 : f32 to vector<6x6xf32>
    %130 = arith.addf %128, %129 : vector<6x6xf32>
    %131 = arith.mulf %127, %130 : vector<6x6xf32>
    %132 = tpu.reciprocal %131 {approx = true} : vector<6x6xf32> -> vector<6x6xf32>
    %133 = arith.mulf %131, %132 : vector<6x6xf32>
    %cst_68 = arith.constant 2.000000e+00 : f32
    %134 = vector.broadcast %cst_68 : f32 to vector<6x6xf32>
    %135 = arith.subf %134, %133 : vector<6x6xf32>
    %136 = arith.mulf %132, %135 : vector<6x6xf32>
    %137 = arith.mulf %124, %136 : vector<6x6xf32>
    %138 = arith.addf %92, %137 : vector<6x6xf32>
    %c3 = arith.constant 3 : index
    %c0_69 = arith.constant 0 : index
    %c0_70 = arith.constant 0 : index
    %139 = vector.load %arg3[%c3, %c0_69, %c0_70] : memref<4x16x16xf32, #tpu.memory_space<vmem>>, vector<1x16x16xf32>
    %140 = vector.shape_cast %139 : vector<1x16x16xf32> to vector<16x16xf32>
    %c3_71 = arith.constant 3 : index
    %c0_72 = arith.constant 0 : index
    %c0_73 = arith.constant 0 : index
    %141 = vector.load %arg4[%c3_71, %c0_72, %c0_73] : memref<4x16x16xf32, #tpu.memory_space<vmem>>, vector<1x16x16xf32>
    %142 = vector.shape_cast %141 : vector<1x16x16xf32> to vector<16x16xf32>
    %cst_74 = arith.constant dense<0.000000e+00> : vector<6x16xf32>
    %143 = tpu.matmul %0, %140, %cst_74 {dimension_numbers = #tpu.dot_dimension_numbers<[1], [0], [0], [1], [0, 0, 1, 1], [], []>, precision = #tpu.contract_precision<fp32>} : vector<6x16xf32>, vector<16x16xf32>, vector<6x16xf32> -> vector<6x16xf32>
    %cst_75 = arith.constant dense<0.000000e+00> : vector<6x6xf32>
    %144 = tpu.matmul %143, %1, %cst_75 {dimension_numbers = #tpu.dot_dimension_numbers<[1], [0], [0], [1], [0, 0, 1, 1], [], []>, precision = #tpu.contract_precision<fp32>} : vector<6x16xf32>, vector<16x6xf32>, vector<6x6xf32> -> vector<6x6xf32>
    %cst_76 = arith.constant dense<0.000000e+00> : vector<6x16xf32>
    %145 = tpu.matmul %0, %142, %cst_76 {dimension_numbers = #tpu.dot_dimension_numbers<[1], [0], [0], [1], [0, 0, 1, 1], [], []>, precision = #tpu.contract_precision<fp32>} : vector<6x16xf32>, vector<16x16xf32>, vector<6x16xf32> -> vector<6x16xf32>
    %cst_77 = arith.constant dense<0.000000e+00> : vector<6x6xf32>
    %146 = tpu.matmul %145, %1, %cst_77 {dimension_numbers = #tpu.dot_dimension_numbers<[1], [0], [0], [1], [0, 0, 1, 1], [], []>, precision = #tpu.contract_precision<fp32>} : vector<6x16xf32>, vector<16x6xf32>, vector<6x6xf32> -> vector<6x6xf32>
    %147 = arith.mulf %140, %140 : vector<16x16xf32>
    %cst_78 = arith.constant dense<0.000000e+00> : vector<6x16xf32>
    %148 = tpu.matmul %0, %147, %cst_78 {dimension_numbers = #tpu.dot_dimension_numbers<[1], [0], [0], [1], [0, 0, 1, 1], [], []>, precision = #tpu.contract_precision<fp32>} : vector<6x16xf32>, vector<16x16xf32>, vector<6x16xf32> -> vector<6x16xf32>
    %cst_79 = arith.constant dense<0.000000e+00> : vector<6x6xf32>
    %149 = tpu.matmul %148, %1, %cst_79 {dimension_numbers = #tpu.dot_dimension_numbers<[1], [0], [0], [1], [0, 0, 1, 1], [], []>, precision = #tpu.contract_precision<fp32>} : vector<6x16xf32>, vector<16x6xf32>, vector<6x6xf32> -> vector<6x6xf32>
    %150 = arith.mulf %142, %142 : vector<16x16xf32>
    %cst_80 = arith.constant dense<0.000000e+00> : vector<6x16xf32>
    %151 = tpu.matmul %0, %150, %cst_80 {dimension_numbers = #tpu.dot_dimension_numbers<[1], [0], [0], [1], [0, 0, 1, 1], [], []>, precision = #tpu.contract_precision<fp32>} : vector<6x16xf32>, vector<16x16xf32>, vector<6x16xf32> -> vector<6x16xf32>
    %cst_81 = arith.constant dense<0.000000e+00> : vector<6x6xf32>
    %152 = tpu.matmul %151, %1, %cst_81 {dimension_numbers = #tpu.dot_dimension_numbers<[1], [0], [0], [1], [0, 0, 1, 1], [], []>, precision = #tpu.contract_precision<fp32>} : vector<6x16xf32>, vector<16x6xf32>, vector<6x6xf32> -> vector<6x6xf32>
    %153 = arith.mulf %140, %142 : vector<16x16xf32>
    %cst_82 = arith.constant dense<0.000000e+00> : vector<6x16xf32>
    %154 = tpu.matmul %0, %153, %cst_82 {dimension_numbers = #tpu.dot_dimension_numbers<[1], [0], [0], [1], [0, 0, 1, 1], [], []>, precision = #tpu.contract_precision<fp32>} : vector<6x16xf32>, vector<16x16xf32>, vector<6x16xf32> -> vector<6x16xf32>
    %cst_83 = arith.constant dense<0.000000e+00> : vector<6x6xf32>
    %155 = tpu.matmul %154, %1, %cst_83 {dimension_numbers = #tpu.dot_dimension_numbers<[1], [0], [0], [1], [0, 0, 1, 1], [], []>, precision = #tpu.contract_precision<fp32>} : vector<6x16xf32>, vector<16x6xf32>, vector<6x6xf32> -> vector<6x6xf32>
    %156 = arith.mulf %144, %144 : vector<6x6xf32>
    %157 = arith.mulf %146, %146 : vector<6x6xf32>
    %158 = arith.mulf %144, %146 : vector<6x6xf32>
    %159 = arith.subf %149, %156 : vector<6x6xf32>
    %160 = arith.subf %152, %157 : vector<6x6xf32>
    %161 = arith.subf %155, %158 : vector<6x6xf32>
    %cst_84 = arith.constant 2.000000e+00 : f32
    %162 = vector.broadcast %cst_84 : f32 to vector<6x6xf32>
    %163 = arith.mulf %162, %158 : vector<6x6xf32>
    %cst_85 = arith.constant 9.99999974E-5 : f32
    %164 = vector.broadcast %cst_85 : f32 to vector<6x6xf32>
    %165 = arith.addf %163, %164 : vector<6x6xf32>
    %cst_86 = arith.constant 2.000000e+00 : f32
    %166 = vector.broadcast %cst_86 : f32 to vector<6x6xf32>
    %167 = arith.mulf %166, %161 : vector<6x6xf32>
    %cst_87 = arith.constant 8.99999984E-4 : f32
    %168 = vector.broadcast %cst_87 : f32 to vector<6x6xf32>
    %169 = arith.addf %167, %168 : vector<6x6xf32>
    %170 = arith.mulf %165, %169 : vector<6x6xf32>
    %171 = arith.addf %156, %157 : vector<6x6xf32>
    %cst_88 = arith.constant 9.99999974E-5 : f32
    %172 = vector.broadcast %cst_88 : f32 to vector<6x6xf32>
    %173 = arith.addf %171, %172 : vector<6x6xf32>
    %174 = arith.addf %159, %160 : vector<6x6xf32>
    %cst_89 = arith.constant 8.99999984E-4 : f32
    %175 = vector.broadcast %cst_89 : f32 to vector<6x6xf32>
    %176 = arith.addf %174, %175 : vector<6x6xf32>
    %177 = arith.mulf %173, %176 : vector<6x6xf32>
    %178 = tpu.reciprocal %177 {approx = true} : vector<6x6xf32> -> vector<6x6xf32>
    %179 = arith.mulf %177, %178 : vector<6x6xf32>
    %cst_90 = arith.constant 2.000000e+00 : f32
    %180 = vector.broadcast %cst_90 : f32 to vector<6x6xf32>
    %181 = arith.subf %180, %179 : vector<6x6xf32>
    %182 = arith.mulf %178, %181 : vector<6x6xf32>
    %183 = arith.mulf %170, %182 : vector<6x6xf32>
    %184 = arith.addf %138, %183 : vector<6x6xf32>
    %185 = vector.shape_cast %184 : vector<6x6xf32> to vector<1x6x6xf32>
    %cst_91 = arith.constant dense<0.000000e+00> : vector<1xf32>
    %186 = vector.multi_reduction <add>, %185, %cst_91 [1, 2] : vector<1x6x6xf32> to vector<1xf32>
    %187 = vector.shape_cast %186 : vector<1xf32> to vector<1x1x1xf32>
    %188 = vector.extract %187[0, 0, 0] : f32 from vector<1x1x1xf32>
    %cst_92 = arith.constant 0.000000e+00 : f32
    %189 = vector.broadcast %cst_92 : f32 to vector<1x8x128xf32>
    %190 = vector.broadcast %188 : f32 to vector<1x8x128xf32>
    %191 = arith.addf %189, %190 : vector<1x8x128xf32>
    %c0_93 = arith.constant 0 : index
    %c0_94 = arith.constant 0 : index
    %c0_95 = arith.constant 0 : index
    %192 = vector.load %arg5[%c0_93, %c0_94, %c0_95] : memref<1x8x128xf32, #tpu.memory_space<vmem>>, vector<1x8x128xf32>
    tpu.vector_store %arg5[%c0_93, %c0_94, %c0_95], %191 {strides = array<i32>} : memref<1x8x128xf32, #tpu.memory_space<vmem>>, vector<1x8x128xf32>,
    return
  }
  func.func @transform_0(%arg0: i32) -> (i32, i32) {
    %c0_i32 = arith.constant 0 : i32
    %c0_i32_0 = arith.constant 0 : i32
    %c0_i32_1 = arith.constant 0 : i32
    return %c0_i32, %c0_i32_0 : i32, i32
  }
  func.func @transform_1(%arg0: i32) -> (i32, i32) {
    %c0_i32 = arith.constant 0 : i32
    %c0_i32_0 = arith.constant 0 : i32
    %c0_i32_1 = arith.constant 0 : i32
    return %c0_i32, %c0_i32_0 : i32, i32
  }
  func.func @transform_2(%arg0: i32) -> (i32, i32, i32) {
    %c0_i32 = arith.constant 0 : i32
    %c0_i32_0 = arith.constant 0 : i32
    %c0_i32_1 = arith.constant 0 : i32
    return %arg0, %c0_i32, %c0_i32_0 : i32, i32, i32
  }
  func.func @transform_3(%arg0: i32) -> (i32, i32, i32) {
    %c0_i32 = arith.constant 0 : i32
    %c0_i32_0 = arith.constant 0 : i32
    %c0_i32_1 = arith.constant 0 : i32
    return %arg0, %c0_i32, %c0_i32_0 : i32, i32, i32
  }
  func.func @transform_4(%arg0: i32) -> (i32, i32, i32) {
    %c0_i32 = arith.constant 0 : i32
    %c0_i32_0 = arith.constant 0 : i32
    %c0_i32_1 = arith.constant 0 : i32
    return %arg0, %c0_i32, %c0_i32_0 : i32, i32, i32
  }
}

</mosaic_0001>

<bundles_post_ra>
// kernel: ssim_pallas.1
= control target key start
LH: loop header
LB: loop body
LE: loop exit
PB: predicated region body
PF: predicated region fallthrough
CT: control target
= control target key end

     0   :  { %9 = vsyncpa [#allocation3], 0  ;;  %s23848_s0 = inlined_call_operand.vmem [shape: f32[6,16], index: 0, kind: input, shape index: {}]   ;;  %s23849_s1 = inlined_call_operand.hbm [shape: f32[16,6], index: 1, kind: input, shape index: {}]   ;;  %s23850_s2 = inlined_call_operand.hbm [shape: f32[8,16,16], index: 2, kind: input, shape index: {}]   ;;  %s23851_s3 = inlined_call_operand.hbm [shape: f32[8,16,16], index: 3, kind: input, shape index: {}]   ;;  %s23852_s4 = inlined_call_operand.vmem [shape: f32[2,8,128], index: 4, kind: output, shape index: {}]  }
   0x1   :  { %10 = vsyncpa [#allocation5], 0 }
   0x2   :  { %12 = vsyncpa [#allocation5 + $0x1], 0  ;;  %s21607_s15 = smov 0   ;;  %s21609_s16 = smov 0  }
   0x3   :  { %s21611_s17 = smov 0   ;;  %s21613_s18 = smov 0  }
   0x4 LB: > { %s21628_s19 = sadd.s32 1, %s21573_s18   ;;  %s67_s20 = sadd.s32 1, %s21569_s17  ;;  %s21573_s18 = sphi %s21613_s18, %s23866_s18   ;;  %s21569_s17 = sphi %s21611_s17, %s23865_s17   ;;  %s21565_s16 = sphi %s21609_s16, %s23864_s16   ;;  %s21561_s15 = sphi %s21607_s15, %s23863_s15  }
   0x5   : > { %s64_s21 = ssub.s32 %s21573_s18, %s21628_s19  ;;  %p74_p0 = scmp.ne.s32.totalorder %s21569_s17, %s21565_s16 }
   0x6   : > { %p65_p1 = scmp.eq.s32.totalorder %s64_s21, 0  ;;  %p75_p2 = scmp.eq.s32.totalorder %s21573_s18, 0 }
   0x7   : > { %p21400_p4 = scmp.lt.s32.totalorder %s21573_s18, 2  ;;  %s172_s23 = sand.u32 1, %s21573_s18  }
   0x8   : > { %s21637_s22 = scalar_select %p65_p1, %s21569_s17, %s67_s20  }
   0x9   : > { %p76_p3 = por %p75_p2, %p74_p0  ;;  %s174_s24 = sand.u32 1, %s21569_s17  }
   0xa   : > { %s21642_s25 = sshll.u32 %s174_s24, 6  ;;  %s18975_s26 = sshll.u32 %s21573_s18, 10 }
   0xb   : > { %s21650_s29 = scalar_lea.hbm %s23850_s2, %s18975_s26  ;;  %s176_s30 = scalar_lea.vmem [#allocation4], %s21642_s25 }
   0xc   : > { %s184_s5 = sshll.u32 %s176_s30, 4  ;;  %p21653_p5 = pnand %p21400_p4, %p76_p3  ;;  %s21657_s5 = int_to_ptr.vmem [resolvable:$true] %s184_s5 }
   0xd   : > { %s21659_s7 = scalar_lea.sflag [#allocation5], %s172_s23  ;;  %s21453_s8 = scalar_lea.hbm %s21650_s29, 1024 }
   0xe   : > { %p21454_p6 = scmp.ne.s32.totalorder %s21650_s29, %s21453_s8  ;;  %p21455_p7 = pneg %p21653_p5 }
   0xf   : > { %s21458_s11 = scalar_lea.hbm %s23850_s2, 2048  ;;  %p21459_p10 = scmp.lt.s32.totalorder %s21650_s29, %s23850_s2 }
  0x10   : > { %p21456_p8 = pnand %p21455_p7, %p21454_p6  ;;  %p21460_p11 = scmp.lt.s32.totalorder %s21458_s11, %s21453_s8 }
  0x12   : > { %p21457_p9 = pneg %p21456_p8  ;;  %p21461_p12 = por %p21460_p11, %p21459_p10 }
  0x14   : > { %p21462_p13 = pnand %p21461_p12, %p21457_p9 }
  0x16   : > { %21465 = shalt.err (!%p21462_p13)
}
  0x17   : > { %s21466_s14 = scalar_lea.vmem %s21657_s5, 1024  ;;  %s21575_s20 = smov [#allocation4]  }
  0x18   : > { %p21467_p0 = scmp.ne.s32.totalorder %s21657_s5, %s21466_s14  ;;  %s21471_s21 = sshll.u32 %s21575_s20, 4  ;;  %s21472_s21 = int_to_ptr.vmem [resolvable:$false] %s21471_s21 }
  0x19   : > { %s21473_s23 = scalar_lea.vmem %s21472_s21, 2048  ;;  %p21474_p3 = scmp.lt.s32.totalorder %s21657_s5, %s21472_s21 }
  0x1a   : > { %p21469_p1 = pnand %p21467_p0, %p21455_p7  ;;  %p21475_p4 = scmp.lt.s32.totalorder %s21473_s23, %s21466_s14 }
  0x1c   : > { %p21470_p2 = pneg %p21469_p1  ;;  %p21476_p6 = por %p21475_p4, %p21474_p3 }
  0x1e   : > { %p21477_p8 = pnand %p21476_p6, %p21470_p2 }
  0x20   : > { %21480 = shalt.err (!%p21477_p8)
}
  0x21   : > { %s21576_s24 = smov 128   ;;  %s21577_s27 = smov 8  }
  0x22   : > { %21395 = dma.hbm_to_vmem [thread:$0]  (!%p21653_p5), %s21650_s29, 1024, %s21657_s5, %s21659_s7, %s21576_s24, %s21576_s24, %s21577_s27  }
  0x23   : > { %s21694_s8 = scalar_lea.hbm %s23851_s3, %s18975_s26  ;;  %s198_s9 = scalar_lea.vmem [#allocation6], %s21642_s25 }
  0x24   : > { %s206_s10 = sshll.u32 %s198_s9, 4  ;;  %s21698_s11 = sadd.s32 4294967295, %s21573_s18   ;;  %s21711_s10 = int_to_ptr.vmem [resolvable:$true] %s206_s10 }
  0x25   : > { %p80_p9 = scmp.ne.s32.totalorder %s21565_s16, %s21561_s15  ;;  %p23853_p10 = scmp.eq.s32.totalorder %s21698_s11, 0 }
  0x26   : > { %p18944_p11 = scmp.ge.s32.totalorder %s21573_s18, 1  ;;  %p143_p12 = scmp.lt.s32.totalorder %s21573_s18, 3 }
  0x27   : > { %p21707_p13 = por %p23853_p10, %p80_p9  ;;  %s21578_s25 = smov [#allocation2]  }
  0x28   : > { %p21713_p0 = pnand %p18944_p11, %p143_p12  ;;  %s21717_s5 = sshll.u32 %s21578_s25, 4  ;;  %s159_s5 = int_to_ptr.vmem [resolvable:$true] %s21717_s5 }
  0x29   : > { %s23856_s29 = scalar_select %p21707_p13, 1, 0 }
  0x2a   : > { %s21481_s15 = scalar_lea.hbm %s21694_s8, 1024  ;;  %s21486_s13 = scalar_lea.hbm %s23851_s3, 2048 }
  0x2b   : > { %p21482_p2 = scmp.ne.s32.totalorder %s21694_s8, %s21481_s15  ;;  %p21487_p6 = scmp.lt.s32.totalorder %s21694_s8, %s23851_s3 }
  0x2c   : > { %p21488_p8 = scmp.lt.s32.totalorder %s21486_s13, %s21481_s15 }
  0x2d   : > { %p21484_p3 = pnand %p21482_p2, %p21455_p7 }
  0x2e   : > { %p21489_p9 = por %p21488_p8, %p21487_p6 }
  0x2f   : > { %p21485_p4 = pneg %p21484_p3 }
  0x31   : > { %p21490_p11 = pnand %p21489_p9, %p21485_p4 }
  0x33   : > { %21493 = shalt.err (!%p21490_p11)
}
  0x34   : > { %s21494_s21 = scalar_lea.vmem %s21711_s10, 1024  ;;  %s21579_s23 = smov [#allocation6]  }
  0x35   : > { %p21495_p12 = scmp.ne.s32.totalorder %s21711_s10, %s21494_s21  ;;  %s21499_s28 = sshll.u32 %s21579_s23, 4  ;;  %s21500_s28 = int_to_ptr.vmem [resolvable:$false] %s21499_s28 }
  0x36   : > { %s21501_s30 = scalar_lea.vmem %s21500_s28, 2048  ;;  %p21502_p1 = scmp.lt.s32.totalorder %s21711_s10, %s21500_s28 }
  0x37   : > { %p21497_p2 = pnand %p21495_p12, %p21455_p7  ;;  %p21503_p10 = scmp.lt.s32.totalorder %s21501_s30, %s21494_s21 }
  0x39   : > { %p21498_p3 = pneg %p21497_p2  ;;  %p21504_p13 = por %p21503_p10, %p21502_p1 }
  0x3b   : > { %p21505_p6 = pnand %p21504_p13, %p21498_p3 }
  0x3d   : > { %21508 = shalt.err (!%p21505_p6)
}
  0x3e   : > { %21398 = dma.hbm_to_vmem [thread:$0]  (!%p21653_p5), %s21694_s8, 1024, %s21711_s10, %s21659_s7, %s21576_s24, %s21576_s24, %s21577_s27  }
  0x3f   : > { %p23858_p7 = scmp.eq.s32.totalorder %s21698_s11, 0  ;;  %p23859_p4 = pneg %p21713_p0 }
  0x40   : > { %s21520_s9 = scalar_lea.vmem %s159_s5, 256  ;;  %p21528_p11 = scmp.lt.s32.totalorder %s159_s5, %s159_s5 }
  0x41   : > { %p21389_p8 = pnand %p23859_p4, %p23858_p7  ;;  %p21521_p13 = scmp.ne.s32.totalorder %s159_s5, %s21520_s9 }
  0x42   : > { %p21529_p12 = scmp.lt.s32.totalorder %s21520_s9, %s21520_s9 }
  0x43   : > { %p21511_p10 = pneg %p21389_p8 }
  0x44   : > { %p21530_p2 = por %p21529_p12, %p21528_p11 }
  0x45   : > { %p21523_p1 = pnand %p21521_p13, %p21511_p10 }
  0x47   : > { %p21524_p9 = pneg %p21523_p1 }
  0x49   : > { %p21531_p3 = pnand %p21530_p2, %p21524_p9 }
  0x4b   : > { %21534 = shalt.err (!%p21531_p3)
}
  0x4c   : > { %21391 = dma.hbm_to_vmem [thread:$0]  (!%p21389_p8), %s23849_s1, 256, %s159_s5, [#allocation3], %s21576_s24, %s21576_s24, %s21577_s27  }
  0x4d   : > { %218 = sbr.rel (%p21713_p0) target bundleno = 5110 (0x13f6), region = 36  ;;  %p23860_p5 = scmp.eq.s32.totalorder (!%p21713_p0), %s21698_s11, 0 }
  0x52   : > { %21552 = dma.done.wait (%p23860_p5), [#allocation3], 256   ;;  %p23861_p6 = pmov %p23860_p5 }
  0x53   : > { %s224_s8 = sand.u32 1, %s21698_s11   ;;  %s226_s10 = sand.u32 1, %s21565_s16  }
  0x54   : > { %21554 = vsyncadd (%p23861_p6), [#allocation3], 4294967040  ;;  %s21767_s25 = sshll.u32 %s226_s10, 6  ;;  %s225_s15 = scalar_lea.sflag [#allocation5], %s224_s8 }
  0x55   : > { %s21770_s18 = scalar_lea.vmem [#allocation4], %s21767_s25  ;;  %p23862_p7 = scmp.ne.s32.totalorder %s23856_s29, 0 }
  0x57   : > { %21556 = dma.done.wait (%p23862_p7), %s225_s15, 2048  }
  0x58   : > { %21558 = vsyncadd (%p23862_p7), %s225_s15, 4294965248  ;;  %v21580_v0 = vmov 0.0   ;;  %vm21581_vm0 = vmmov 0   ;;  %vm279_vm1 = vcmask 130048   ;;  %v21783_v1 = vld [vmem:[%s21770_s18 + $0x8] sm:$0xff]  ;;  %v21786_v2 = vld [vmem:[%s21770_s18] sm:$0xff] }
  0x59   : > { %19698 = vmatprep.subr.mxu0 %v21580_v0  ;;  %19705 = vmatprep.subr.mxu1 %v21580_v0  ;;  %v272_v3 = vld [vmem:[%s23848_s0] sm:$0x3f]  ;;  %v312_v4 = vand.u32 4294901760, %v21783_v1  ;;  %v315_v5 = vand.u32 4294901760, %v21786_v2  ;;  %v274_v20 = vld [vmem:[#allocation2 + $0x8] sm:$0xff]  ;;  %s21871_s29 = scalar_lea.vmem [#allocation6], %s21767_s25 }
  0x5a   : > { %19702 = vmatprep.mubr.msk.f32.mxu0 %vm21581_vm0, %v21580_v0  ;;  %19709 = vmatprep.mubr.msk.f32.mxu1 %vm21581_vm0, %v21580_v0  ;;  %v281_v6 = vsel %vm279_vm1, %v272_v3, 0  ;;  %v21838_v21 = vand.u32 4294901760, %v274_v20  ;;  %v273_v22 = vld [vmem:[#allocation2] sm:$0xff]  ;;  %v21874_v40 = vld [vmem:[%s21871_s29 + $0x8] sm:$0xff]  ;;  %v21880_v46 = vld [vmem:[%s21871_s29] sm:$0xff]  ;;  %vm18832_vm2 = vcmask 46080  }
  0x5b   : > { %v21794_v7 = vand.u32 4294901760, %v281_v6  ;;  %19699 = vmatpush3.msra.mxu0 %v312_v4  ;;  %v390_v8 = vsub.f32 %v21783_v1, %v312_v4  ;;  %v397_v9 = vsub.f32 %v21786_v2, %v315_v5  ;;  %v21843_v24 = vand.u32 4294901760, %v273_v22  ;;  %p268_p0 = scmp.lt.s32.totalorder %s21698_s11, 1 }
  0x5c   : > { %19700 = vmatprep.subr.mxu0 %v21580_v0  ;;  %v21841_v23 = vsub.f32 %v274_v20, %v21838_v21  ;;  %v21877_v44 = vand.u32 4294901760, %v21874_v40  ;;  %v21887_v52 = vand.u32 4294901760, %v21880_v46 }
  0x5d   : > { %v21800_v10 = vsub.f32 %v281_v6, %v21794_v7  ;;  %19701 = vmatpush3.msra.mxu0 %v315_v5  ;;  %v391_v11 = vand.u32 4294901760, %v390_v8  ;;  %v398_v12 = vand.u32 4294901760, %v397_v9  ;;  %v21851_v26 = vsub.f32 %v273_v22, %v21843_v24  ;;  %s23868_s11 = smov (!%p268_p0, %s21698_s11), 1 }
  0x5e   : > { %19712 = vmatprep.subr.mxu0 %v21580_v0  ;;  %v21848_v25 = vand.u32 4294901760, %v21841_v23  ;;  %v21884_v51 = vsub.f32 %v21874_v40, %v21877_v44  ;;  %v21893_v57 = vsub.f32 %v21880_v46, %v21887_v52  ;;  %s18959_s26 = sshll.u32 %s23868_s11, 3 }
  0x5f   : > { %v21803_v13 = vand.u32 4294901760, %v21800_v10  ;;  %v392_v14 = vsub.f32 %v390_v8, %v391_v11  ;;  %v399_v15 = vsub.f32 %v397_v9, %v398_v12  ;;  %v21858_v28 = vand.u32 4294901760, %v21851_v26  ;;  %s271_s13 = scalar_lea.vmem %s23852_s4, %s18959_s26 }
  0x60   : > { %v854_v27 = vsub.f32 %v21841_v23, %v21848_v25  ;;  %v1312_v56 = vand.u32 4294901760, %v21884_v51  ;;  %v1319_v61 = vand.u32 4294901760, %v21893_v57 }
  0x61   : > { %v353_v16 = vsub.f32 %v21800_v10, %v21803_v13  ;;  %v393_v17 = vand.u32 4294901760, %v392_v14  ;;  %v400_v18 = vand.u32 4294901760, %v399_v15  ;;  %v861_v30 = vsub.f32 %v21851_v26, %v21858_v28 }
  0x62   : > { %v21860_v29 = vand.u32 4294901760, %v854_v27  ;;  %v1313_v60 = vsub.f32 %v21884_v51, %v1312_v56 }
  0x63   : > { %v21808_v19 = vand.u32 4294901760, %v353_v16  ;;  %19706 = vmatpush3.msra.mxu1 %v393_v17  ;;  %v21865_v31 = vand.u32 4294901760, %v861_v30 }
  0x64   : > { %19707 = vmatprep.subr.mxu1 %v21580_v0  ;;  %v1314_v3 = vand.u32 4294901760, %v1313_v60 }
  0x65   : > { %19703 = vmatmul.mubr.f32.vlgmr.msra.gmra.mxu0 %v21808_v19  ;;  %19708 = vmatpush3.msra.mxu1 %v400_v18 }
  0x66   : > { %19713 = vmatpush3.msra.mxu0 %v390_v8  ;;  %19710 = vmatmul.mubr.f32.vlgmr.msra.gmra.mxu1 %v21794_v7 }
  0x67   : > { %19714 = vmatprep.subr.mxu0 %v21580_v0  ;;  %19719 = vmatprep.subr.mxu1 %v21580_v0 }
  0x68   : > { %19715 = vmatpush3.msra.mxu0 %v397_v9  ;;  %19716 = vmatprep.mubr.msk.f32.mxu0 %vm21581_vm0, %v21580_v0 }
  0x69   : > { %19720 = vmatpush3.msra.mxu1 %v312_v4  ;;  %19717 = vmatmul.mubr.f32.vlgmr.msra.gmra.mxu0 %v21800_v10 }
  0x6a   : > { %19721 = vmatprep.subr.mxu1 %v21580_v0  ;;  %19726 = vmatprep.subr.mxu0 %v21580_v0 }
  0x6b   : > { %19722 = vmatpush3.msra.mxu1 %v315_v5  ;;  %19723 = vmatprep.mubr.msk.f32.mxu1 %vm21581_vm0, %v21580_v0 }
  0x6c   : > { %19727 = vmatpush3.msra.mxu0 %v391_v11  ;;  %19724 = vmatmul.mubr.f32.vlgmr.msra.gmra.mxu1 %v21803_v13 }
  0x6d   : > { %19728 = vmatprep.subr.mxu0 %v21580_v0  ;;  %19733 = vmatprep.subr.mxu1 %v21580_v0 }
  0x6e   : > { %19729 = vmatpush3.msra.mxu0 %v398_v12  ;;  %19730 = vmatprep.mubr.msk.f32.mxu0 %vm21581_vm0, %v21580_v0 }
  0x6f   : > { %19734 = vmatpush3.msra.mxu1 %v312_v4  ;;  %19731 = vmatmul.mubr.f32.vlgmr.msra.gmra.mxu0 %v21794_v7  ;;  %v1320_v4 = vsub.f32 %v21893_v57, %v1319_v61 }
  0x70   : > { %19735 = vmatprep.subr.mxu1 %v21580_v0  ;;  %19737 = vmatprep.mubr.msk.f32.mxu1 %vm21581_vm0, %v21580_v0 }
  0x71   : > { %19736 = vmatpush3.msra.mxu1 %v315_v5  ;;  %19740 = vmatprep.subr.mxu0 %v21580_v0  ;;  %v1321_v5 = vand.u32 4294901760, %v1320_v4 }
  0x72   : > { %19738 = vmatmul.mubr.f32.vlgmr.msra.gmra.mxu1 %v21794_v7  ;;  %19747 = vmatprep.subr.mxu1 %v21580_v0 }
  0x73   : > { %19751 = vmatprep.mubr.msk.f32.mxu1 %vm21581_vm0, %v21580_v0  ;;  %19744 = vmatprep.mubr.msk.f32.mxu0 %vm21581_vm0, %v21580_v0 }
  0x74   : > { %19741 = vmatpush3.msra.mxu0 %v21838_v21  ;;  %19748 = vmatpush3.msra.mxu1 %v21860_v29 }
  0x75   : > { %19742 = vmatprep.subr.mxu0 %v21580_v0  ;;  %19749 = vmatprep.subr.mxu1 %v21580_v0 }
  0x76   : > { %19743 = vmatpush3.msra.mxu0 %v21843_v24  ;;  %19750 = vmatpush3.msra.mxu1 %v21865_v31 }
  0x77   : > { %19754 = vmatprep.subr.mxu0 %v21580_v0  ;;  %19761 = vmatprep.subr.mxu1 %v21580_v0 }
 0x125   : > { %v356_v32 = vpop.f32.mrf.mxu0 }
 0x126   : > { %v437_v34 = vpop.f32.mrf.mxu1 }
 0x127   : > { %v19704_v33 = vpop.f32.mrf.mxu0  ;;  %v438_v35 = vadd.f32 %v437_v34, %v356_v32 }
 0x128   : > { %v19711_v36 = vpop.f32.mrf.mxu1 }
 0x129   : > { %v513_v37 = vpop.f32.mrf.mxu0 }
 0x12a   : > { %v514_v38 = vadd.f32 %v513_v37, %v438_v35 }
 0x12b   : > { %v19718_v39 = vpop.f32.mrf.mxu0 }
 0x12c   : > { %v588_v41 = vpop.f32.mrf.mxu1 }
 0x12d   : > { %v589_v42 = vadd.f32 %v588_v41, %v514_v38 }
 0x12e   : > { %v19725_v43 = vpop.f32.mrf.mxu1 }
 0x12f   : > { %v665_v45 = vpop.f32.mrf.mxu0  ;;  %v2126_v43 = vmul.f32 %v21783_v1, %v21783_v1 }
 0x130   : > { %v666_v47 = vadd.f32 %v665_v45, %v589_v42 }
 0x131   : > { %v19732_v48 = vpop.f32.mrf.mxu0 }
 0x132   : > { %v738_v49 = vpop.f32.mrf.mxu1 }
 0x133   : > { %v739_v50 = vadd.f32 %v738_v49, %v666_v47  ;;  %v21976_v49 = vand.u32 4294901760, %v2126_v43 }
 0x134   : > { %v19739_v53 = vpop.f32.mrf.mxu1 }
 0x135   : > { %v743_v54 = vsel %vm279_vm1, %v739_v50, 0  ;;  %v2125_v50 = vmul.f32 %v21786_v2, %v21786_v2 }
 0x136   : > { %v812_v55 = vand.u32 4294901760, %v743_v54 }
 0x138   : > { %v813_v58 = vsub.f32 %v743_v54, %v812_v55  ;;  %19752 = vmatmul.mubr.f32.vlgmr.msra.gmra.mxu1 %v812_v55 }
 0x139   : > { %19762 = vmatpush3.msra.mxu1 %v21838_v21  ;;  %19765 = vmatprep.mubr.msk.f32.mxu1 %vm21581_vm0, %v21580_v0 }
 0x13a   : > { %19763 = vmatprep.subr.mxu1 %v21580_v0  ;;  %v814_v59 = vand.u32 4294901760, %v813_v58 }
 0x13b   : > { %19764 = vmatpush3.msra.mxu1 %v21843_v24 }
 0x13c   : > { %19766 = vmatmul.mubr.f32.vlgmr.msra.gmra.mxu1 %v814_v59  ;;  %19775 = vmatprep.subr.mxu1 %v21580_v0  ;;  %v815_v62 = vsub.f32 %v813_v58, %v814_v59 }
 0x13d   : > { %19776 = vmatpush3.msra.mxu1 %v21838_v21  ;;  %19779 = vmatprep.mubr.msk.f32.mxu1 %vm21581_vm0, %v21580_v0 }
 0x13e   : > { %19777 = vmatprep.subr.mxu1 %v21580_v0  ;;  %v816_v63 = vand.u32 4294901760, %v815_v62 }
 0x13f   : > { %19778 = vmatpush3.msra.mxu1 %v21843_v24 }
 0x140   : > { %19745 = vmatmul.mubr.f32.vlgmr.msra.gmra.mxu0 %v816_v63  ;;  %19780 = vmatmul.mubr.f32.vlgmr.msra.gmra.mxu1 %v812_v55 }
 0x141   : > { %19755 = vmatpush3.msra.mxu0 %v21841_v23  ;;  %19758 = vmatprep.mubr.msk.f32.mxu0 %vm21581_vm0, %v21580_v0 }
 0x142   : > { %19756 = vmatprep.subr.mxu0 %v21580_v0  ;;  %19789 = vmatprep.subr.mxu1 %v21580_v0 }
 0x143   : > { %19757 = vmatpush3.msra.mxu0 %v21851_v26  ;;  %19790 = vmatpush3.msra.mxu1 %v1314_v3 }
 0x144   : > { %19759 = vmatmul.mubr.f32.vlgmr.msra.gmra.mxu0 %v813_v58  ;;  %19768 = vmatprep.subr.mxu0 %v21580_v0 }
 0x145   : > { %19769 = vmatpush3.msra.mxu0 %v21848_v25  ;;  %19772 = vmatprep.mubr.msk.f32.mxu0 %vm21581_vm0, %v21580_v0 }
 0x146   : > { %19770 = vmatprep.subr.mxu0 %v21580_v0  ;;  %19791 = vmatprep.subr.mxu1 %v21580_v0 }
 0x147   : > { %19771 = vmatpush3.msra.mxu0 %v21858_v28  ;;  %19792 = vmatpush3.msra.mxu1 %v1321_v5 }
 0x148   : > { %19773 = vmatmul.mubr.f32.vlgmr.msra.gmra.mxu0 %v812_v55  ;;  %19782 = vmatprep.subr.mxu0 %v21580_v0 }
 0x149   : > { %19783 = vmatpush3.msra.mxu0 %v21877_v44  ;;  %19786 = vmatprep.mubr.msk.f32.mxu0 %vm21581_vm0, %v21580_v0 }
 0x14a   : > { %19784 = vmatprep.subr.mxu0 %v21580_v0  ;;  %19793 = vmatprep.mubr.msk.f32.mxu1 %vm21581_vm0, %v21580_v0 }
 0x14b   : > { %19785 = vmatpush3.msra.mxu0 %v21887_v52  ;;  %19794 = vmatmul.mubr.f32.vlgmr.msra.gmra.mxu1 %v21794_v7 }
 0x14c   : > { %19787 = vmatmul.mubr.f32.vlgmr.msra.gmra.mxu0 %v21808_v19  ;;  %19796 = vmatprep.subr.mxu0 %v21580_v0 }
 0x14d   : > { %19797 = vmatpush3.msra.mxu0 %v21884_v51  ;;  %19803 = vmatprep.subr.mxu1 %v21580_v0 }
 0x14e   : > { %19798 = vmatprep.subr.mxu0 %v21580_v0  ;;  %19804 = vmatpush3.msra.mxu1 %v21877_v44 }
 0x14f   : > { %19799 = vmatpush3.msra.mxu0 %v21893_v57  ;;  %19800 = vmatprep.mubr.msk.f32.mxu0 %vm21581_vm0, %v21580_v0  ;;  %v21983_v57 = vand.u32 4294901760, %v2125_v50 }
 0x150   : > { %19805 = vmatprep.subr.mxu1 %v21580_v0  ;;  %19801 = vmatmul.mubr.f32.vlgmr.msra.gmra.mxu0 %v21800_v10 }
 0x151   : > { %19806 = vmatpush3.msra.mxu1 %v21887_v52  ;;  %19807 = vmatprep.mubr.msk.f32.mxu1 %vm21581_vm0, %v21580_v0  ;;  %v21988_v62 = vsub.f32 %v2125_v50, %v21983_v57 }
 0x152   : > { %19810 = vmatprep.subr.mxu0 %v21580_v0  ;;  %19808 = vmatmul.mubr.f32.vlgmr.msra.gmra.mxu1 %v21803_v13 }
 0x153   : > { %19811 = vmatpush3.msra.mxu0 %v1312_v56  ;;  %19817 = vmatprep.subr.mxu1 %v21580_v0  ;;  %v21981_v56 = vsub.f32 %v2126_v43, %v21976_v49  ;;  %v2242_v5 = vand.u32 4294901760, %v21988_v62 }
 0x154   : > { %19812 = vmatprep.subr.mxu0 %v21580_v0  ;;  %19818 = vmatpush3.msra.mxu1 %v21877_v44 }
 0x155   : > { %19813 = vmatpush3.msra.mxu0 %v1319_v61  ;;  %19814 = vmatprep.mubr.msk.f32.mxu0 %vm21581_vm0, %v21580_v0  ;;  %v2235_v61 = vand.u32 4294901760, %v21981_v56 }
 0x156   : > { %19819 = vmatprep.subr.mxu1 %v21580_v0  ;;  %19815 = vmatmul.mubr.f32.vlgmr.msra.gmra.mxu0 %v21794_v7 }
 0x157   : > { %19820 = vmatpush3.msra.mxu1 %v21887_v52  ;;  %19821 = vmatprep.mubr.msk.f32.mxu1 %vm21581_vm0, %v21580_v0  ;;  %v2236_v4 = vsub.f32 %v21981_v56, %v2235_v61 }
 0x158   : > { %19822 = vmatmul.mubr.f32.vlgmr.msra.gmra.mxu1 %v21794_v7  ;;  %19831 = vmatprep.subr.mxu1 %v21580_v0 }
 0x159   : > { %19832 = vmatpush3.msra.mxu1 %v21860_v29  ;;  %19835 = vmatprep.mubr.msk.f32.mxu1 %vm21581_vm0, %v21580_v0 }
 0x15a   : > { %19833 = vmatprep.subr.mxu1 %v21580_v0  ;;  %19824 = vmatprep.subr.mxu0 %v21580_v0 }
 0x15b   : > { %19834 = vmatpush3.msra.mxu1 %v21865_v31  ;;  %19825 = vmatpush3.msra.mxu0 %v21838_v21 }
 0x15c   : > { %19845 = vmatprep.subr.mxu1 %v21580_v0  ;;  %19826 = vmatprep.subr.mxu0 %v21580_v0 }
 0x15d   : > { %19827 = vmatpush3.msra.mxu0 %v21843_v24  ;;  %19828 = vmatprep.mubr.msk.f32.mxu0 %vm21581_vm0, %v21580_v0 }
 0x15e   : > { %19838 = vmatprep.subr.mxu0 %v21580_v0 }
 0x1f8   : > { %v899_v6 = vpop.f32.mrf.mxu1 }
 0x1fa   : > { %v19753_v8 = vpop.f32.mrf.mxu1 }
 0x1fc   : > { %v1050_v9 = vpop.f32.mrf.mxu1 }
 0x1fe   : > { %v19767_v11 = vpop.f32.mrf.mxu1 }
 0x1ff   : > { %v2243_v11 = vsub.f32 %v21988_v62, %v2242_v5 }
 0x200   : > { %v818_v12 = vpop.f32.mrf.mxu0  ;;  %v1200_v14 = vpop.f32.mrf.mxu1 }
 0x201   : > { %v900_v15 = vadd.f32 %v899_v6, %v818_v12  ;;  %v2244_v12 = vand.u32 4294901760, %v2243_v11 }
 0x202   : > { %v19746_v16 = vpop.f32.mrf.mxu0  ;;  %v19781_v17 = vpop.f32.mrf.mxu1 }
 0x204   : > { %v975_v18 = vpop.f32.mrf.mxu0 }
 0x205   : > { %v976_v20 = vadd.f32 %v975_v18, %v900_v15 }
 0x206   : > { %v19760_v22 = vpop.f32.mrf.mxu0 }
 0x207   : > { %v1051_v27 = vadd.f32 %v1050_v9, %v976_v20  ;;  %v2237_v9 = vand.u32 4294901760, %v2236_v4 }
 0x208   : > { %v1127_v30 = vpop.f32.mrf.mxu0 }
 0x209   : > { %v1128_v32 = vadd.f32 %v1127_v30, %v1051_v27 }
 0x20a   : > { %v19774_v33 = vpop.f32.mrf.mxu0 }
 0x20b   : > { %v21972_v34 = vadd.f32 %v1200_v14, %v1128_v32  ;;  %v1358_v35 = vpop.f32.mrf.mxu1 }
 0x20c   : > { %v1277_v36 = vpop.f32.mrf.mxu0 }
 0x20d   : > { %v19795_v37 = vpop.f32.mrf.mxu1  ;;  %v1359_v39 = vadd.f32 %v1358_v35, %v1277_v36 }
 0x20e   : > { %v19788_v38 = vpop.f32.mrf.mxu0 }
 0x210   : > { %v1434_v41 = vpop.f32.mrf.mxu0 }
 0x211   : > { %v1435_v42 = vadd.f32 %v1434_v41, %v1359_v39 }
 0x212   : > { %v1509_v44 = vpop.f32.mrf.mxu1  ;;  %v19802_v45 = vpop.f32.mrf.mxu0 }
 0x213   : > { %v1510_v47 = vadd.f32 %v1509_v44, %v1435_v42  ;;  %v22069_v44 = vmul.f32 %v21972_v34, %v21972_v34 }
 0x214   : > { %v19809_v48 = vpop.f32.mrf.mxu1 }
 0x216   : > { %v1586_v51 = vpop.f32.mrf.mxu0 }
 0x217   : > { %v1587_v52 = vadd.f32 %v1586_v51, %v1510_v47 }
 0x218   : > { %v1659_v53 = vpop.f32.mrf.mxu1  ;;  %v19816_v54 = vpop.f32.mrf.mxu0 }
 0x219   : > { %v1660_v55 = vadd.f32 %v1659_v53, %v1587_v52  ;;  %v3049_v54 = vmul.f32 %v21874_v40, %v21874_v40 }
 0x21a   : > { %v19823_v58 = vpop.f32.mrf.mxu1 }
 0x21b   : > { %v1664_v59 = vsel %vm279_vm1, %v1660_v55, 0 }
 0x21c   : > { %v1733_v60 = vand.u32 4294901760, %v1664_v59 }
 0x21e   : > { %v1734_v63 = vsub.f32 %v1664_v59, %v1733_v60  ;;  %19836 = vmatmul.mubr.f32.vlgmr.msra.gmra.mxu1 %v1733_v60  ;;  %v22082_v59 = vand.u32 4294901760, %v3049_v54 }
 0x21f   : > { %19846 = vmatpush3.msra.mxu1 %v21838_v21  ;;  %19849 = vmatprep.mubr.msk.f32.mxu1 %vm21581_vm0, %v21580_v0 }
 0x220   : > { %19847 = vmatprep.subr.mxu1 %v21580_v0  ;;  %v1735_v3 = vand.u32 4294901760, %v1734_v63  ;;  %v22087_v4 = vsub.f32 %v3049_v54, %v22082_v59 }
 0x221   : > { %19848 = vmatpush3.msra.mxu1 %v21843_v24 }
 0x222   : > { %19850 = vmatmul.mubr.f32.vlgmr.msra.gmra.mxu1 %v1735_v3  ;;  %19859 = vmatprep.subr.mxu1 %v21580_v0  ;;  %v1736_v6 = vsub.f32 %v1734_v63, %v1735_v3  ;;  %v3158_v11 = vand.u32 4294901760, %v22087_v4 }
 0x223   : > { %19860 = vmatpush3.msra.mxu1 %v21838_v21  ;;  %19863 = vmatprep.mubr.msk.f32.mxu1 %vm21581_vm0, %v21580_v0 }
 0x224   : > { %19861 = vmatprep.subr.mxu1 %v21580_v0  ;;  %v1737_v8 = vand.u32 4294901760, %v1736_v6 }
 0x225   : > { %19862 = vmatpush3.msra.mxu1 %v21843_v24 }
 0x226   : > { %19829 = vmatmul.mubr.f32.vlgmr.msra.gmra.mxu0 %v1737_v8  ;;  %19864 = vmatmul.mubr.f32.vlgmr.msra.gmra.mxu1 %v1733_v60 }
 0x227   : > { %19839 = vmatpush3.msra.mxu0 %v21841_v23  ;;  %19842 = vmatprep.mubr.msk.f32.mxu0 %vm21581_vm0, %v21580_v0 }
 0x228   : > { %19840 = vmatprep.subr.mxu0 %v21580_v0  ;;  %19873 = vmatprep.subr.mxu1 %v21580_v0 }
 0x229   : > { %19841 = vmatpush3.msra.mxu0 %v21851_v26  ;;  %19874 = vmatpush3.msra.mxu1 %v2237_v9 }
 0x22a   : > { %19843 = vmatmul.mubr.f32.vlgmr.msra.gmra.mxu0 %v1734_v63  ;;  %19852 = vmatprep.subr.mxu0 %v21580_v0 }
 0x22b   : > { %19853 = vmatpush3.msra.mxu0 %v21848_v25  ;;  %19856 = vmatprep.mubr.msk.f32.mxu0 %vm21581_vm0, %v21580_v0 }
 0x22c   : > { %19854 = vmatprep.subr.mxu0 %v21580_v0  ;;  %19875 = vmatprep.subr.mxu1 %v21580_v0 }
 0x22d   : > { %19855 = vmatpush3.msra.mxu0 %v21858_v28  ;;  %19876 = vmatpush3.msra.mxu1 %v2244_v12 }
 0x22e   : > { %19857 = vmatmul.mubr.f32.vlgmr.msra.gmra.mxu0 %v1733_v60  ;;  %19866 = vmatprep.subr.mxu0 %v21580_v0 }
 0x22f   : > { %19867 = vmatpush3.msra.mxu0 %v21976_v49  ;;  %19870 = vmatprep.mubr.msk.f32.mxu0 %vm21581_vm0, %v21580_v0 }
 0x230   : > { %19868 = vmatprep.subr.mxu0 %v21580_v0  ;;  %19877 = vmatprep.mubr.msk.f32.mxu1 %vm21581_vm0, %v21580_v0 }
 0x231   : > { %19869 = vmatpush3.msra.mxu0 %v21983_v57  ;;  %19878 = vmatmul.mubr.f32.vlgmr.msra.gmra.mxu1 %v21794_v7 }
 0x232   : > { %19871 = vmatmul.mubr.f32.vlgmr.msra.gmra.mxu0 %v21808_v19  ;;  %19880 = vmatprep.subr.mxu0 %v21580_v0 }
 0x233   : > { %19881 = vmatpush3.msra.mxu0 %v21981_v56  ;;  %19887 = vmatprep.subr.mxu1 %v21580_v0 }
 0x234   : > { %19882 = vmatprep.subr.mxu0 %v21580_v0  ;;  %19888 = vmatpush3.msra.mxu1 %v21976_v49 }
 0x235   : > { %19883 = vmatpush3.msra.mxu0 %v21988_v62  ;;  %19884 = vmatprep.mubr.msk.f32.mxu0 %vm21581_vm0, %v21580_v0 }
 0x236   : > { %19889 = vmatprep.subr.mxu1 %v21580_v0  ;;  %19885 = vmatmul.mubr.f32.vlgmr.msra.gmra.mxu0 %v21800_v10 }
 0x237   : > { %19890 = vmatpush3.msra.mxu1 %v21983_v57  ;;  %19891 = vmatprep.mubr.msk.f32.mxu1 %vm21581_vm0, %v21580_v0 }
 0x238   : > { %19894 = vmatprep.subr.mxu0 %v21580_v0  ;;  %19892 = vmatmul.mubr.f32.vlgmr.msra.gmra.mxu1 %v21803_v13 }
 0x239   : > { %19895 = vmatpush3.msra.mxu0 %v2235_v61  ;;  %19901 = vmatprep.subr.mxu1 %v21580_v0 }
 0x23a   : > { %19896 = vmatprep.subr.mxu0 %v21580_v0  ;;  %19902 = vmatpush3.msra.mxu1 %v21976_v49 }
 0x23b   : > { %19897 = vmatpush3.msra.mxu0 %v2242_v5  ;;  %19898 = vmatprep.mubr.msk.f32.mxu0 %vm21581_vm0, %v21580_v0 }
 0x23c   : > { %19903 = vmatprep.subr.mxu1 %v21580_v0  ;;  %19899 = vmatmul.mubr.f32.vlgmr.msra.gmra.mxu0 %v21794_v7 }
 0x23d   : > { %19904 = vmatpush3.msra.mxu1 %v21983_v57  ;;  %19905 = vmatprep.mubr.msk.f32.mxu1 %vm21581_vm0, %v21580_v0 }
 0x23e   : > { %19906 = vmatmul.mubr.f32.vlgmr.msra.gmra.mxu1 %v21794_v7  ;;  %19915 = vmatprep.subr.mxu1 %v21580_v0 }
 0x23f   : > { %19916 = vmatpush3.msra.mxu1 %v21860_v29  ;;  %19919 = vmatprep.mubr.msk.f32.mxu1 %vm21581_vm0, %v21580_v0 }
 0x240   : > { %19917 = vmatprep.subr.mxu1 %v21580_v0  ;;  %19908 = vmatprep.subr.mxu0 %v21580_v0 }
 0x241   : > { %19918 = vmatpush3.msra.mxu1 %v21865_v31  ;;  %19909 = vmatpush3.msra.mxu0 %v21838_v21 }
 0x242   : > { %19929 = vmatprep.subr.mxu1 %v21580_v0  ;;  %19910 = vmatprep.subr.mxu0 %v21580_v0 }
 0x243   : > { %19911 = vmatpush3.msra.mxu0 %v21843_v24  ;;  %19912 = vmatprep.mubr.msk.f32.mxu0 %vm21581_vm0, %v21580_v0 }
 0x244   : > { %19922 = vmatprep.subr.mxu0 %v21580_v0 }
 0x2de   : > { %v1820_v14 = vpop.f32.mrf.mxu1 }
 0x2e0   : > { %v19837_v15 = vpop.f32.mrf.mxu1 }
 0x2e2   : > { %v1971_v16 = vpop.f32.mrf.mxu1 }
 0x2e4   : > { %v19851_v17 = vpop.f32.mrf.mxu1 }
 0x2e6   : > { %v1739_v18 = vpop.f32.mrf.mxu0  ;;  %v2121_v20 = vpop.f32.mrf.mxu1 }
 0x2e7   : > { %v1821_v22 = vadd.f32 %v1820_v14, %v1739_v18 }
 0x2e8   : > { %v19830_v27 = vpop.f32.mrf.mxu0  ;;  %v19865_v30 = vpop.f32.mrf.mxu1 }
 0x2ea   : > { %v1896_v32 = vpop.f32.mrf.mxu0 }
 0x2eb   : > { %v1897_v33 = vadd.f32 %v1896_v32, %v1821_v22 }
 0x2ec   : > { %v19844_v35 = vpop.f32.mrf.mxu0 }
 0x2ed   : > { %v1972_v36 = vadd.f32 %v1971_v16, %v1897_v33  ;;  %v3159_v16 = vsub.f32 %v22087_v4, %v3158_v11 }
 0x2ee   : > { %v2048_v37 = vpop.f32.mrf.mxu0 }
 0x2ef   : > { %v2049_v38 = vadd.f32 %v2048_v37, %v1972_v36  ;;  %v3160_v22 = vand.u32 4294901760, %v3159_v16 }
 0x2f0   : > { %v19858_v39 = vpop.f32.mrf.mxu0 }
 0x2f1   : > { %v2122_v41 = vadd.f32 %v2121_v20, %v2049_v38  ;;  %v2281_v42 = vpop.f32.mrf.mxu1 }
 0x2f2   : > { %v2200_v43 = vpop.f32.mrf.mxu0 }
 0x2f3   : > { %v22071_v45 = vmul.f32 %v2122_v41, %v2122_v41  ;;  %v22074_v47 = vmul.f32 %v2122_v41, %v21972_v34  ;;  %v19879_v48 = vpop.f32.mrf.mxu1  ;;  %v2282_v51 = vadd.f32 %v2281_v42, %v2200_v43  ;;  %v3048_v34 = vmul.f32 %v21880_v46, %v21880_v46 }
 0x2f4   : > { %v19872_v49 = vpop.f32.mrf.mxu0 }
 0x2f5   : > { %v22078_v50 = vadd.f32 %v22071_v45, %v22069_v44  ;;  %v22089_v5 = vand.u32 4294901760, %v3048_v34 }
 0x2f6   : > { %v2357_v52 = vpop.f32.mrf.mxu0 }
 0x2f7   : > { %v2358_v53 = vadd.f32 %v2357_v52, %v2282_v51  ;;  %v22094_v12 = vsub.f32 %v3048_v34, %v22089_v5 }
 0x2f8   : > { %v2432_v55 = vpop.f32.mrf.mxu1  ;;  %v19886_v56 = vpop.f32.mrf.mxu0 }
 0x2f9   : > { %v2433_v57 = vadd.f32 %v2432_v55, %v2358_v53  ;;  %v3165_v17 = vand.u32 4294901760, %v22094_v12 }
 0x2fa   : > { %v19893_v58 = vpop.f32.mrf.mxu1 }
 0x2fb   : > { %v3166_v27 = vsub.f32 %v22094_v12, %v3165_v17 }
 0x2fc   : > { %v2509_v60 = vpop.f32.mrf.mxu0 }
 0x2fd   : > { %v2510_v61 = vadd.f32 %v2509_v60, %v2433_v57  ;;  %v3167_v30 = vand.u32 4294901760, %v3166_v27 }
 0x2fe   : > { %v2582_v62 = vpop.f32.mrf.mxu1  ;;  %v19900_v63 = vpop.f32.mrf.mxu0 }
 0x2ff   : > { %v2583_v3 = vadd.f32 %v2582_v62, %v2510_v61  ;;  %v3972_v63 = vmul.f32 %v21874_v40, %v21783_v1 }
 0x300   : > { %v19907_v6 = vpop.f32.mrf.mxu1 }
 0x301   : > { %v2587_v8 = vsel %vm279_vm1, %v2583_v3, 0 }
 0x302   : > { %v2656_v9 = vand.u32 4294901760, %v2587_v8 }
 0x304   : > { %v2657_v14 = vsub.f32 %v2587_v8, %v2656_v9  ;;  %19920 = vmatmul.mubr.f32.vlgmr.msra.gmra.mxu1 %v2656_v9  ;;  %v22179_v8 = vand.u32 4294901760, %v3972_v63 }
 0x305   : > { %19930 = vmatpush3.msra.mxu1 %v21838_v21  ;;  %19933 = vmatprep.mubr.msk.f32.mxu1 %vm21581_vm0, %v21580_v0 }
 0x306   : > { %19931 = vmatprep.subr.mxu1 %v21580_v0  ;;  %v2658_v15 = vand.u32 4294901760, %v2657_v14 }
 0x307   : > { %19932 = vmatpush3.msra.mxu1 %v21843_v24 }
 0x308   : > { %19934 = vmatmul.mubr.f32.vlgmr.msra.gmra.mxu1 %v2658_v15  ;;  %19943 = vmatprep.subr.mxu1 %v21580_v0  ;;  %v2659_v18 = vsub.f32 %v2657_v14, %v2658_v15 }
 0x309   : > { %19944 = vmatpush3.msra.mxu1 %v21838_v21  ;;  %19947 = vmatprep.mubr.msk.f32.mxu1 %vm21581_vm0, %v21580_v0 }
 0x30a   : > { %19945 = vmatprep.subr.mxu1 %v21580_v0  ;;  %v2660_v20 = vand.u32 4294901760, %v2659_v18 }
 0x30b   : > { %19946 = vmatpush3.msra.mxu1 %v21843_v24 }
 0x30c   : > { %19913 = vmatmul.mubr.f32.vlgmr.msra.gmra.mxu0 %v2660_v20  ;;  %19948 = vmatmul.mubr.f32.vlgmr.msra.gmra.mxu1 %v2656_v9 }
 0x30d   : > { %19923 = vmatpush3.msra.mxu0 %v21841_v23  ;;  %19926 = vmatprep.mubr.msk.f32.mxu0 %vm21581_vm0, %v21580_v0 }
 0x30e   : > { %19924 = vmatprep.subr.mxu0 %v21580_v0  ;;  %19957 = vmatprep.subr.mxu1 %v21580_v0 }
 0x30f   : > { %19925 = vmatpush3.msra.mxu0 %v21851_v26  ;;  %19958 = vmatpush3.msra.mxu1 %v3160_v22 }
 0x310   : > { %19927 = vmatmul.mubr.f32.vlgmr.msra.gmra.mxu0 %v2657_v14  ;;  %19936 = vmatprep.subr.mxu0 %v21580_v0 }
 0x311   : > { %19937 = vmatpush3.msra.mxu0 %v21848_v25  ;;  %19940 = vmatprep.mubr.msk.f32.mxu0 %vm21581_vm0, %v21580_v0 }
 0x312   : > { %19938 = vmatprep.subr.mxu0 %v21580_v0  ;;  %19959 = vmatprep.subr.mxu1 %v21580_v0 }
 0x313   : > { %19939 = vmatpush3.msra.mxu0 %v21858_v28  ;;  %19960 = vmatpush3.msra.mxu1 %v3167_v30 }
 0x314   : > { %19941 = vmatmul.mubr.f32.vlgmr.msra.gmra.mxu0 %v2656_v9  ;;  %19950 = vmatprep.subr.mxu0 %v21580_v0  ;;  %v3971_v9 = vmul.f32 %v21880_v46, %v21786_v2 }
 0x315   : > { %19951 = vmatpush3.msra.mxu0 %v22082_v59  ;;  %19954 = vmatprep.mubr.msk.f32.mxu0 %vm21581_vm0, %v21580_v0 }
 0x316   : > { %19952 = vmatprep.subr.mxu0 %v21580_v0  ;;  %19961 = vmatprep.mubr.msk.f32.mxu1 %vm21581_vm0, %v21580_v0  ;;  %v22186_v18 = vand.u32 4294901760, %v3971_v9 }
 0x317   : > { %19953 = vmatpush3.msra.mxu0 %v22089_v5  ;;  %19962 = vmatmul.mubr.f32.vlgmr.msra.gmra.mxu1 %v21794_v7 }
 0x318   : > { %19955 = vmatmul.mubr.f32.vlgmr.msra.gmra.mxu0 %v21808_v19  ;;  %19964 = vmatprep.subr.mxu0 %v21580_v0  ;;  %v22191_v27 = vsub.f32 %v3971_v9, %v22186_v18 }
 0x319   : > { %19965 = vmatpush3.msra.mxu0 %v22087_v4  ;;  %19971 = vmatprep.subr.mxu1 %v21580_v0 }
 0x31a   : > { %19966 = vmatprep.subr.mxu0 %v21580_v0  ;;  %19972 = vmatpush3.msra.mxu1 %v22082_v59 }
 0x31b   : > { %19967 = vmatpush3.msra.mxu0 %v22094_v12  ;;  %19968 = vmatprep.mubr.msk.f32.mxu0 %vm21581_vm0, %v21580_v0 }
 0x31c   : > { %19973 = vmatprep.subr.mxu1 %v21580_v0  ;;  %19969 = vmatmul.mubr.f32.vlgmr.msra.gmra.mxu0 %v21800_v10 }
 0x31d   : > { %19974 = vmatpush3.msra.mxu1 %v22089_v5  ;;  %19975 = vmatprep.mubr.msk.f32.mxu1 %vm21581_vm0, %v21580_v0 }
 0x31e   : > { %19978 = vmatprep.subr.mxu0 %v21580_v0  ;;  %19976 = vmatmul.mubr.f32.vlgmr.msra.gmra.mxu1 %v21803_v13 }
 0x31f   : > { %19979 = vmatpush3.msra.mxu0 %v3158_v11  ;;  %19985 = vmatprep.subr.mxu1 %v21580_v0 }
 0x320   : > { %19980 = vmatprep.subr.mxu0 %v21580_v0  ;;  %19986 = vmatpush3.msra.mxu1 %v22082_v59 }
 0x321   : > { %19981 = vmatpush3.msra.mxu0 %v3165_v17  ;;  %19982 = vmatprep.mubr.msk.f32.mxu0 %vm21581_vm0, %v21580_v0  ;;  %v22184_v17 = vsub.f32 %v3972_v63, %v22179_v8 }
 0x322   : > { %19987 = vmatprep.subr.mxu1 %v21580_v0  ;;  %19983 = vmatmul.mubr.f32.vlgmr.msra.gmra.mxu0 %v21794_v7 }
 0x323   : > { %19988 = vmatpush3.msra.mxu1 %v22089_v5  ;;  %19989 = vmatprep.mubr.msk.f32.mxu1 %vm21581_vm0, %v21580_v0  ;;  %v4081_v22 = vand.u32 4294901760, %v22184_v17 }
 0x324   : > { %19990 = vmatmul.mubr.f32.vlgmr.msra.gmra.mxu1 %v21794_v7  ;;  %19999 = vmatprep.subr.mxu1 %v21580_v0 }
 0x325   : > { %20000 = vmatpush3.msra.mxu1 %v21860_v29  ;;  %20003 = vmatprep.mubr.msk.f32.mxu1 %vm21581_vm0, %v21580_v0  ;;  %v4082_v30 = vsub.f32 %v22184_v17, %v4081_v22 }
 0x326   : > { %20001 = vmatprep.subr.mxu1 %v21580_v0  ;;  %19992 = vmatprep.subr.mxu0 %v21580_v0 }
 0x327   : > { %20002 = vmatpush3.msra.mxu1 %v21865_v31  ;;  %19993 = vmatpush3.msra.mxu0 %v21838_v21 }
 0x328   : > { %20013 = vmatprep.subr.mxu1 %v21580_v0  ;;  %19994 = vmatprep.subr.mxu0 %v21580_v0 }
 0x329   : > { %19995 = vmatpush3.msra.mxu0 %v21843_v24  ;;  %19996 = vmatprep.mubr.msk.f32.mxu0 %vm21581_vm0, %v21580_v0 }
 0x32a   : > { %20006 = vmatprep.subr.mxu0 %v21580_v0 }
 0x3c4   : > { %v2743_v32 = vpop.f32.mrf.mxu1 }
 0x3c6   : > { %v19921_v33 = vpop.f32.mrf.mxu1 }
 0x3c8   : > { %v2894_v35 = vpop.f32.mrf.mxu1 }
 0x3ca   : > { %v19935_v36 = vpop.f32.mrf.mxu1 }
 0x3cb   : > { %v4083_v36 = vand.u32 4294901760, %v4082_v30 }
 0x3cc   : > { %v2662_v37 = vpop.f32.mrf.mxu0  ;;  %v3044_v38 = vpop.f32.mrf.mxu1 }
 0x3cd   : > { %v2744_v39 = vadd.f32 %v2743_v32, %v2662_v37  ;;  %v4088_v32 = vand.u32 4294901760, %v22191_v27 }
 0x3ce   : > { %v19914_v41 = vpop.f32.mrf.mxu0  ;;  %v19949_v42 = vpop.f32.mrf.mxu1 }
 0x3cf   : > { %v4089_v37 = vsub.f32 %v22191_v27, %v4088_v32 }
 0x3d0   : > { %v2819_v43 = vpop.f32.mrf.mxu0 }
 0x3d1   : > { %v2820_v48 = vadd.f32 %v2819_v43, %v2744_v39 }
 0x3d2   : > { %v19928_v49 = vpop.f32.mrf.mxu0 }
 0x3d3   : > { %v2895_v51 = vadd.f32 %v2894_v35, %v2820_v48 }
 0x3d4   : > { %v2971_v52 = vpop.f32.mrf.mxu0 }
 0x3d5   : > { %v2972_v53 = vadd.f32 %v2971_v52, %v2895_v51 }
 0x3d6   : > { %v19942_v54 = vpop.f32.mrf.mxu0 }
 0x3d7   : > { %v22173_v55 = vadd.f32 %v3044_v38, %v2972_v53  ;;  %v3204_v56 = vpop.f32.mrf.mxu1  ;;  %v4090_v38 = vand.u32 4294901760, %v4089_v37 }
 0x3d8   : > { %v3123_v57 = vpop.f32.mrf.mxu0 }
 0x3d9   : > { %v4897_v58 = vsub.f32 %v22173_v55, %v22069_v44  ;;  %v19963_v59 = vpop.f32.mrf.mxu1  ;;  %v3205_v60 = vadd.f32 %v3204_v56, %v3123_v57  ;;  %v22284_v44 = vld [vmem:[%s21770_s18 + $0x10] sm:$0xff] }
 0x3da   : > { %v19956_v34 = vpop.f32.mrf.mxu0 }
 0x3dc   : > { %v3280_v61 = vpop.f32.mrf.mxu0 }
 0x3dd   : > { %v3281_v62 = vadd.f32 %v3280_v61, %v3205_v60 }
 0x3de   : > { %v3355_v3 = vpop.f32.mrf.mxu1  ;;  %v19970_v4 = vpop.f32.mrf.mxu0 }
 0x3df   : > { %v3356_v5 = vadd.f32 %v3355_v3, %v3281_v62 }
 0x3e0   : > { %v19977_v6 = vpop.f32.mrf.mxu1 }
 0x3e2   : > { %v3432_v11 = vpop.f32.mrf.mxu0 }
 0x3e3   : > { %v3433_v12 = vadd.f32 %v3432_v11, %v3356_v5 }
 0x3e4   : > { %v3505_v14 = vpop.f32.mrf.mxu1  ;;  %v19984_v15 = vpop.f32.mrf.mxu0 }
 0x3e5   : > { %v3506_v16 = vadd.f32 %v3505_v14, %v3433_v12  ;;  %v4906_v12 = vadd.f32 0.0001, %v22078_v50 }
 0x3e6   : > { %v19991_v1 = vpop.f32.mrf.mxu1 }
 0x3e7   : > { %v3510_v40 = vsel %vm279_vm1, %v3506_v16, 0 }
 0x3e8   : > { %v3579_v20 = vand.u32 4294901760, %v3510_v40 }
 0x3ea   : > { %v3580_v2 = vsub.f32 %v3510_v40, %v3579_v20  ;;  %20004 = vmatmul.mubr.f32.vlgmr.msra.gmra.mxu1 %v3579_v20 }
 0x3eb   : > { %20014 = vmatpush3.msra.mxu1 %v21838_v21  ;;  %20017 = vmatprep.mubr.msk.f32.mxu1 %vm21581_vm0, %v21580_v0 }
 0x3ec   : > { %20015 = vmatprep.subr.mxu1 %v21580_v0  ;;  %v3581_v46 = vand.u32 4294901760, %v3580_v2 }
 0x3ed   : > { %20016 = vmatpush3.msra.mxu1 %v21843_v24 }
 0x3ee   : > { %20018 = vmatmul.mubr.f32.vlgmr.msra.gmra.mxu1 %v3581_v46  ;;  %20027 = vmatprep.subr.mxu1 %v21580_v0  ;;  %v3582_v33 = vsub.f32 %v3580_v2, %v3581_v46  ;;  %v22291_v46 = vand.u32 4294901760, %v22284_v44 }
 0x3ef   : > { %20028 = vmatpush3.msra.mxu1 %v21838_v21  ;;  %20031 = vmatprep.mubr.msk.f32.mxu1 %vm21581_vm0, %v21580_v0 }
 0x3f0   : > { %20029 = vmatprep.subr.mxu1 %v21580_v0  ;;  %v3583_v35 = vand.u32 4294901760, %v3582_v33 }
 0x3f1   : > { %20030 = vmatpush3.msra.mxu1 %v21843_v24 }
 0x3f2   : > { %19997 = vmatmul.mubr.f32.vlgmr.msra.gmra.mxu0 %v3583_v35  ;;  %20032 = vmatmul.mubr.f32.vlgmr.msra.gmra.mxu1 %v3579_v20 }
 0x3f3   : > { %20007 = vmatpush3.msra.mxu0 %v21841_v23  ;;  %20010 = vmatprep.mubr.msk.f32.mxu0 %vm21581_vm0, %v21580_v0 }
 0x3f4   : > { %20008 = vmatprep.subr.mxu0 %v21580_v0  ;;  %20041 = vmatprep.subr.mxu1 %v21580_v0 }
 0x3f5   : > { %20009 = vmatpush3.msra.mxu0 %v21851_v26  ;;  %20042 = vmatpush3.msra.mxu1 %v4083_v36  ;;  %v22297_v36 = vsub.f32 %v22284_v44, %v22291_v46 }
 0x3f6   : > { %20011 = vmatmul.mubr.f32.vlgmr.msra.gmra.mxu0 %v3580_v2  ;;  %20020 = vmatprep.subr.mxu0 %v21580_v0 }
 0x3f7   : > { %20021 = vmatpush3.msra.mxu0 %v21848_v25  ;;  %20024 = vmatprep.mubr.msk.f32.mxu0 %vm21581_vm0, %v21580_v0 }
 0x3f8   : > { %20022 = vmatprep.subr.mxu0 %v21580_v0  ;;  %20043 = vmatprep.subr.mxu1 %v21580_v0 }
 0x3f9   : > { %20023 = vmatpush3.msra.mxu0 %v21858_v28  ;;  %20044 = vmatpush3.msra.mxu1 %v4090_v38 }
 0x3fa   : > { %20025 = vmatmul.mubr.f32.vlgmr.msra.gmra.mxu0 %v3579_v20  ;;  %20034 = vmatprep.subr.mxu0 %v21580_v0 }
 0x3fb   : > { %20035 = vmatpush3.msra.mxu0 %v22179_v8  ;;  %20038 = vmatprep.mubr.msk.f32.mxu0 %vm21581_vm0, %v21580_v0 }
 0x3fc   : > { %20036 = vmatprep.subr.mxu0 %v21580_v0  ;;  %20045 = vmatprep.mubr.msk.f32.mxu1 %vm21581_vm0, %v21580_v0 }
 0x3fd   : > { %20037 = vmatpush3.msra.mxu0 %v22186_v18  ;;  %20046 = vmatmul.mubr.f32.vlgmr.msra.gmra.mxu1 %v21794_v7 }
 0x3fe   : > { %20039 = vmatmul.mubr.f32.vlgmr.msra.gmra.mxu0 %v21808_v19  ;;  %20048 = vmatprep.subr.mxu0 %v21580_v0 }
 0x3ff   : > { %20049 = vmatpush3.msra.mxu0 %v22184_v17  ;;  %20055 = vmatprep.subr.mxu1 %v21580_v0 }
 0x400   : > { %20050 = vmatprep.subr.mxu0 %v21580_v0  ;;  %20056 = vmatpush3.msra.mxu1 %v22179_v8 }
 0x401   : > { %20051 = vmatpush3.msra.mxu0 %v22191_v27  ;;  %20052 = vmatprep.mubr.msk.f32.mxu0 %vm21581_vm0, %v21580_v0 }
 0x402   : > { %20057 = vmatprep.subr.mxu1 %v21580_v0  ;;  %20053 = vmatmul.mubr.f32.vlgmr.msra.gmra.mxu0 %v21800_v10 }
 0x403   : > { %20058 = vmatpush3.msra.mxu1 %v22186_v18  ;;  %20059 = vmatprep.mubr.msk.f32.mxu1 %vm21581_vm0, %v21580_v0 }
 0x404   : > { %20062 = vmatprep.subr.mxu0 %v21580_v0  ;;  %20060 = vmatmul.mubr.f32.vlgmr.msra.gmra.mxu1 %v21803_v13 }
 0x405   : > { %20063 = vmatpush3.msra.mxu0 %v4081_v22  ;;  %20069 = vmatprep.subr.mxu1 %v21580_v0 }
 0x406   : > { %20064 = vmatprep.subr.mxu0 %v21580_v0  ;;  %20070 = vmatpush3.msra.mxu1 %v22179_v8 }
 0x407   : > { %20065 = vmatpush3.msra.mxu0 %v4088_v32  ;;  %20066 = vmatprep.mubr.msk.f32.mxu0 %vm21581_vm0, %v21580_v0 }
 0x408   : > { %20071 = vmatprep.subr.mxu1 %v21580_v0  ;;  %20067 = vmatmul.mubr.f32.vlgmr.msra.gmra.mxu0 %v21794_v7 }
 0x409   : > { %20072 = vmatpush3.msra.mxu1 %v22186_v18  ;;  %20073 = vmatprep.mubr.msk.f32.mxu1 %vm21581_vm0, %v21580_v0  ;;  %v22276_v18 = vld [vmem:[%s21770_s18 + $0x18] sm:$0xff] }
 0x40a   : > { %20074 = vmatmul.mubr.f32.vlgmr.msra.gmra.mxu1 %v21794_v7  ;;  %20083 = vmatprep.subr.mxu1 %v21580_v0  ;;  %v22281_v20 = vand.u32 4294901760, %v22276_v18 }
 0x40b   : > { %20084 = vmatpush3.msra.mxu1 %v21860_v29  ;;  %20087 = vmatprep.mubr.msk.f32.mxu1 %vm21581_vm0, %v21580_v0 }
 0x40c   : > { %20085 = vmatprep.subr.mxu1 %v21580_v0  ;;  %20076 = vmatprep.subr.mxu0 %v21580_v0  ;;  %v22288_v2 = vsub.f32 %v22276_v18, %v22281_v20 }
 0x40d   : > { %20086 = vmatpush3.msra.mxu1 %v21865_v31  ;;  %20077 = vmatpush3.msra.mxu0 %v21838_v21 }
 0x40e   : > { %20097 = vmatprep.subr.mxu1 %v21580_v0  ;;  %20078 = vmatprep.subr.mxu0 %v21580_v0  ;;  %v5029_v35 = vand.u32 4294901760, %v22288_v2 }
 0x40f   : > { %20079 = vmatpush3.msra.mxu0 %v21843_v24  ;;  %20080 = vmatprep.mubr.msk.f32.mxu0 %vm21581_vm0, %v21580_v0 }
 0x410   : > { %20090 = vmatprep.subr.mxu0 %v21580_v0 }
 0x4aa   : > { %v3666_v39 = vpop.f32.mrf.mxu1 }
 0x4ac   : > { %v20005_v41 = vpop.f32.mrf.mxu1 }
 0x4ad   : > { %v5036_v41 = vand.u32 4294901760, %v22297_v36 }
 0x4ae   : > { %v3817_v42 = vpop.f32.mrf.mxu1 }
 0x4b0   : > { %v20019_v43 = vpop.f32.mrf.mxu1 }
 0x4b2   : > { %v3585_v48 = vpop.f32.mrf.mxu0  ;;  %v3967_v49 = vpop.f32.mrf.mxu1 }
 0x4b3   : > { %v3667_v51 = vadd.f32 %v3666_v39, %v3585_v48  ;;  %v5030_v39 = vsub.f32 %v22288_v2, %v5029_v35 }
 0x4b4   : > { %v19998_v52 = vpop.f32.mrf.mxu0  ;;  %v20033_v53 = vpop.f32.mrf.mxu1 }
 0x4b5   : > { %v5031_v48 = vand.u32 4294901760, %v5030_v39  ;;  %v22389_v39 = vld [vmem:[%s21871_s29 + $0x10] sm:$0xff] }
 0x4b6   : > { %v3742_v54 = vpop.f32.mrf.mxu0 }
 0x4b7   : > { %v3743_v56 = vadd.f32 %v3742_v54, %v3667_v51 }
 0x4b8   : > { %v20012_v57 = vpop.f32.mrf.mxu0 }
 0x4b9   : > { %v3818_v59 = vadd.f32 %v3817_v42, %v3743_v56 }
 0x4ba   : > { %v3894_v34 = vpop.f32.mrf.mxu0 }
 0x4bb   : > { %v3895_v60 = vadd.f32 %v3894_v34, %v3818_v59 }
 0x4bc   : > { %v20026_v61 = vpop.f32.mrf.mxu0 }
 0x4bd   : > { %v3968_v62 = vadd.f32 %v3967_v49, %v3895_v60  ;;  %v4127_v63 = vpop.f32.mrf.mxu1  ;;  %v5037_v49 = vsub.f32 %v22297_v36, %v5036_v41 }
 0x4be   : > { %v4046_v3 = vpop.f32.mrf.mxu0 }
 0x4bf   : > { %v4898_v4 = vsub.f32 %v3968_v62, %v22071_v45  ;;  %v20047_v5 = vpop.f32.mrf.mxu1  ;;  %v4128_v9 = vadd.f32 %v4127_v63, %v4046_v3  ;;  %v5038_v51 = vand.u32 4294901760, %v5037_v49 }
 0x4c0   : > { %v20040_v6 = vpop.f32.mrf.mxu0 }
 0x4c1   : > { %v4907_v8 = vadd.f32 %v4898_v4, %v4897_v58 }
 0x4c2   : > { %v4203_v11 = vpop.f32.mrf.mxu0 }
 0x4c3   : > { %v4908_v14 = vadd.f32 0.0009, %v4907_v8  ;;  %v4204_v15 = vadd.f32 %v4203_v11, %v4128_v9 }
 0x4c4   : > { %v4278_v16 = vpop.f32.mrf.mxu1  ;;  %v20054_v17 = vpop.f32.mrf.mxu0 }
 0x4c5   : > { %v22278_v1 = vmul.f32 %v4908_v14, %v4906_v12  ;;  %v4279_v45 = vadd.f32 %v4278_v16, %v4204_v15  ;;  %v4900_v16 = vmul.f32 2.0, %v22074_v47 }
 0x4c6   : > { %v20061_v40 = vpop.f32.mrf.mxu1 }
 0x4c7   : > { %21439 = vrcp.f32 %v22278_v1 }
 0x4c8   : > { %v4355_v22 = vpop.f32.mrf.mxu0 }
 0x4c9   : > { %v4356_v55 = vadd.f32 %v4355_v22, %v4279_v45 }
 0x4ca   : > { %v4428_v58 = vpop.f32.mrf.mxu1  ;;  %v20068_v27 = vpop.f32.mrf.mxu0 }
 0x4cb   : > { %v4429_v50 = vadd.f32 %v4428_v58, %v4356_v55  ;;  %v4901_v27 = vadd.f32 0.0001, %v4900_v16 }
 0x4cc   : > { %v20075_v30 = vpop.f32.mrf.mxu1 }
 0x4cd   : > { %v4433_v32 = vsel %vm279_vm1, %v4429_v50, 0  ;;  %v22381_v30 = vld [vmem:[%s21871_s29 + $0x18] sm:$0xff] }
 0x4ce   : > { %v4502_v33 = vand.u32 4294901760, %v4433_v32 }
 0x4d0   : > { %v4503_v37 = vsub.f32 %v4433_v32, %v4502_v33  ;;  %20088 = vmatmul.mubr.f32.vlgmr.msra.gmra.mxu1 %v4502_v33 }
 0x4d1   : > { %20098 = vmatpush3.msra.mxu1 %v21838_v21  ;;  %20101 = vmatprep.mubr.msk.f32.mxu1 %vm21581_vm0, %v21580_v0 }
 0x4d2   : > { %20099 = vmatprep.subr.mxu1 %v21580_v0  ;;  %v4504_v38 = vand.u32 4294901760, %v4503_v37 }
 0x4d3   : > { %20100 = vmatpush3.msra.mxu1 %v21843_v24 }
 0x4d4   : > { %20102 = vmatmul.mubr.f32.vlgmr.msra.gmra.mxu1 %v4504_v38  ;;  %20111 = vmatprep.subr.mxu1 %v21580_v0  ;;  %v4505_v42 = vsub.f32 %v4503_v37, %v4504_v38  ;;  %v21440_v5 = vpop.eup %21439 }
 0x4d5   : > { %20112 = vmatpush3.msra.mxu1 %v21838_v21  ;;  %20115 = vmatprep.mubr.msk.f32.mxu1 %vm21581_vm0, %v21580_v0  ;;  %v4911_v11 = vmul.f32 %v21440_v5, %v22278_v1 }
 0x4d6   : > { %20113 = vmatprep.subr.mxu1 %v21580_v0  ;;  %v4506_v43 = vand.u32 4294901760, %v4505_v42 }
 0x4d7   : > { %20114 = vmatpush3.msra.mxu1 %v21843_v24 }
 0x4d8   : > { %20081 = vmatmul.mubr.f32.vlgmr.msra.gmra.mxu0 %v4506_v43  ;;  %20116 = vmatmul.mubr.f32.vlgmr.msra.gmra.mxu1 %v4502_v33 }
 0x4d9   : > { %20091 = vmatpush3.msra.mxu0 %v21841_v23  ;;  %20094 = vmatprep.mubr.msk.f32.mxu0 %vm21581_vm0, %v21580_v0 }
 0x4da   : > { %20092 = vmatprep.subr.mxu0 %v21580_v0  ;;  %20125 = vmatprep.subr.mxu1 %v21580_v0 }
 0x4db   : > { %20093 = vmatpush3.msra.mxu0 %v21851_v26  ;;  %20126 = vmatpush3.msra.mxu1 %v5031_v48 }
 0x4dc   : > { %20095 = vmatmul.mubr.f32.vlgmr.msra.gmra.mxu0 %v4503_v37  ;;  %20104 = vmatprep.subr.mxu0 %v21580_v0 }
 0x4dd   : > { %20105 = vmatpush3.msra.mxu0 %v21848_v25  ;;  %20108 = vmatprep.mubr.msk.f32.mxu0 %vm21581_vm0, %v21580_v0 }
 0x4de   : > { %20106 = vmatprep.subr.mxu0 %v21580_v0  ;;  %20127 = vmatprep.subr.mxu1 %v21580_v0 }
 0x4df   : > { %20107 = vmatpush3.msra.mxu0 %v21858_v28  ;;  %20128 = vmatpush3.msra.mxu1 %v5038_v51  ;;  %v22396_v51 = vand.u32 4294901760, %v22389_v39 }
 0x4e0   : > { %20109 = vmatmul.mubr.f32.vlgmr.msra.gmra.mxu0 %v4502_v33  ;;  %20118 = vmatprep.subr.mxu0 %v21580_v0 }
 0x4e1   : > { %20119 = vmatpush3.msra.mxu0 %v22281_v20  ;;  %20122 = vmatprep.mubr.msk.f32.mxu0 %vm21581_vm0, %v21580_v0 }
 0x4e2   : > { %20120 = vmatprep.subr.mxu0 %v21580_v0  ;;  %20129 = vmatprep.mubr.msk.f32.mxu1 %vm21581_vm0, %v21580_v0 }
 0x4e3   : > { %20121 = vmatpush3.msra.mxu0 %v22291_v46  ;;  %20130 = vmatmul.mubr.f32.vlgmr.msra.gmra.mxu1 %v21794_v7 }
 0x4e4   : > { %20123 = vmatmul.mubr.f32.vlgmr.msra.gmra.mxu0 %v21808_v19  ;;  %20132 = vmatprep.subr.mxu0 %v21580_v0 }
 0x4e5   : > { %20133 = vmatpush3.msra.mxu0 %v22288_v2  ;;  %20139 = vmatprep.subr.mxu1 %v21580_v0 }
 0x4e6   : > { %20134 = vmatprep.subr.mxu0 %v21580_v0  ;;  %20140 = vmatpush3.msra.mxu1 %v22281_v20 }
 0x4e7   : > { %20135 = vmatpush3.msra.mxu0 %v22297_v36  ;;  %20136 = vmatprep.mubr.msk.f32.mxu0 %vm21581_vm0, %v21580_v0 }
 0x4e8   : > { %20141 = vmatprep.subr.mxu1 %v21580_v0  ;;  %20137 = vmatmul.mubr.f32.vlgmr.msra.gmra.mxu0 %v21800_v10 }
 0x4e9   : > { %20142 = vmatpush3.msra.mxu1 %v22291_v46  ;;  %20143 = vmatprep.mubr.msk.f32.mxu1 %vm21581_vm0, %v21580_v0 }
 0x4ea   : > { %20146 = vmatprep.subr.mxu0 %v21580_v0  ;;  %20144 = vmatmul.mubr.f32.vlgmr.msra.gmra.mxu1 %v21803_v13 }
 0x4eb   : > { %20147 = vmatpush3.msra.mxu0 %v5029_v35  ;;  %20153 = vmatprep.subr.mxu1 %v21580_v0 }
 0x4ec   : > { %20148 = vmatprep.subr.mxu0 %v21580_v0  ;;  %20154 = vmatpush3.msra.mxu1 %v22281_v20  ;;  %v4912_v20 = vsub.f32 2.0, %v4911_v11 }
 0x4ed   : > { %20149 = vmatpush3.msra.mxu0 %v5036_v41  ;;  %20150 = vmatprep.mubr.msk.f32.mxu0 %vm21581_vm0, %v21580_v0 }
 0x4ee   : > { %20155 = vmatprep.subr.mxu1 %v21580_v0  ;;  %20151 = vmatmul.mubr.f32.vlgmr.msra.gmra.mxu0 %v21794_v7  ;;  %v4913_v35 = vmul.f32 %v21440_v5, %v4912_v20 }
 0x4ef   : > { %20156 = vmatpush3.msra.mxu1 %v22291_v46  ;;  %20157 = vmatprep.mubr.msk.f32.mxu1 %vm21581_vm0, %v21580_v0 }
 0x4f0   : > { %20158 = vmatmul.mubr.f32.vlgmr.msra.gmra.mxu1 %v21794_v7  ;;  %20167 = vmatprep.subr.mxu1 %v21580_v0 }
 0x4f1   : > { %20168 = vmatpush3.msra.mxu1 %v21860_v29  ;;  %20171 = vmatprep.mubr.msk.f32.mxu1 %vm21581_vm0, %v21580_v0 }
 0x4f2   : > { %20169 = vmatprep.subr.mxu1 %v21580_v0  ;;  %20160 = vmatprep.subr.mxu0 %v21580_v0 }
 0x4f3   : > { %20170 = vmatpush3.msra.mxu1 %v21865_v31  ;;  %20161 = vmatpush3.msra.mxu0 %v21838_v21 }
 0x4f4   : > { %20181 = vmatprep.subr.mxu1 %v21580_v0  ;;  %20162 = vmatprep.subr.mxu0 %v21580_v0 }
 0x4f5   : > { %20163 = vmatpush3.msra.mxu0 %v21843_v24  ;;  %20164 = vmatprep.mubr.msk.f32.mxu0 %vm21581_vm0, %v21580_v0 }
 0x4f6   : > { %20174 = vmatprep.subr.mxu0 %v21580_v0 }
 0x590   : > { %v4589_v52 = vpop.f32.mrf.mxu1 }
 0x592   : > { %v20089_v53 = vpop.f32.mrf.mxu1 }
 0x594   : > { %v4740_v54 = vpop.f32.mrf.mxu1 }
 0x596   : > { %v20103_v56 = vpop.f32.mrf.mxu1 }
 0x598   : > { %v4508_v57 = vpop.f32.mrf.mxu0  ;;  %v4890_v59 = vpop.f32.mrf.mxu1 }
 0x599   : > { %v4590_v34 = vadd.f32 %v4589_v52, %v4508_v57  ;;  %v22402_v57 = vsub.f32 %v22389_v39, %v22396_v51 }
 0x59a   : > { %v20082_v60 = vpop.f32.mrf.mxu0  ;;  %v20117_v61 = vpop.f32.mrf.mxu1 }
 0x59b   : > { %v5957_v61 = vand.u32 4294901760, %v22402_v57 }
 0x59c   : > { %v4665_v62 = vpop.f32.mrf.mxu0 }
 0x59d   : > { %v4666_v63 = vadd.f32 %v4665_v62, %v4590_v34 }
 0x59e   : > { %v20096_v3 = vpop.f32.mrf.mxu0 }
 0x59f   : > { %v4741_v4 = vadd.f32 %v4740_v54, %v4666_v63 }
 0x5a0   : > { %v4817_v6 = vpop.f32.mrf.mxu0 }
 0x5a1   : > { %v4818_v8 = vadd.f32 %v4817_v6, %v4741_v4  ;;  %v5958_v4 = vsub.f32 %v22402_v57, %v5957_v61 }
 0x5a2   : > { %v20110_v9 = vpop.f32.mrf.mxu0 }
 0x5a3   : > { %v4891_v12 = vadd.f32 %v4890_v59, %v4818_v8  ;;  %v5075_v14 = vpop.f32.mrf.mxu1  ;;  %v5959_v5 = vand.u32 4294901760, %v5958_v4 }
 0x5a4   : > { %v4994_v15 = vpop.f32.mrf.mxu0 }
 0x5a5   : > { %v4899_v17 = vsub.f32 %v4891_v12, %v22074_v47  ;;  %v20131_v45 = vpop.f32.mrf.mxu1  ;;  %v5076_v55 = vadd.f32 %v5075_v14, %v4994_v15  ;;  %v22384_v47 = vand.u32 4294901760, %v22381_v30 }
 0x5a6   : > { %v20124_v40 = vpop.f32.mrf.mxu0 }
 0x5a7   : > { %v4902_v22 = vmul.f32 2.0, %v4899_v17  ;;  %v22393_v49 = vsub.f32 %v22381_v30, %v22384_v47 }
 0x5a8   : > { %v5151_v58 = vpop.f32.mrf.mxu0 }
 0x5a9   : > { %v4903_v50 = vadd.f32 0.0009, %v4902_v22  ;;  %v5152_v2 = vadd.f32 %v5151_v58, %v5076_v55  ;;  %v5950_v56 = vand.u32 4294901760, %v22393_v49 }
 0x5aa   : > { %v5226_v46 = vpop.f32.mrf.mxu1  ;;  %v20138_v1 = vpop.f32.mrf.mxu0 }
 0x5ab   : > { %v4904_v32 = vmul.f32 %v4903_v50, %v4901_v27  ;;  %v5227_v33 = vadd.f32 %v5226_v46, %v5152_v2  ;;  %v5951_v60 = vsub.f32 %v22393_v49, %v5950_v56 }
 0x5ac   : > { %v20145_v36 = vpop.f32.mrf.mxu1 }
 0x5ad   : > { %v22386_v37 = vmul.f32 %v4913_v35, %v4904_v32  ;;  %v5952_v3 = vand.u32 4294901760, %v5951_v60 }
 0x5ae   : > { %v5303_v38 = vpop.f32.mrf.mxu0 }
 0x5af   : > { %v5304_v41 = vadd.f32 %v5303_v38, %v5227_v33 }
 0x5b0   : > { %v5376_v42 = vpop.f32.mrf.mxu1  ;;  %v20152_v43 = vpop.f32.mrf.mxu0 }
 0x5b1   : > { %v5377_v48 = vadd.f32 %v5376_v42, %v5304_v41 }
 0x5b2   : > { %v20159_v52 = vpop.f32.mrf.mxu1 }
 0x5b3   : > { %v5381_v53 = vsel %vm279_vm1, %v5377_v48, 0 }
 0x5b4   : > { %v5450_v54 = vand.u32 4294901760, %v5381_v53 }
 0x5b6   : > { %v5451_v59 = vsub.f32 %v5381_v53, %v5450_v54  ;;  %20172 = vmatmul.mubr.f32.vlgmr.msra.gmra.mxu1 %v5450_v54 }
 0x5b7   : > { %20182 = vmatpush3.msra.mxu1 %v21838_v21  ;;  %20185 = vmatprep.mubr.msk.f32.mxu1 %vm21581_vm0, %v21580_v0 }
 0x5b8   : > { %20183 = vmatprep.subr.mxu1 %v21580_v0  ;;  %v5452_v34 = vand.u32 4294901760, %v5451_v59 }
 0x5b9   : > { %20184 = vmatpush3.msra.mxu1 %v21843_v24 }
 0x5ba   : > { %20186 = vmatmul.mubr.f32.vlgmr.msra.gmra.mxu1 %v5452_v34  ;;  %20195 = vmatprep.subr.mxu1 %v21580_v0  ;;  %v5453_v62 = vsub.f32 %v5451_v59, %v5452_v34 }
 0x5bb   : > { %20196 = vmatpush3.msra.mxu1 %v21838_v21  ;;  %20199 = vmatprep.mubr.msk.f32.mxu1 %vm21581_vm0, %v21580_v0 }
 0x5bc   : > { %20197 = vmatprep.subr.mxu1 %v21580_v0  ;;  %v5454_v63 = vand.u32 4294901760, %v5453_v62 }
 0x5bd   : > { %20198 = vmatpush3.msra.mxu1 %v21843_v24 }
 0x5be   : > { %20165 = vmatmul.mubr.f32.vlgmr.msra.gmra.mxu0 %v5454_v63  ;;  %20200 = vmatmul.mubr.f32.vlgmr.msra.gmra.mxu1 %v5450_v54 }
 0x5bf   : > { %20175 = vmatpush3.msra.mxu0 %v21841_v23  ;;  %20178 = vmatprep.mubr.msk.f32.mxu0 %vm21581_vm0, %v21580_v0 }
 0x5c0   : > { %20176 = vmatprep.subr.mxu0 %v21580_v0  ;;  %20209 = vmatprep.subr.mxu1 %v21580_v0 }
 0x5c1   : > { %20177 = vmatpush3.msra.mxu0 %v21851_v26  ;;  %20210 = vmatpush3.msra.mxu1 %v5952_v3 }
 0x5c2   : > { %20179 = vmatmul.mubr.f32.vlgmr.msra.gmra.mxu0 %v5451_v59  ;;  %20188 = vmatprep.subr.mxu0 %v21580_v0 }
 0x5c3   : > { %20189 = vmatpush3.msra.mxu0 %v21848_v25  ;;  %20192 = vmatprep.mubr.msk.f32.mxu0 %vm21581_vm0, %v21580_v0 }
 0x5c4   : > { %20190 = vmatprep.subr.mxu0 %v21580_v0  ;;  %20211 = vmatprep.subr.mxu1 %v21580_v0 }
 0x5c5   : > { %20191 = vmatpush3.msra.mxu0 %v21858_v28  ;;  %20212 = vmatpush3.msra.mxu1 %v5959_v5 }
 0x5c6   : > { %20193 = vmatmul.mubr.f32.vlgmr.msra.gmra.mxu0 %v5450_v54  ;;  %20202 = vmatprep.subr.mxu0 %v21580_v0 }
 0x5c7   : > { %20203 = vmatpush3.msra.mxu0 %v22384_v47  ;;  %20206 = vmatprep.mubr.msk.f32.mxu0 %vm21581_vm0, %v21580_v0 }
 0x5c8   : > { %20204 = vmatprep.subr.mxu0 %v21580_v0  ;;  %20213 = vmatprep.mubr.msk.f32.mxu1 %vm21581_vm0, %v21580_v0 }
 0x5c9   : > { %20205 = vmatpush3.msra.mxu0 %v22396_v51  ;;  %20214 = vmatmul.mubr.f32.vlgmr.msra.gmra.mxu1 %v21794_v7 }
 0x5ca   : > { %20207 = vmatmul.mubr.f32.vlgmr.msra.gmra.mxu0 %v21808_v19  ;;  %20216 = vmatprep.subr.mxu0 %v21580_v0 }
 0x5cb   : > { %20217 = vmatpush3.msra.mxu0 %v22393_v49  ;;  %20223 = vmatprep.subr.mxu1 %v21580_v0  ;;  %v6763_v49 = vmul.f32 %v22284_v44, %v22284_v44 }
 0x5cc   : > { %20218 = vmatprep.subr.mxu0 %v21580_v0  ;;  %20224 = vmatpush3.msra.mxu1 %v22384_v47 }
 0x5cd   : > { %20219 = vmatpush3.msra.mxu0 %v22402_v57  ;;  %20220 = vmatprep.mubr.msk.f32.mxu0 %vm21581_vm0, %v21580_v0  ;;  %v22492_v59 = vand.u32 4294901760, %v6763_v49 }
 0x5ce   : > { %20225 = vmatprep.subr.mxu1 %v21580_v0  ;;  %20221 = vmatmul.mubr.f32.vlgmr.msra.gmra.mxu0 %v21800_v10 }
 0x5cf   : > { %20226 = vmatpush3.msra.mxu1 %v22396_v51  ;;  %20227 = vmatprep.mubr.msk.f32.mxu1 %vm21581_vm0, %v21580_v0  ;;  %v22497_v62 = vsub.f32 %v6763_v49, %v22492_v59 }
 0x5d0   : > { %20230 = vmatprep.subr.mxu0 %v21580_v0  ;;  %20228 = vmatmul.mubr.f32.vlgmr.msra.gmra.mxu1 %v21803_v13 }
 0x5d1   : > { %20231 = vmatpush3.msra.mxu0 %v5950_v56  ;;  %20237 = vmatprep.subr.mxu1 %v21580_v0  ;;  %v6880_v4 = vand.u32 4294901760, %v22497_v62 }
 0x5d2   : > { %20232 = vmatprep.subr.mxu0 %v21580_v0  ;;  %20238 = vmatpush3.msra.mxu1 %v22384_v47  ;;  %v6764_v47 = vmul.f32 %v22276_v18, %v22276_v18 }
 0x5d3   : > { %20233 = vmatpush3.msra.mxu0 %v5957_v61  ;;  %20234 = vmatprep.mubr.msk.f32.mxu0 %vm21581_vm0, %v21580_v0 }
 0x5d4   : > { %20239 = vmatprep.subr.mxu1 %v21580_v0  ;;  %20235 = vmatmul.mubr.f32.vlgmr.msra.gmra.mxu0 %v21794_v7  ;;  %v22485_v48 = vand.u32 4294901760, %v6764_v47 }
 0x5d5   : > { %20240 = vmatpush3.msra.mxu1 %v22396_v51  ;;  %20241 = vmatprep.mubr.msk.f32.mxu1 %vm21581_vm0, %v21580_v0 }
 0x5d6   : > { %20242 = vmatmul.mubr.f32.vlgmr.msra.gmra.mxu1 %v21794_v7  ;;  %20251 = vmatprep.subr.mxu1 %v21580_v0  ;;  %v22490_v57 = vsub.f32 %v6764_v47, %v22485_v48 }
 0x5d7   : > { %20252 = vmatpush3.msra.mxu1 %v21860_v29  ;;  %20255 = vmatprep.mubr.msk.f32.mxu1 %vm21581_vm0, %v21580_v0 }
 0x5d8   : > { %20253 = vmatprep.subr.mxu1 %v21580_v0  ;;  %20244 = vmatprep.subr.mxu0 %v21580_v0  ;;  %v6873_v61 = vand.u32 4294901760, %v22490_v57 }
 0x5d9   : > { %20254 = vmatpush3.msra.mxu1 %v21865_v31  ;;  %20245 = vmatpush3.msra.mxu0 %v21838_v21 }
 0x5da   : > { %20265 = vmatprep.subr.mxu1 %v21580_v0  ;;  %20246 = vmatprep.subr.mxu0 %v21580_v0  ;;  %v6874_v3 = vsub.f32 %v22490_v57, %v6873_v61 }
 0x5db   : > { %20247 = vmatpush3.msra.mxu0 %v21843_v24  ;;  %20248 = vmatprep.mubr.msk.f32.mxu0 %vm21581_vm0, %v21580_v0 }
 0x5dc   : > { %20258 = vmatprep.subr.mxu0 %v21580_v0 }
 0x676   : > { %v5537_v6 = vpop.f32.mrf.mxu1 }
 0x678   : > { %v20173_v8 = vpop.f32.mrf.mxu1 }
 0x679   : > { %v6875_v8 = vand.u32 4294901760, %v6874_v3 }
 0x67a   : > { %v5688_v9 = vpop.f32.mrf.mxu1 }
 0x67c   : > { %v20187_v11 = vpop.f32.mrf.mxu1 }
 0x67e   : > { %v5456_v12 = vpop.f32.mrf.mxu0  ;;  %v5838_v14 = vpop.f32.mrf.mxu1 }
 0x67f   : > { %v5538_v15 = vadd.f32 %v5537_v6, %v5456_v12 }
 0x680   : > { %v20166_v16 = vpop.f32.mrf.mxu0  ;;  %v20201_v17 = vpop.f32.mrf.mxu1 }
 0x682   : > { %v5613_v45 = vpop.f32.mrf.mxu0 }
 0x683   : > { %v5614_v40 = vadd.f32 %v5613_v45, %v5538_v15 }
 0x684   : > { %v20180_v20 = vpop.f32.mrf.mxu0 }
 0x685   : > { %v5689_v22 = vadd.f32 %v5688_v9, %v5614_v40  ;;  %v6881_v9 = vsub.f32 %v22497_v62, %v6880_v4 }
 0x686   : > { %v5765_v55 = vpop.f32.mrf.mxu0 }
 0x687   : > { %v5766_v58 = vadd.f32 %v5765_v55, %v5689_v22  ;;  %v6882_v11 = vand.u32 4294901760, %v6881_v9 }
 0x688   : > { %v20194_v27 = vpop.f32.mrf.mxu0 }
 0x689   : > { %v22481_v50 = vadd.f32 %v5838_v14, %v5766_v58  ;;  %v5996_v2 = vpop.f32.mrf.mxu1 }
 0x68a   : > { %v5915_v46 = vpop.f32.mrf.mxu0 }
 0x68b   : > { %v20215_v1 = vpop.f32.mrf.mxu1  ;;  %v5997_v33 = vadd.f32 %v5996_v2, %v5915_v46  ;;  %v22578_v47 = vmul.f32 %v22481_v50, %v22481_v50 }
 0x68c   : > { %v20208_v32 = vpop.f32.mrf.mxu0 }
 0x68e   : > { %v6072_v35 = vpop.f32.mrf.mxu0 }
 0x68f   : > { %v6073_v36 = vadd.f32 %v6072_v35, %v5997_v33 }
 0x690   : > { %v6147_v38 = vpop.f32.mrf.mxu1  ;;  %v20222_v41 = vpop.f32.mrf.mxu0 }
 0x691   : > { %v6148_v42 = vadd.f32 %v6147_v38, %v6073_v36 }
 0x692   : > { %v20229_v43 = vpop.f32.mrf.mxu1 }
 0x694   : > { %v6224_v51 = vpop.f32.mrf.mxu0 }
 0x695   : > { %v6225_v52 = vadd.f32 %v6224_v51, %v6148_v42 }
 0x696   : > { %v6297_v53 = vpop.f32.mrf.mxu1  ;;  %v20236_v54 = vpop.f32.mrf.mxu0 }
 0x697   : > { %v6298_v56 = vadd.f32 %v6297_v53, %v6225_v52  ;;  %v7687_v53 = vmul.f32 %v22381_v30, %v22381_v30 }
 0x698   : > { %v20243_v18 = vpop.f32.mrf.mxu1 }
 0x699   : > { %v6302_v34 = vsel %vm279_vm1, %v6298_v56, 0  ;;  %v22591_v18 = vand.u32 4294901760, %v7687_v53 }
 0x69a   : > { %v6371_v60 = vand.u32 4294901760, %v6302_v34 }
 0x69c   : > { %v6372_v44 = vsub.f32 %v6302_v34, %v6371_v60  ;;  %20256 = vmatmul.mubr.f32.vlgmr.msra.gmra.mxu1 %v6371_v60 }
 0x69d   : > { %20266 = vmatpush3.msra.mxu1 %v21838_v21  ;;  %20269 = vmatprep.mubr.msk.f32.mxu1 %vm21581_vm0, %v21580_v0 }
 0x69e   : > { %20267 = vmatprep.subr.mxu1 %v21580_v0  ;;  %v6373_v63 = vand.u32 4294901760, %v6372_v44 }
 0x69f   : > { %20268 = vmatpush3.msra.mxu1 %v21843_v24 }
 0x6a0   : > { %20270 = vmatmul.mubr.f32.vlgmr.msra.gmra.mxu1 %v6373_v63  ;;  %20279 = vmatprep.subr.mxu1 %v21580_v0  ;;  %v6374_v5 = vsub.f32 %v6372_v44, %v6373_v63  ;;  %v22596_v63 = vsub.f32 %v7687_v53, %v22591_v18 }
 0x6a1   : > { %20280 = vmatpush3.msra.mxu1 %v21838_v21  ;;  %20283 = vmatprep.mubr.msk.f32.mxu1 %vm21581_vm0, %v21580_v0 }
 0x6a2   : > { %20281 = vmatprep.subr.mxu1 %v21580_v0  ;;  %v6375_v6 = vand.u32 4294901760, %v6374_v5 }
 0x6a3   : > { %20282 = vmatpush3.msra.mxu1 %v21843_v24 }
 0x6a4   : > { %20249 = vmatmul.mubr.f32.vlgmr.msra.gmra.mxu0 %v6375_v6  ;;  %20284 = vmatmul.mubr.f32.vlgmr.msra.gmra.mxu1 %v6371_v60 }
 0x6a5   : > { %20259 = vmatpush3.msra.mxu0 %v21841_v23  ;;  %20262 = vmatprep.mubr.msk.f32.mxu0 %vm21581_vm0, %v21580_v0 }
 0x6a6   : > { %20260 = vmatprep.subr.mxu0 %v21580_v0  ;;  %20293 = vmatprep.subr.mxu1 %v21580_v0 }
 0x6a7   : > { %20261 = vmatpush3.msra.mxu0 %v21851_v26  ;;  %20294 = vmatpush3.msra.mxu1 %v6875_v8  ;;  %v7796_v8 = vand.u32 4294901760, %v22596_v63 }
 0x6a8   : > { %20263 = vmatmul.mubr.f32.vlgmr.msra.gmra.mxu0 %v6372_v44  ;;  %20272 = vmatprep.subr.mxu0 %v21580_v0 }
 0x6a9   : > { %20273 = vmatpush3.msra.mxu0 %v21848_v25  ;;  %20276 = vmatprep.mubr.msk.f32.mxu0 %vm21581_vm0, %v21580_v0 }
 0x6aa   : > { %20274 = vmatprep.subr.mxu0 %v21580_v0  ;;  %20295 = vmatprep.subr.mxu1 %v21580_v0 }
 0x6ab   : > { %20275 = vmatpush3.msra.mxu0 %v21858_v28  ;;  %20296 = vmatpush3.msra.mxu1 %v6882_v11 }
 0x6ac   : > { %20277 = vmatmul.mubr.f32.vlgmr.msra.gmra.mxu0 %v6371_v60  ;;  %20286 = vmatprep.subr.mxu0 %v21580_v0 }
 0x6ad   : > { %20287 = vmatpush3.msra.mxu0 %v22485_v48  ;;  %20290 = vmatprep.mubr.msk.f32.mxu0 %vm21581_vm0, %v21580_v0 }
 0x6ae   : > { %20288 = vmatprep.subr.mxu0 %v21580_v0  ;;  %20297 = vmatprep.mubr.msk.f32.mxu1 %vm21581_vm0, %v21580_v0 }
 0x6af   : > { %20289 = vmatpush3.msra.mxu0 %v22492_v59  ;;  %20298 = vmatmul.mubr.f32.vlgmr.msra.gmra.mxu1 %v21794_v7 }
 0x6b0   : > { %20291 = vmatmul.mubr.f32.vlgmr.msra.gmra.mxu0 %v21808_v19  ;;  %20300 = vmatprep.subr.mxu0 %v21580_v0 }
 0x6b1   : > { %20301 = vmatpush3.msra.mxu0 %v22490_v57  ;;  %20307 = vmatprep.subr.mxu1 %v21580_v0 }
 0x6b2   : > { %20302 = vmatprep.subr.mxu0 %v21580_v0  ;;  %20308 = vmatpush3.msra.mxu1 %v22485_v48 }
 0x6b3   : > { %20303 = vmatpush3.msra.mxu0 %v22497_v62  ;;  %20304 = vmatprep.mubr.msk.f32.mxu0 %vm21581_vm0, %v21580_v0 }
 0x6b4   : > { %20309 = vmatprep.subr.mxu1 %v21580_v0  ;;  %20305 = vmatmul.mubr.f32.vlgmr.msra.gmra.mxu0 %v21800_v10 }
 0x6b5   : > { %20310 = vmatpush3.msra.mxu1 %v22492_v59  ;;  %20311 = vmatprep.mubr.msk.f32.mxu1 %vm21581_vm0, %v21580_v0 }
 0x6b6   : > { %20314 = vmatprep.subr.mxu0 %v21580_v0  ;;  %20312 = vmatmul.mubr.f32.vlgmr.msra.gmra.mxu1 %v21803_v13 }
 0x6b7   : > { %20315 = vmatpush3.msra.mxu0 %v6873_v61  ;;  %20321 = vmatprep.subr.mxu1 %v21580_v0 }
 0x6b8   : > { %20316 = vmatprep.subr.mxu0 %v21580_v0  ;;  %20322 = vmatpush3.msra.mxu1 %v22485_v48 }
 0x6b9   : > { %20317 = vmatpush3.msra.mxu0 %v6880_v4  ;;  %20318 = vmatprep.mubr.msk.f32.mxu0 %vm21581_vm0, %v21580_v0 }
 0x6ba   : > { %20323 = vmatprep.subr.mxu1 %v21580_v0  ;;  %20319 = vmatmul.mubr.f32.vlgmr.msra.gmra.mxu0 %v21794_v7 }
 0x6bb   : > { %20324 = vmatpush3.msra.mxu1 %v22492_v59  ;;  %20325 = vmatprep.mubr.msk.f32.mxu1 %vm21581_vm0, %v21580_v0 }
 0x6bc   : > { %20326 = vmatmul.mubr.f32.vlgmr.msra.gmra.mxu1 %v21794_v7  ;;  %20335 = vmatprep.subr.mxu1 %v21580_v0 }
 0x6bd   : > { %20336 = vmatpush3.msra.mxu1 %v21860_v29  ;;  %20339 = vmatprep.mubr.msk.f32.mxu1 %vm21581_vm0, %v21580_v0 }
 0x6be   : > { %20337 = vmatprep.subr.mxu1 %v21580_v0  ;;  %20328 = vmatprep.subr.mxu0 %v21580_v0 }
 0x6bf   : > { %20338 = vmatpush3.msra.mxu1 %v21865_v31  ;;  %20329 = vmatpush3.msra.mxu0 %v21838_v21 }
 0x6c0   : > { %20349 = vmatprep.subr.mxu1 %v21580_v0  ;;  %20330 = vmatprep.subr.mxu0 %v21580_v0 }
 0x6c1   : > { %20331 = vmatpush3.msra.mxu0 %v21843_v24  ;;  %20332 = vmatprep.mubr.msk.f32.mxu0 %vm21581_vm0, %v21580_v0 }
 0x6c2   : > { %20342 = vmatprep.subr.mxu0 %v21580_v0 }
 0x75c   : > { %v6458_v12 = vpop.f32.mrf.mxu1 }
 0x75e   : > { %v20257_v14 = vpop.f32.mrf.mxu1 }
 0x75f   : > { %v7797_v14 = vsub.f32 %v22596_v63, %v7796_v8 }
 0x760   : > { %v6609_v15 = vpop.f32.mrf.mxu1 }
 0x762   : > { %v20271_v16 = vpop.f32.mrf.mxu1 }
 0x764   : > { %v6377_v17 = vpop.f32.mrf.mxu0  ;;  %v6759_v45 = vpop.f32.mrf.mxu1 }
 0x765   : > { %v6459_v40 = vadd.f32 %v6458_v12, %v6377_v17 }
 0x766   : > { %v20250_v20 = vpop.f32.mrf.mxu0  ;;  %v20285_v22 = vpop.f32.mrf.mxu1 }
 0x768   : > { %v6534_v55 = vpop.f32.mrf.mxu0 }
 0x769   : > { %v6535_v58 = vadd.f32 %v6534_v55, %v6459_v40 }
 0x76a   : > { %v20264_v27 = vpop.f32.mrf.mxu0 }
 0x76b   : > { %v6610_v2 = vadd.f32 %v6609_v15, %v6535_v58 }
 0x76c   : > { %v6686_v46 = vpop.f32.mrf.mxu0 }
 0x76d   : > { %v6687_v1 = vadd.f32 %v6686_v46, %v6610_v2 }
 0x76e   : > { %v20278_v32 = vpop.f32.mrf.mxu0 }
 0x76f   : > { %v6760_v33 = vadd.f32 %v6759_v45, %v6687_v1  ;;  %v6919_v35 = vpop.f32.mrf.mxu1  ;;  %v7798_v45 = vand.u32 4294901760, %v7797_v14 }
 0x770   : > { %v6838_v36 = vpop.f32.mrf.mxu0 }
 0x771   : > { %v22580_v38 = vmul.f32 %v6760_v33, %v6760_v33  ;;  %v22583_v41 = vmul.f32 %v6760_v33, %v22481_v50  ;;  %v20299_v42 = vpop.f32.mrf.mxu1  ;;  %v6920_v49 = vadd.f32 %v6919_v35, %v6838_v36  ;;  %v7686_v50 = vmul.f32 %v22389_v39, %v22389_v39 }
 0x772   : > { %v20292_v43 = vpop.f32.mrf.mxu0 }
 0x773   : > { %v22587_v48 = vadd.f32 %v22580_v38, %v22578_v47  ;;  %v22598_v3 = vand.u32 4294901760, %v7686_v50 }
 0x774   : > { %v6995_v51 = vpop.f32.mrf.mxu0 }
 0x775   : > { %v6996_v52 = vadd.f32 %v6995_v51, %v6920_v49  ;;  %v22603_v9 = vsub.f32 %v7686_v50, %v22598_v3 }
 0x776   : > { %v7070_v54 = vpop.f32.mrf.mxu1  ;;  %v20306_v56 = vpop.f32.mrf.mxu0 }
 0x777   : > { %v7071_v57 = vadd.f32 %v7070_v54, %v6996_v52  ;;  %v7803_v15 = vand.u32 4294901760, %v22603_v9 }
 0x778   : > { %v20313_v59 = vpop.f32.mrf.mxu1 }
 0x779   : > { %v7804_v40 = vsub.f32 %v22603_v9, %v7803_v15 }
 0x77a   : > { %v7147_v34 = vpop.f32.mrf.mxu0 }
 0x77b   : > { %v7148_v60 = vadd.f32 %v7147_v34, %v7071_v57  ;;  %v7805_v20 = vand.u32 4294901760, %v7804_v40 }
 0x77c   : > { %v7220_v61 = vpop.f32.mrf.mxu1  ;;  %v20320_v62 = vpop.f32.mrf.mxu0 }
 0x77d   : > { %v7221_v44 = vadd.f32 %v7220_v61, %v7148_v60  ;;  %v21447_v61 = vld [vmem:[%s21770_s18 + $0x18] sm:$0xff] }
 0x77e   : > { %v20327_v4 = vpop.f32.mrf.mxu1  ;;  %v8610_v62 = vmul.f32 %v21447_v61, %v22381_v30 }
 0x77f   : > { %v7225_v5 = vsel %vm279_vm1, %v7221_v44, 0 }
 0x780   : > { %v7294_v6 = vand.u32 4294901760, %v7225_v5 }
 0x782   : > { %v7295_v11 = vsub.f32 %v7225_v5, %v7294_v6  ;;  %20340 = vmatmul.mubr.f32.vlgmr.msra.gmra.mxu1 %v7294_v6  ;;  %v22688_v5 = vand.u32 4294901760, %v8610_v62 }
 0x783   : > { %20350 = vmatpush3.msra.mxu1 %v21838_v21  ;;  %20353 = vmatprep.mubr.msk.f32.mxu1 %vm21581_vm0, %v21580_v0 }
 0x784   : > { %20351 = vmatprep.subr.mxu1 %v21580_v0  ;;  %v7296_v12 = vand.u32 4294901760, %v7295_v11 }
 0x785   : > { %20352 = vmatpush3.msra.mxu1 %v21843_v24 }
 0x786   : > { %20354 = vmatmul.mubr.f32.vlgmr.msra.gmra.mxu1 %v7296_v12  ;;  %20363 = vmatprep.subr.mxu1 %v21580_v0  ;;  %v7297_v16 = vsub.f32 %v7295_v11, %v7296_v12 }
 0x787   : > { %20364 = vmatpush3.msra.mxu1 %v21838_v21  ;;  %20367 = vmatprep.mubr.msk.f32.mxu1 %vm21581_vm0, %v21580_v0 }
 0x788   : > { %20365 = vmatprep.subr.mxu1 %v21580_v0  ;;  %v7298_v17 = vand.u32 4294901760, %v7297_v16  ;;  %v22693_v16 = vsub.f32 %v8610_v62, %v22688_v5 }
 0x789   : > { %20366 = vmatpush3.msra.mxu1 %v21843_v24 }
 0x78a   : > { %20333 = vmatmul.mubr.f32.vlgmr.msra.gmra.mxu0 %v7298_v17  ;;  %20368 = vmatmul.mubr.f32.vlgmr.msra.gmra.mxu1 %v7294_v6 }
 0x78b   : > { %20343 = vmatpush3.msra.mxu0 %v21841_v23  ;;  %20346 = vmatprep.mubr.msk.f32.mxu0 %vm21581_vm0, %v21580_v0 }
 0x78c   : > { %20344 = vmatprep.subr.mxu0 %v21580_v0  ;;  %20377 = vmatprep.subr.mxu1 %v21580_v0 }
 0x78d   : > { %20345 = vmatpush3.msra.mxu0 %v21851_v26  ;;  %20378 = vmatpush3.msra.mxu1 %v7798_v45 }
 0x78e   : > { %20347 = vmatmul.mubr.f32.vlgmr.msra.gmra.mxu0 %v7295_v11  ;;  %20356 = vmatprep.subr.mxu0 %v21580_v0 }
 0x78f   : > { %20357 = vmatpush3.msra.mxu0 %v21848_v25  ;;  %20360 = vmatprep.mubr.msk.f32.mxu0 %vm21581_vm0, %v21580_v0 }
 0x790   : > { %20358 = vmatprep.subr.mxu0 %v21580_v0  ;;  %20379 = vmatprep.subr.mxu1 %v21580_v0 }
 0x791   : > { %20359 = vmatpush3.msra.mxu0 %v21858_v28  ;;  %20380 = vmatpush3.msra.mxu1 %v7805_v20  ;;  %v8719_v20 = vand.u32 4294901760, %v22693_v16 }
 0x792   : > { %20361 = vmatmul.mubr.f32.vlgmr.msra.gmra.mxu0 %v7294_v6  ;;  %20370 = vmatprep.subr.mxu0 %v21580_v0  ;;  %v21448_v6 = vld [vmem:[%s21770_s18 + $0x10] sm:$0xff] }
 0x793   : > { %20371 = vmatpush3.msra.mxu0 %v22591_v18  ;;  %20374 = vmatprep.mubr.msk.f32.mxu0 %vm21581_vm0, %v21580_v0 }
 0x794   : > { %20372 = vmatprep.subr.mxu0 %v21580_v0  ;;  %20381 = vmatprep.mubr.msk.f32.mxu1 %vm21581_vm0, %v21580_v0 }
 0x795   : > { %20373 = vmatpush3.msra.mxu0 %v22598_v3  ;;  %20382 = vmatmul.mubr.f32.vlgmr.msra.gmra.mxu1 %v21794_v7 }
 0x796   : > { %20375 = vmatmul.mubr.f32.vlgmr.msra.gmra.mxu0 %v21808_v19  ;;  %20384 = vmatprep.subr.mxu0 %v21580_v0 }
 0x797   : > { %20385 = vmatpush3.msra.mxu0 %v22596_v63  ;;  %20391 = vmatprep.subr.mxu1 %v21580_v0 }
 0x798   : > { %20386 = vmatprep.subr.mxu0 %v21580_v0  ;;  %20392 = vmatpush3.msra.mxu1 %v22591_v18 }
 0x799   : > { %20387 = vmatpush3.msra.mxu0 %v22603_v9  ;;  %20388 = vmatprep.mubr.msk.f32.mxu0 %vm21581_vm0, %v21580_v0 }
 0x79a   : > { %20393 = vmatprep.subr.mxu1 %v21580_v0  ;;  %20389 = vmatmul.mubr.f32.vlgmr.msra.gmra.mxu0 %v21800_v10 }
 0x79b   : > { %20394 = vmatpush3.msra.mxu1 %v22598_v3  ;;  %20395 = vmatprep.mubr.msk.f32.mxu1 %vm21581_vm0, %v21580_v0 }
 0x79c   : > { %20398 = vmatprep.subr.mxu0 %v21580_v0  ;;  %20396 = vmatmul.mubr.f32.vlgmr.msra.gmra.mxu1 %v21803_v13 }
 0x79d   : > { %20399 = vmatpush3.msra.mxu0 %v7796_v8  ;;  %20405 = vmatprep.subr.mxu1 %v21580_v0  ;;  %v8609_v8 = vmul.f32 %v21448_v6, %v22389_v39 }
 0x79e   : > { %20400 = vmatprep.subr.mxu0 %v21580_v0  ;;  %20406 = vmatpush3.msra.mxu1 %v22591_v18 }
 0x79f   : > { %20401 = vmatpush3.msra.mxu0 %v7803_v15  ;;  %20402 = vmatprep.mubr.msk.f32.mxu0 %vm21581_vm0, %v21580_v0  ;;  %v22695_v17 = vand.u32 4294901760, %v8609_v8 }
 0x7a0   : > { %20407 = vmatprep.subr.mxu1 %v21580_v0  ;;  %20403 = vmatmul.mubr.f32.vlgmr.msra.gmra.mxu0 %v21794_v7 }
 0x7a1   : > { %20408 = vmatpush3.msra.mxu1 %v22598_v3  ;;  %20409 = vmatprep.mubr.msk.f32.mxu1 %vm21581_vm0, %v21580_v0 }
 0x7a2   : > { %20410 = vmatmul.mubr.f32.vlgmr.msra.gmra.mxu1 %v21794_v7  ;;  %20419 = vmatprep.subr.mxu1 %v21580_v0 }
 0x7a3   : > { %20420 = vmatpush3.msra.mxu1 %v21860_v29  ;;  %20423 = vmatprep.mubr.msk.f32.mxu1 %vm21581_vm0, %v21580_v0 }
 0x7a4   : > { %20421 = vmatprep.subr.mxu1 %v21580_v0  ;;  %20412 = vmatprep.subr.mxu0 %v21580_v0 }
 0x7a5   : > { %20422 = vmatpush3.msra.mxu1 %v21865_v31  ;;  %20413 = vmatpush3.msra.mxu0 %v21838_v21 }
 0x7a6   : > { %20433 = vmatprep.subr.mxu1 %v21580_v0  ;;  %20414 = vmatprep.subr.mxu0 %v21580_v0 }
 0x7a7   : > { %20415 = vmatpush3.msra.mxu0 %v21843_v24  ;;  %20416 = vmatprep.mubr.msk.f32.mxu0 %vm21581_vm0, %v21580_v0 }
 0x7a8   : > { %20426 = vmatprep.subr.mxu0 %v21580_v0 }
 0x842   : > { %v7381_v22 = vpop.f32.mrf.mxu1 }
 0x844   : > { %v20341_v55 = vpop.f32.mrf.mxu1 }
 0x846   : > { %v7532_v58 = vpop.f32.mrf.mxu1 }
 0x848   : > { %v20355_v27 = vpop.f32.mrf.mxu1 }
 0x84a   : > { %v7300_v2 = vpop.f32.mrf.mxu0  ;;  %v7682_v46 = vpop.f32.mrf.mxu1 }
 0x84b   : > { %v7382_v1 = vadd.f32 %v7381_v22, %v7300_v2  ;;  %v22700_v22 = vsub.f32 %v8609_v8, %v22695_v17 }
 0x84c   : > { %v20334_v32 = vpop.f32.mrf.mxu0  ;;  %v20369_v33 = vpop.f32.mrf.mxu1 }
 0x84d   : > { %v8726_v27 = vand.u32 4294901760, %v22700_v22 }
 0x84e   : > { %v7457_v35 = vpop.f32.mrf.mxu0 }
 0x84f   : > { %v7458_v36 = vadd.f32 %v7457_v35, %v7382_v1  ;;  %v8727_v32 = vsub.f32 %v22700_v22, %v8726_v27 }
 0x850   : > { %v20348_v42 = vpop.f32.mrf.mxu0 }
 0x851   : > { %v7533_v43 = vadd.f32 %v7532_v58, %v7458_v36  ;;  %v8720_v58 = vsub.f32 %v22693_v16, %v8719_v20  ;;  %v8728_v33 = vand.u32 4294901760, %v8727_v32 }
 0x852   : > { %v7609_v49 = vpop.f32.mrf.mxu0 }
 0x853   : > { %v7610_v51 = vadd.f32 %v7609_v49, %v7533_v43  ;;  %v8721_v1 = vand.u32 4294901760, %v8720_v58 }
 0x854   : > { %v20362_v52 = vpop.f32.mrf.mxu0 }
 0x855   : > { %v22682_v53 = vadd.f32 %v7682_v46, %v7610_v51  ;;  %v7842_v54 = vpop.f32.mrf.mxu1 }
 0x856   : > { %v7761_v56 = vpop.f32.mrf.mxu0 }
 0x857   : > { %v9535_v57 = vsub.f32 %v22682_v53, %v22578_v47  ;;  %v20383_v59 = vpop.f32.mrf.mxu1  ;;  %v7843_v50 = vadd.f32 %v7842_v54, %v7761_v56  ;;  %v22793_v47 = vld [vmem:[%s21770_s18 + $0x20] sm:$0xff] }
 0x858   : > { %v20376_v18 = vpop.f32.mrf.mxu0  ;;  %v22800_v58 = vand.u32 4294901760, %v22793_v47 }
 0x85a   : > { %v7918_v34 = vpop.f32.mrf.mxu0  ;;  %v22806_v32 = vsub.f32 %v22793_v47, %v22800_v58 }
 0x85b   : > { %v7919_v60 = vadd.f32 %v7918_v34, %v7843_v50 }
 0x85c   : > { %v7993_v44 = vpop.f32.mrf.mxu1  ;;  %v20390_v63 = vpop.f32.mrf.mxu0 }
 0x85d   : > { %v7994_v3 = vadd.f32 %v7993_v44, %v7919_v60 }
 0x85e   : > { %v20397_v4 = vpop.f32.mrf.mxu1 }
 0x860   : > { %v8070_v9 = vpop.f32.mrf.mxu0 }
 0x861   : > { %v8071_v11 = vadd.f32 %v8070_v9, %v7994_v3 }
 0x862   : > { %v8143_v12 = vpop.f32.mrf.mxu1  ;;  %v20404_v14 = vpop.f32.mrf.mxu0 }
 0x863   : > { %v8144_v15 = vadd.f32 %v8143_v12, %v8071_v11  ;;  %v9544_v12 = vadd.f32 0.0001, %v22587_v48 }
 0x864   : > { %v20411_v30 = vpop.f32.mrf.mxu1 }
 0x865   : > { %v8148_v45 = vsel %vm279_vm1, %v8144_v15, 0  ;;  %v22785_v30 = vld [vmem:[%s21770_s18 + $0x28] sm:$0xff] }
 0x866   : > { %v8217_v40 = vand.u32 4294901760, %v8148_v45 }
 0x868   : > { %v8218_v39 = vsub.f32 %v8148_v45, %v8217_v40  ;;  %20424 = vmatmul.mubr.f32.vlgmr.msra.gmra.mxu1 %v8217_v40 }
 0x869   : > { %20434 = vmatpush3.msra.mxu1 %v21838_v21  ;;  %20437 = vmatprep.mubr.msk.f32.mxu1 %vm21581_vm0, %v21580_v0 }
 0x86a   : > { %20435 = vmatprep.subr.mxu1 %v21580_v0  ;;  %v8219_v55 = vand.u32 4294901760, %v8218_v39 }
 0x86b   : > { %20436 = vmatpush3.msra.mxu1 %v21843_v24 }
 0x86c   : > { %20438 = vmatmul.mubr.f32.vlgmr.msra.gmra.mxu1 %v8219_v55  ;;  %20447 = vmatprep.subr.mxu1 %v21580_v0  ;;  %v8220_v2 = vsub.f32 %v8218_v39, %v8219_v55 }
 0x86d   : > { %20448 = vmatpush3.msra.mxu1 %v21838_v21  ;;  %20451 = vmatprep.mubr.msk.f32.mxu1 %vm21581_vm0, %v21580_v0 }
 0x86e   : > { %20449 = vmatprep.subr.mxu1 %v21580_v0  ;;  %v8221_v46 = vand.u32 4294901760, %v8220_v2 }
 0x86f   : > { %20450 = vmatpush3.msra.mxu1 %v21843_v24 }
 0x870   : > { %20417 = vmatmul.mubr.f32.vlgmr.msra.gmra.mxu0 %v8221_v46  ;;  %20452 = vmatmul.mubr.f32.vlgmr.msra.gmra.mxu1 %v8217_v40 }
 0x871   : > { %20427 = vmatpush3.msra.mxu0 %v21841_v23  ;;  %20430 = vmatprep.mubr.msk.f32.mxu0 %vm21581_vm0, %v21580_v0 }
 0x872   : > { %20428 = vmatprep.subr.mxu0 %v21580_v0  ;;  %20461 = vmatprep.subr.mxu1 %v21580_v0 }
 0x873   : > { %20429 = vmatpush3.msra.mxu0 %v21851_v26  ;;  %20462 = vmatpush3.msra.mxu1 %v8721_v1 }
 0x874   : > { %20431 = vmatmul.mubr.f32.vlgmr.msra.gmra.mxu0 %v8218_v39  ;;  %20440 = vmatprep.subr.mxu0 %v21580_v0 }
 0x875   : > { %20441 = vmatpush3.msra.mxu0 %v21848_v25  ;;  %20444 = vmatprep.mubr.msk.f32.mxu0 %vm21581_vm0, %v21580_v0 }
 0x876   : > { %20442 = vmatprep.subr.mxu0 %v21580_v0  ;;  %20463 = vmatprep.subr.mxu1 %v21580_v0 }
 0x877   : > { %20443 = vmatpush3.msra.mxu0 %v21858_v28  ;;  %20464 = vmatpush3.msra.mxu1 %v8728_v33 }
 0x878   : > { %20445 = vmatmul.mubr.f32.vlgmr.msra.gmra.mxu0 %v8217_v40  ;;  %20454 = vmatprep.subr.mxu0 %v21580_v0 }
 0x879   : > { %20455 = vmatpush3.msra.mxu0 %v22688_v5  ;;  %20458 = vmatprep.mubr.msk.f32.mxu0 %vm21581_vm0, %v21580_v0 }
 0x87a   : > { %20456 = vmatprep.subr.mxu0 %v21580_v0  ;;  %20465 = vmatprep.mubr.msk.f32.mxu1 %vm21581_vm0, %v21580_v0 }
 0x87b   : > { %20457 = vmatpush3.msra.mxu0 %v22695_v17  ;;  %20466 = vmatmul.mubr.f32.vlgmr.msra.gmra.mxu1 %v21794_v7 }
 0x87c   : > { %20459 = vmatmul.mubr.f32.vlgmr.msra.gmra.mxu0 %v21808_v19  ;;  %20468 = vmatprep.subr.mxu0 %v21580_v0 }
 0x87d   : > { %20469 = vmatpush3.msra.mxu0 %v22693_v16  ;;  %20475 = vmatprep.subr.mxu1 %v21580_v0 }
 0x87e   : > { %20470 = vmatprep.subr.mxu0 %v21580_v0  ;;  %20476 = vmatpush3.msra.mxu1 %v22688_v5 }
 0x87f   : > { %20471 = vmatpush3.msra.mxu0 %v22700_v22  ;;  %20472 = vmatprep.mubr.msk.f32.mxu0 %vm21581_vm0, %v21580_v0 }
 0x880   : > { %20477 = vmatprep.subr.mxu1 %v21580_v0  ;;  %20473 = vmatmul.mubr.f32.vlgmr.msra.gmra.mxu0 %v21800_v10 }
 0x881   : > { %20478 = vmatpush3.msra.mxu1 %v22695_v17  ;;  %20479 = vmatprep.mubr.msk.f32.mxu1 %vm21581_vm0, %v21580_v0 }
 0x882   : > { %20482 = vmatprep.subr.mxu0 %v21580_v0  ;;  %20480 = vmatmul.mubr.f32.vlgmr.msra.gmra.mxu1 %v21803_v13 }
 0x883   : > { %20483 = vmatpush3.msra.mxu0 %v8719_v20  ;;  %20489 = vmatprep.subr.mxu1 %v21580_v0  ;;  %v22790_v20 = vand.u32 4294901760, %v22785_v30 }
 0x884   : > { %20484 = vmatprep.subr.mxu0 %v21580_v0  ;;  %20490 = vmatpush3.msra.mxu1 %v22688_v5 }
 0x885   : > { %20485 = vmatpush3.msra.mxu0 %v8726_v27  ;;  %20486 = vmatprep.mubr.msk.f32.mxu0 %vm21581_vm0, %v21580_v0  ;;  %v22797_v55 = vsub.f32 %v22785_v30, %v22790_v20 }
 0x886   : > { %20491 = vmatprep.subr.mxu1 %v21580_v0  ;;  %20487 = vmatmul.mubr.f32.vlgmr.msra.gmra.mxu0 %v21794_v7 }
 0x887   : > { %20492 = vmatpush3.msra.mxu1 %v22695_v17  ;;  %20493 = vmatprep.mubr.msk.f32.mxu1 %vm21581_vm0, %v21580_v0  ;;  %v9668_v1 = vand.u32 4294901760, %v22797_v55 }
 0x888   : > { %20494 = vmatmul.mubr.f32.vlgmr.msra.gmra.mxu1 %v21794_v7  ;;  %20503 = vmatprep.subr.mxu1 %v21580_v0 }
 0x889   : > { %20504 = vmatpush3.msra.mxu1 %v21860_v29  ;;  %20507 = vmatprep.mubr.msk.f32.mxu1 %vm21581_vm0, %v21580_v0 }
 0x88a   : > { %20505 = vmatprep.subr.mxu1 %v21580_v0  ;;  %20496 = vmatprep.subr.mxu0 %v21580_v0 }
 0x88b   : > { %20506 = vmatpush3.msra.mxu1 %v21865_v31  ;;  %20497 = vmatpush3.msra.mxu0 %v21838_v21 }
 0x88c   : > { %20517 = vmatprep.subr.mxu1 %v21580_v0  ;;  %20498 = vmatprep.subr.mxu0 %v21580_v0 }
 0x88d   : > { %20499 = vmatpush3.msra.mxu0 %v21843_v24  ;;  %20500 = vmatprep.mubr.msk.f32.mxu0 %vm21581_vm0, %v21580_v0 }
 0x88e   : > { %20510 = vmatprep.subr.mxu0 %v21580_v0 }
 0x928   : > { %v8304_v35 = vpop.f32.mrf.mxu1 }
 0x92a   : > { %v20425_v36 = vpop.f32.mrf.mxu1 }
 0x92b   : > { %v9669_v36 = vsub.f32 %v22797_v55, %v9668_v1 }
 0x92c   : > { %v8455_v42 = vpop.f32.mrf.mxu1 }
 0x92e   : > { %v20439_v43 = vpop.f32.mrf.mxu1 }
 0x930   : > { %v8223_v49 = vpop.f32.mrf.mxu0  ;;  %v8605_v51 = vpop.f32.mrf.mxu1 }
 0x931   : > { %v8305_v52 = vadd.f32 %v8304_v35, %v8223_v49 }
 0x932   : > { %v20418_v54 = vpop.f32.mrf.mxu0  ;;  %v20453_v56 = vpop.f32.mrf.mxu1 }
 0x934   : > { %v8380_v59 = vpop.f32.mrf.mxu0 }
 0x935   : > { %v8381_v18 = vadd.f32 %v8380_v59, %v8305_v52 }
 0x936   : > { %v20432_v50 = vpop.f32.mrf.mxu0 }
 0x937   : > { %v8456_v34 = vadd.f32 %v8455_v42, %v8381_v18  ;;  %v9675_v42 = vand.u32 4294901760, %v22806_v32 }
 0x938   : > { %v8532_v60 = vpop.f32.mrf.mxu0 }
 0x939   : > { %v8533_v61 = vadd.f32 %v8532_v60, %v8456_v34  ;;  %v9676_v52 = vsub.f32 %v22806_v32, %v9675_v42 }
 0x93a   : > { %v20446_v62 = vpop.f32.mrf.mxu0 }
 0x93b   : > { %v8606_v44 = vadd.f32 %v8605_v51, %v8533_v61  ;;  %v8765_v63 = vpop.f32.mrf.mxu1  ;;  %v9670_v51 = vand.u32 4294901760, %v9669_v36  ;;  %v9677_v54 = vand.u32 4294901760, %v9676_v52 }
 0x93c   : > { %v8684_v3 = vpop.f32.mrf.mxu0 }
 0x93d   : > { %v9536_v4 = vsub.f32 %v8606_v44, %v22580_v38  ;;  %v20467_v5 = vpop.f32.mrf.mxu1  ;;  %v8766_v9 = vadd.f32 %v8765_v63, %v8684_v3 }
 0x93e   : > { %v20460_v6 = vpop.f32.mrf.mxu0 }
 0x93f   : > { %v9545_v8 = vadd.f32 %v9536_v4, %v9535_v57 }
 0x940   : > { %v8841_v11 = vpop.f32.mrf.mxu0 }
 0x941   : > { %v9546_v14 = vadd.f32 0.0009, %v9545_v8  ;;  %v8842_v15 = vadd.f32 %v8841_v11, %v8766_v9 }
 0x942   : > { %v8916_v16 = vpop.f32.mrf.mxu1  ;;  %v20474_v17 = vpop.f32.mrf.mxu0 }
 0x943   : > { %v22787_v45 = vmul.f32 %v9546_v14, %v9544_v12  ;;  %v8917_v38 = vadd.f32 %v8916_v16, %v8842_v15  ;;  %v9538_v17 = vmul.f32 2.0, %v22583_v41 }
 0x944   : > { %v20481_v40 = vpop.f32.mrf.mxu1 }
 0x945   : > { %21441 = vrcp.f32 %v22787_v45 }
 0x946   : > { %v8993_v22 = vpop.f32.mrf.mxu0 }
 0x947   : > { %v8994_v53 = vadd.f32 %v8993_v22, %v8917_v38 }
 0x948   : > { %v9066_v57 = vpop.f32.mrf.mxu1  ;;  %v20488_v39 = vpop.f32.mrf.mxu0 }
 0x949   : > { %v9067_v48 = vadd.f32 %v9066_v57, %v8994_v53 }
 0x94a   : > { %v20495_v27 = vpop.f32.mrf.mxu1 }
 0x94b   : > { %v9071_v2 = vsel %vm279_vm1, %v9067_v48, 0  ;;  %v9539_v48 = vadd.f32 0.0001, %v9538_v17 }
 0x94c   : > { %v9140_v46 = vand.u32 4294901760, %v9071_v2 }
 0x94e   : > { %v9141_v33 = vsub.f32 %v9071_v2, %v9140_v46  ;;  %20508 = vmatmul.mubr.f32.vlgmr.msra.gmra.mxu1 %v9140_v46  ;;  %v22890_v2 = vld [vmem:[%s21871_s29 + $0x28] sm:$0xff] }
 0x94f   : > { %20518 = vmatpush3.msra.mxu1 %v21838_v21  ;;  %20521 = vmatprep.mubr.msk.f32.mxu1 %vm21581_vm0, %v21580_v0 }
 0x950   : > { %v9142_v35 = vand.u32 4294901760, %v9141_v33  ;;  %20519 = vmatprep.subr.mxu1 %v21580_v0 }
 0x951   : > { %20520 = vmatpush3.msra.mxu1 %v21843_v24 }
 0x952   : > { %v9143_v43 = vsub.f32 %v9141_v33, %v9142_v35  ;;  %20522 = vmatmul.mubr.f32.vlgmr.msra.gmra.mxu1 %v9142_v35  ;;  %20531 = vmatprep.subr.mxu1 %v21580_v0  ;;  %v21442_v6 = vpop.eup %21441 }
 0x953   : > { %20532 = vmatpush3.msra.mxu1 %v21838_v21  ;;  %20535 = vmatprep.mubr.msk.f32.mxu1 %vm21581_vm0, %v21580_v0  ;;  %v9549_v12 = vmul.f32 %v21442_v6, %v22787_v45 }
 0x954   : > { %v9144_v49 = vand.u32 4294901760, %v9143_v43  ;;  %20533 = vmatprep.subr.mxu1 %v21580_v0 }
 0x955   : > { %20534 = vmatpush3.msra.mxu1 %v21843_v24  ;;  %v9550_v22 = vsub.f32 2.0, %v9549_v12 }
 0x956   : > { %20501 = vmatmul.mubr.f32.vlgmr.msra.gmra.mxu0 %v9144_v49  ;;  %20536 = vmatmul.mubr.f32.vlgmr.msra.gmra.mxu1 %v9140_v46 }
 0x957   : > { %20511 = vmatpush3.msra.mxu0 %v21841_v23  ;;  %20514 = vmatprep.mubr.msk.f32.mxu0 %vm21581_vm0, %v21580_v0 }
 0x958   : > { %20512 = vmatprep.subr.mxu0 %v21580_v0  ;;  %20545 = vmatprep.subr.mxu1 %v21580_v0 }
 0x959   : > { %20513 = vmatpush3.msra.mxu0 %v21851_v26  ;;  %20546 = vmatpush3.msra.mxu1 %v9670_v51 }
 0x95a   : > { %20515 = vmatmul.mubr.f32.vlgmr.msra.gmra.mxu0 %v9141_v33  ;;  %20524 = vmatprep.subr.mxu0 %v21580_v0 }
 0x95b   : > { %20525 = vmatpush3.msra.mxu0 %v21848_v25  ;;  %20528 = vmatprep.mubr.msk.f32.mxu0 %vm21581_vm0, %v21580_v0 }
 0x95c   : > { %20526 = vmatprep.subr.mxu0 %v21580_v0  ;;  %20547 = vmatprep.subr.mxu1 %v21580_v0 }
 0x95d   : > { %20527 = vmatpush3.msra.mxu0 %v21858_v28  ;;  %20548 = vmatpush3.msra.mxu1 %v9677_v54 }
 0x95e   : > { %20529 = vmatmul.mubr.f32.vlgmr.msra.gmra.mxu0 %v9140_v46  ;;  %20538 = vmatprep.subr.mxu0 %v21580_v0 }
 0x95f   : > { %20539 = vmatpush3.msra.mxu0 %v22790_v20  ;;  %20542 = vmatprep.mubr.msk.f32.mxu0 %vm21581_vm0, %v21580_v0 }
 0x960   : > { %20540 = vmatprep.subr.mxu0 %v21580_v0  ;;  %20549 = vmatprep.mubr.msk.f32.mxu1 %vm21581_vm0, %v21580_v0 }
 0x961   : > { %20541 = vmatpush3.msra.mxu0 %v22800_v58  ;;  %20550 = vmatmul.mubr.f32.vlgmr.msra.gmra.mxu1 %v21794_v7 }
 0x962   : > { %20543 = vmatmul.mubr.f32.vlgmr.msra.gmra.mxu0 %v21808_v19  ;;  %20552 = vmatprep.subr.mxu0 %v21580_v0 }
 0x963   : > { %20553 = vmatpush3.msra.mxu0 %v22797_v55  ;;  %20559 = vmatprep.subr.mxu1 %v21580_v0 }
 0x964   : > { %20554 = vmatprep.subr.mxu0 %v21580_v0  ;;  %20560 = vmatpush3.msra.mxu1 %v22790_v20 }
 0x965   : > { %20555 = vmatpush3.msra.mxu0 %v22806_v32  ;;  %20556 = vmatprep.mubr.msk.f32.mxu0 %vm21581_vm0, %v21580_v0  ;;  %v9551_v32 = vmul.f32 %v21442_v6, %v9550_v22 }
 0x966   : > { %20561 = vmatprep.subr.mxu1 %v21580_v0  ;;  %20557 = vmatmul.mubr.f32.vlgmr.msra.gmra.mxu0 %v21800_v10 }
 0x967   : > { %20562 = vmatpush3.msra.mxu1 %v22800_v58  ;;  %20563 = vmatprep.mubr.msk.f32.mxu1 %vm21581_vm0, %v21580_v0 }
 0x968   : > { %20566 = vmatprep.subr.mxu0 %v21580_v0  ;;  %20564 = vmatmul.mubr.f32.vlgmr.msra.gmra.mxu1 %v21803_v13 }
 0x969   : > { %20567 = vmatpush3.msra.mxu0 %v9668_v1  ;;  %20573 = vmatprep.subr.mxu1 %v21580_v0 }
 0x96a   : > { %20568 = vmatprep.subr.mxu0 %v21580_v0  ;;  %20574 = vmatpush3.msra.mxu1 %v22790_v20 }
 0x96b   : > { %20569 = vmatpush3.msra.mxu0 %v9675_v42  ;;  %20570 = vmatprep.mubr.msk.f32.mxu0 %vm21581_vm0, %v21580_v0  ;;  %v22896_v42 = vld [vmem:[%s21871_s29 + $0x20] sm:$0xff] }
 0x96c   : > { %20575 = vmatprep.subr.mxu1 %v21580_v0  ;;  %20571 = vmatmul.mubr.f32.vlgmr.msra.gmra.mxu0 %v21794_v7 }
 0x96d   : > { %20576 = vmatpush3.msra.mxu1 %v22800_v58  ;;  %20577 = vmatprep.mubr.msk.f32.mxu1 %vm21581_vm0, %v21580_v0 }
 0x96e   : > { %20578 = vmatmul.mubr.f32.vlgmr.msra.gmra.mxu1 %v21794_v7  ;;  %20587 = vmatprep.subr.mxu1 %v21580_v0 }
 0x96f   : > { %20588 = vmatpush3.msra.mxu1 %v21860_v29  ;;  %20591 = vmatprep.mubr.msk.f32.mxu1 %vm21581_vm0, %v21580_v0 }
 0x970   : > { %20589 = vmatprep.subr.mxu1 %v21580_v0  ;;  %20580 = vmatprep.subr.mxu0 %v21580_v0 }
 0x971   : > { %20590 = vmatpush3.msra.mxu1 %v21865_v31  ;;  %20581 = vmatpush3.msra.mxu0 %v21838_v21 }
 0x972   : > { %20601 = vmatprep.subr.mxu1 %v21580_v0  ;;  %20582 = vmatprep.subr.mxu0 %v21580_v0 }
 0x973   : > { %20583 = vmatpush3.msra.mxu0 %v21843_v24  ;;  %20584 = vmatprep.mubr.msk.f32.mxu0 %vm21581_vm0, %v21580_v0 }
 0x974   : > { %20594 = vmatprep.subr.mxu0 %v21580_v0 }
 0xa0e   : > { %v9227_v56 = vpop.f32.mrf.mxu1 }
 0xa10   : > { %v20509_v59 = vpop.f32.mrf.mxu1 }
 0xa11   : > { %v22906_v59 = vand.u32 4294901760, %v22896_v42 }
 0xa12   : > { %v9378_v18 = vpop.f32.mrf.mxu1 }
 0xa14   : > { %v20523_v50 = vpop.f32.mrf.mxu1 }
 0xa16   : > { %v9146_v34 = vpop.f32.mrf.mxu0  ;;  %v9528_v60 = vpop.f32.mrf.mxu1 }
 0xa17   : > { %v9228_v61 = vadd.f32 %v9227_v56, %v9146_v34 }
 0xa18   : > { %v20502_v62 = vpop.f32.mrf.mxu0  ;;  %v20537_v44 = vpop.f32.mrf.mxu1 }
 0xa1a   : > { %v9303_v63 = vpop.f32.mrf.mxu0 }
 0xa1b   : > { %v9304_v3 = vadd.f32 %v9303_v63, %v9228_v61 }
 0xa1c   : > { %v20516_v4 = vpop.f32.mrf.mxu0 }
 0xa1d   : > { %v9379_v5 = vadd.f32 %v9378_v18, %v9304_v3 }
 0xa1e   : > { %v9455_v8 = vpop.f32.mrf.mxu0 }
 0xa1f   : > { %v9456_v9 = vadd.f32 %v9455_v8, %v9379_v5 }
 0xa20   : > { %v20530_v11 = vpop.f32.mrf.mxu0 }
 0xa21   : > { %v9529_v14 = vadd.f32 %v9528_v60, %v9456_v9  ;;  %v9714_v15 = vpop.f32.mrf.mxu1 }
 0xa22   : > { %v9633_v16 = vpop.f32.mrf.mxu0 }
 0xa23   : > { %v9537_v38 = vsub.f32 %v9529_v14, %v22583_v41  ;;  %v20551_v40 = vpop.f32.mrf.mxu1  ;;  %v9715_v57 = vadd.f32 %v9714_v15, %v9633_v16  ;;  %v22893_v41 = vand.u32 4294901760, %v22890_v2 }
 0xa24   : > { %v20544_v20 = vpop.f32.mrf.mxu0 }
 0xa25   : > { %v9540_v53 = vmul.f32 2.0, %v9537_v38  ;;  %v22903_v56 = vsub.f32 %v22890_v2, %v22893_v41 }
 0xa26   : > { %v9790_v39 = vpop.f32.mrf.mxu0 }
 0xa27   : > { %v9541_v55 = vadd.f32 0.0009, %v9540_v53  ;;  %v9791_v58 = vadd.f32 %v9790_v39, %v9715_v57  ;;  %v10589_v60 = vand.u32 4294901760, %v22903_v56 }
 0xa28   : > { %v9865_v27 = vpop.f32.mrf.mxu1  ;;  %v20558_v45 = vpop.f32.mrf.mxu0 }
 0xa29   : > { %v9542_v46 = vmul.f32 %v9541_v55, %v9539_v48  ;;  %v9866_v1 = vadd.f32 %v9865_v27, %v9791_v58  ;;  %v10590_v44 = vsub.f32 %v22903_v56, %v10589_v60 }
 0xa2a   : > { %v20565_v33 = vpop.f32.mrf.mxu1 }
 0xa2b   : > { %v9552_v35 = vmul.f32 %v9551_v32, %v9542_v46  ;;  %v10591_v5 = vand.u32 4294901760, %v10590_v44 }
 0xa2c   : > { %v9942_v36 = vpop.f32.mrf.mxu0 }
 0xa2d   : > { %v9943_v43 = vadd.f32 %v9942_v36, %v9866_v1  ;;  %v22899_v49 = vadd.f32 %v9552_v35, %v22386_v37  ;;  %v22912_v37 = vsub.f32 %v22896_v42, %v22906_v59  ;;  %v11403_v35 = vmul.f32 %v22785_v30, %v22785_v30 }
 0xa2e   : > { %v10015_v51 = vpop.f32.mrf.mxu1  ;;  %v20572_v52 = vpop.f32.mrf.mxu0 }
 0xa2f   : > { %v10016_v54 = vadd.f32 %v10015_v51, %v9943_v43  ;;  %v10596_v63 = vand.u32 4294901760, %v22912_v37 }
 0xa30   : > { %v20579_v18 = vpop.f32.mrf.mxu1 }
 0xa31   : > { %v10020_v50 = vsel %vm279_vm1, %v10016_v54, 0  ;;  %v10597_v6 = vsub.f32 %v22912_v37, %v10596_v63  ;;  %v22995_v54 = vand.u32 4294901760, %v11403_v35 }
 0xa32   : > { %v10089_v34 = vand.u32 4294901760, %v10020_v50 }
 0xa33   : > { %v10598_v8 = vand.u32 4294901760, %v10597_v6 }
 0xa34   : > { %v10090_v61 = vsub.f32 %v10020_v50, %v10089_v34  ;;  %20592 = vmatmul.mubr.f32.vlgmr.msra.gmra.mxu1 %v10089_v34 }
 0xa35   : > { %20602 = vmatpush3.msra.mxu1 %v21838_v21  ;;  %20605 = vmatprep.mubr.msk.f32.mxu1 %vm21581_vm0, %v21580_v0 }
 0xa36   : > { %v10091_v62 = vand.u32 4294901760, %v10090_v61  ;;  %20603 = vmatprep.subr.mxu1 %v21580_v0 }
 0xa37   : > { %20604 = vmatpush3.msra.mxu1 %v21843_v24 }
 0xa38   : > { %v10092_v3 = vsub.f32 %v10090_v61, %v10091_v62  ;;  %20606 = vmatmul.mubr.f32.vlgmr.msra.gmra.mxu1 %v10091_v62  ;;  %20615 = vmatprep.subr.mxu1 %v21580_v0 }
 0xa39   : > { %20616 = vmatpush3.msra.mxu1 %v21838_v21  ;;  %20619 = vmatprep.mubr.msk.f32.mxu1 %vm21581_vm0, %v21580_v0 }
 0xa3a   : > { %v10093_v4 = vand.u32 4294901760, %v10092_v3  ;;  %20617 = vmatprep.subr.mxu1 %v21580_v0 }
 0xa3b   : > { %20618 = vmatpush3.msra.mxu1 %v21843_v24 }
 0xa3c   : > { %20585 = vmatmul.mubr.f32.vlgmr.msra.gmra.mxu0 %v10093_v4  ;;  %20620 = vmatmul.mubr.f32.vlgmr.msra.gmra.mxu1 %v10089_v34 }
 0xa3d   : > { %20595 = vmatpush3.msra.mxu0 %v21841_v23  ;;  %20598 = vmatprep.mubr.msk.f32.mxu0 %vm21581_vm0, %v21580_v0 }
 0xa3e   : > { %20596 = vmatprep.subr.mxu0 %v21580_v0  ;;  %20629 = vmatprep.subr.mxu1 %v21580_v0 }
 0xa3f   : > { %20597 = vmatpush3.msra.mxu0 %v21851_v26  ;;  %20630 = vmatpush3.msra.mxu1 %v10591_v5 }
 0xa40   : > { %20599 = vmatmul.mubr.f32.vlgmr.msra.gmra.mxu0 %v10090_v61  ;;  %20608 = vmatprep.subr.mxu0 %v21580_v0 }
 0xa41   : > { %20609 = vmatpush3.msra.mxu0 %v21848_v25  ;;  %20612 = vmatprep.mubr.msk.f32.mxu0 %vm21581_vm0, %v21580_v0 }
 0xa42   : > { %20610 = vmatprep.subr.mxu0 %v21580_v0  ;;  %20631 = vmatprep.subr.mxu1 %v21580_v0 }
 0xa43   : > { %20611 = vmatpush3.msra.mxu0 %v21858_v28  ;;  %20632 = vmatpush3.msra.mxu1 %v10598_v8 }
 0xa44   : > { %20613 = vmatmul.mubr.f32.vlgmr.msra.gmra.mxu0 %v10089_v34  ;;  %20622 = vmatprep.subr.mxu0 %v21580_v0 }
 0xa45   : > { %20623 = vmatpush3.msra.mxu0 %v22893_v41  ;;  %20626 = vmatprep.mubr.msk.f32.mxu0 %vm21581_vm0, %v21580_v0 }
 0xa46   : > { %20624 = vmatprep.subr.mxu0 %v21580_v0  ;;  %20633 = vmatprep.mubr.msk.f32.mxu1 %vm21581_vm0, %v21580_v0 }
 0xa47   : > { %20625 = vmatpush3.msra.mxu0 %v22906_v59  ;;  %20634 = vmatmul.mubr.f32.vlgmr.msra.gmra.mxu1 %v21794_v7 }
 0xa48   : > { %20627 = vmatmul.mubr.f32.vlgmr.msra.gmra.mxu0 %v21808_v19  ;;  %20636 = vmatprep.subr.mxu0 %v21580_v0 }
 0xa49   : > { %20637 = vmatpush3.msra.mxu0 %v22903_v56  ;;  %20643 = vmatprep.subr.mxu1 %v21580_v0  ;;  %v11402_v56 = vmul.f32 %v22793_v47, %v22793_v47 }
 0xa4a   : > { %20638 = vmatprep.subr.mxu0 %v21580_v0  ;;  %20644 = vmatpush3.msra.mxu1 %v22893_v41 }
 0xa4b   : > { %20639 = vmatpush3.msra.mxu0 %v22912_v37  ;;  %20640 = vmatprep.mubr.msk.f32.mxu0 %vm21581_vm0, %v21580_v0  ;;  %v23000_v37 = vsub.f32 %v11403_v35, %v22995_v54  ;;  %v23002_v61 = vand.u32 4294901760, %v11402_v56 }
 0xa4c   : > { %20645 = vmatprep.subr.mxu1 %v21580_v0  ;;  %20641 = vmatmul.mubr.f32.vlgmr.msra.gmra.mxu0 %v21800_v10 }
 0xa4d   : > { %20646 = vmatpush3.msra.mxu1 %v22906_v59  ;;  %20647 = vmatprep.mubr.msk.f32.mxu1 %vm21581_vm0, %v21580_v0  ;;  %v23007_v3 = vsub.f32 %v11402_v56, %v23002_v61 }
 0xa4e   : > { %20650 = vmatprep.subr.mxu0 %v21580_v0  ;;  %20648 = vmatmul.mubr.f32.vlgmr.msra.gmra.mxu1 %v21803_v13 }
 0xa4f   : > { %20651 = vmatpush3.msra.mxu0 %v10589_v60  ;;  %20657 = vmatprep.subr.mxu1 %v21580_v0  ;;  %v11519_v6 = vand.u32 4294901760, %v23007_v3 }
 0xa50   : > { %20652 = vmatprep.subr.mxu0 %v21580_v0  ;;  %20658 = vmatpush3.msra.mxu1 %v22893_v41 }
 0xa51   : > { %20653 = vmatpush3.msra.mxu0 %v10596_v63  ;;  %20654 = vmatprep.mubr.msk.f32.mxu0 %vm21581_vm0, %v21580_v0  ;;  %v11512_v63 = vand.u32 4294901760, %v23000_v37 }
 0xa52   : > { %20659 = vmatprep.subr.mxu1 %v21580_v0  ;;  %20655 = vmatmul.mubr.f32.vlgmr.msra.gmra.mxu0 %v21794_v7 }
 0xa53   : > { %20660 = vmatpush3.msra.mxu1 %v22906_v59  ;;  %20661 = vmatprep.mubr.msk.f32.mxu1 %vm21581_vm0, %v21580_v0  ;;  %v11513_v5 = vsub.f32 %v23000_v37, %v11512_v63 }
 0xa54   : > { %20662 = vmatmul.mubr.f32.vlgmr.msra.gmra.mxu1 %v21794_v7  ;;  %20671 = vmatprep.subr.mxu1 %v21580_v0 }
 0xa55   : > { %20672 = vmatpush3.msra.mxu1 %v21860_v29  ;;  %20675 = vmatprep.mubr.msk.f32.mxu1 %vm21581_vm0, %v21580_v0 }
 0xa56   : > { %20673 = vmatprep.subr.mxu1 %v21580_v0  ;;  %20664 = vmatprep.subr.mxu0 %v21580_v0 }
 0xa57   : > { %20674 = vmatpush3.msra.mxu1 %v21865_v31  ;;  %20665 = vmatpush3.msra.mxu0 %v21838_v21 }
 0xa58   : > { %20685 = vmatprep.subr.mxu1 %v21580_v0  ;;  %20666 = vmatprep.subr.mxu0 %v21580_v0 }
 0xa59   : > { %20667 = vmatpush3.msra.mxu0 %v21843_v24  ;;  %20668 = vmatprep.mubr.msk.f32.mxu0 %vm21581_vm0, %v21580_v0 }
 0xa5a   : > { %20678 = vmatprep.subr.mxu0 %v21580_v0 }
 0xaf4   : > { %v10176_v9 = vpop.f32.mrf.mxu1 }
 0xaf6   : > { %v20593_v11 = vpop.f32.mrf.mxu1 }
 0xaf7   : > { %v11514_v11 = vand.u32 4294901760, %v11513_v5 }
 0xaf8   : > { %v10327_v12 = vpop.f32.mrf.mxu1 }
 0xafa   : > { %v20607_v14 = vpop.f32.mrf.mxu1 }
 0xafc   : > { %v10095_v15 = vpop.f32.mrf.mxu0  ;;  %v10477_v16 = vpop.f32.mrf.mxu1 }
 0xafd   : > { %v10177_v17 = vadd.f32 %v10176_v9, %v10095_v15 }
 0xafe   : > { %v20586_v38 = vpop.f32.mrf.mxu0  ;;  %v20621_v40 = vpop.f32.mrf.mxu1 }
 0xb00   : > { %v10252_v20 = vpop.f32.mrf.mxu0 }
 0xb01   : > { %v10253_v22 = vadd.f32 %v10252_v20, %v10177_v17 }
 0xb02   : > { %v20600_v53 = vpop.f32.mrf.mxu0 }
 0xb03   : > { %v10328_v57 = vadd.f32 %v10327_v12, %v10253_v22  ;;  %v11520_v12 = vsub.f32 %v23007_v3, %v11519_v6 }
 0xb04   : > { %v10404_v39 = vpop.f32.mrf.mxu0 }
 0xb05   : > { %v10405_v48 = vadd.f32 %v10404_v39, %v10328_v57  ;;  %v11521_v14 = vand.u32 4294901760, %v11520_v12 }
 0xb06   : > { %v20614_v55 = vpop.f32.mrf.mxu0 }
 0xb07   : > { %v22991_v58 = vadd.f32 %v10477_v16, %v10405_v48  ;;  %v10635_v27 = vpop.f32.mrf.mxu1 }
 0xb08   : > { %v10554_v45 = vpop.f32.mrf.mxu0 }
 0xb09   : > { %v20635_v46 = vpop.f32.mrf.mxu1  ;;  %v10636_v32 = vadd.f32 %v10635_v27, %v10554_v45  ;;  %v23088_v35 = vmul.f32 %v22991_v58, %v22991_v58 }
 0xb0a   : > { %v20628_v1 = vpop.f32.mrf.mxu0 }
 0xb0c   : > { %v10711_v33 = vpop.f32.mrf.mxu0 }
 0xb0d   : > { %v10712_v41 = vadd.f32 %v10711_v33, %v10636_v32 }
 0xb0e   : > { %v10786_v36 = vpop.f32.mrf.mxu1  ;;  %v20642_v43 = vpop.f32.mrf.mxu0 }
 0xb0f   : > { %v10787_v51 = vadd.f32 %v10786_v36, %v10712_v41 }
 0xb10   : > { %v20649_v52 = vpop.f32.mrf.mxu1 }
 0xb12   : > { %v10863_v59 = vpop.f32.mrf.mxu0 }
 0xb13   : > { %v10864_v18 = vadd.f32 %v10863_v59, %v10787_v51 }
 0xb14   : > { %v10936_v50 = vpop.f32.mrf.mxu1  ;;  %v20656_v34 = vpop.f32.mrf.mxu0 }
 0xb15   : > { %v10937_v60 = vadd.f32 %v10936_v50, %v10864_v18  ;;  %v12326_v50 = vmul.f32 %v22890_v2, %v22890_v2 }
 0xb16   : > { %v20663_v30 = vpop.f32.mrf.mxu1 }
 0xb17   : > { %v10941_v62 = vsel %vm279_vm1, %v10937_v60, 0  ;;  %v23101_v30 = vand.u32 4294901760, %v12326_v50 }
 0xb18   : > { %v11010_v44 = vand.u32 4294901760, %v10941_v62 }
 0xb1a   : > { %v11011_v47 = vsub.f32 %v10941_v62, %v11010_v44  ;;  %20676 = vmatmul.mubr.f32.vlgmr.msra.gmra.mxu1 %v11010_v44 }
 0xb1b   : > { %20686 = vmatpush3.msra.mxu1 %v21838_v21  ;;  %20689 = vmatprep.mubr.msk.f32.mxu1 %vm21581_vm0, %v21580_v0 }
 0xb1c   : > { %v11012_v4 = vand.u32 4294901760, %v11011_v47  ;;  %20687 = vmatprep.subr.mxu1 %v21580_v0 }
 0xb1d   : > { %20688 = vmatpush3.msra.mxu1 %v21843_v24 }
 0xb1e   : > { %v11013_v8 = vsub.f32 %v11011_v47, %v11012_v4  ;;  %20690 = vmatmul.mubr.f32.vlgmr.msra.gmra.mxu1 %v11012_v4  ;;  %20699 = vmatprep.subr.mxu1 %v21580_v0  ;;  %v23106_v4 = vsub.f32 %v12326_v50, %v23101_v30 }
 0xb1f   : > { %20700 = vmatpush3.msra.mxu1 %v21838_v21  ;;  %20703 = vmatprep.mubr.msk.f32.mxu1 %vm21581_vm0, %v21580_v0 }
 0xb20   : > { %v11014_v9 = vand.u32 4294901760, %v11013_v8  ;;  %20701 = vmatprep.subr.mxu1 %v21580_v0 }
 0xb21   : > { %20702 = vmatpush3.msra.mxu1 %v21843_v24 }
 0xb22   : > { %20669 = vmatmul.mubr.f32.vlgmr.msra.gmra.mxu0 %v11014_v9  ;;  %20704 = vmatmul.mubr.f32.vlgmr.msra.gmra.mxu1 %v11010_v44 }
 0xb23   : > { %20679 = vmatpush3.msra.mxu0 %v21841_v23  ;;  %20682 = vmatprep.mubr.msk.f32.mxu0 %vm21581_vm0, %v21580_v0 }
 0xb24   : > { %20680 = vmatprep.subr.mxu0 %v21580_v0  ;;  %20713 = vmatprep.subr.mxu1 %v21580_v0 }
 0xb25   : > { %20681 = vmatpush3.msra.mxu0 %v21851_v26  ;;  %20714 = vmatpush3.msra.mxu1 %v11514_v11  ;;  %v12435_v11 = vand.u32 4294901760, %v23106_v4 }
 0xb26   : > { %20683 = vmatmul.mubr.f32.vlgmr.msra.gmra.mxu0 %v11011_v47  ;;  %20692 = vmatprep.subr.mxu0 %v21580_v0 }
 0xb27   : > { %20693 = vmatpush3.msra.mxu0 %v21848_v25  ;;  %20696 = vmatprep.mubr.msk.f32.mxu0 %vm21581_vm0, %v21580_v0 }
 0xb28   : > { %20694 = vmatprep.subr.mxu0 %v21580_v0  ;;  %20715 = vmatprep.subr.mxu1 %v21580_v0 }
 0xb29   : > { %20695 = vmatpush3.msra.mxu0 %v21858_v28  ;;  %20716 = vmatpush3.msra.mxu1 %v11521_v14 }
 0xb2a   : > { %20697 = vmatmul.mubr.f32.vlgmr.msra.gmra.mxu0 %v11010_v44  ;;  %20706 = vmatprep.subr.mxu0 %v21580_v0 }
 0xb2b   : > { %20707 = vmatpush3.msra.mxu0 %v22995_v54  ;;  %20710 = vmatprep.mubr.msk.f32.mxu0 %vm21581_vm0, %v21580_v0 }
 0xb2c   : > { %20708 = vmatprep.subr.mxu0 %v21580_v0  ;;  %20717 = vmatprep.mubr.msk.f32.mxu1 %vm21581_vm0, %v21580_v0 }
 0xb2d   : > { %20709 = vmatpush3.msra.mxu0 %v23002_v61  ;;  %20718 = vmatmul.mubr.f32.vlgmr.msra.gmra.mxu1 %v21794_v7 }
 0xb2e   : > { %20711 = vmatmul.mubr.f32.vlgmr.msra.gmra.mxu0 %v21808_v19  ;;  %20720 = vmatprep.subr.mxu0 %v21580_v0 }
 0xb2f   : > { %20721 = vmatpush3.msra.mxu0 %v23000_v37  ;;  %20727 = vmatprep.subr.mxu1 %v21580_v0 }
 0xb30   : > { %20722 = vmatprep.subr.mxu0 %v21580_v0  ;;  %20728 = vmatpush3.msra.mxu1 %v22995_v54 }
 0xb31   : > { %20723 = vmatpush3.msra.mxu0 %v23007_v3  ;;  %20724 = vmatprep.mubr.msk.f32.mxu0 %vm21581_vm0, %v21580_v0 }
 0xb32   : > { %20729 = vmatprep.subr.mxu1 %v21580_v0  ;;  %20725 = vmatmul.mubr.f32.vlgmr.msra.gmra.mxu0 %v21800_v10 }
 0xb33   : > { %20730 = vmatpush3.msra.mxu1 %v23002_v61  ;;  %20731 = vmatprep.mubr.msk.f32.mxu1 %vm21581_vm0, %v21580_v0 }
 0xb34   : > { %20734 = vmatprep.subr.mxu0 %v21580_v0  ;;  %20732 = vmatmul.mubr.f32.vlgmr.msra.gmra.mxu1 %v21803_v13 }
 0xb35   : > { %20735 = vmatpush3.msra.mxu0 %v11512_v63  ;;  %20741 = vmatprep.subr.mxu1 %v21580_v0 }
 0xb36   : > { %20736 = vmatprep.subr.mxu0 %v21580_v0  ;;  %20742 = vmatpush3.msra.mxu1 %v22995_v54 }
 0xb37   : > { %20737 = vmatpush3.msra.mxu0 %v11519_v6  ;;  %20738 = vmatprep.mubr.msk.f32.mxu0 %vm21581_vm0, %v21580_v0 }
 0xb38   : > { %20743 = vmatprep.subr.mxu1 %v21580_v0  ;;  %20739 = vmatmul.mubr.f32.vlgmr.msra.gmra.mxu0 %v21794_v7 }
 0xb39   : > { %20744 = vmatpush3.msra.mxu1 %v23002_v61  ;;  %20745 = vmatprep.mubr.msk.f32.mxu1 %vm21581_vm0, %v21580_v0 }
 0xb3a   : > { %20746 = vmatmul.mubr.f32.vlgmr.msra.gmra.mxu1 %v21794_v7  ;;  %20755 = vmatprep.subr.mxu1 %v21580_v0 }
 0xb3b   : > { %20756 = vmatpush3.msra.mxu1 %v21860_v29  ;;  %20759 = vmatprep.mubr.msk.f32.mxu1 %vm21581_vm0, %v21580_v0 }
 0xb3c   : > { %20757 = vmatprep.subr.mxu1 %v21580_v0  ;;  %20748 = vmatprep.subr.mxu0 %v21580_v0 }
 0xb3d   : > { %20758 = vmatpush3.msra.mxu1 %v21865_v31  ;;  %20749 = vmatpush3.msra.mxu0 %v21838_v21 }
 0xb3e   : > { %20769 = vmatprep.subr.mxu1 %v21580_v0  ;;  %20750 = vmatprep.subr.mxu0 %v21580_v0 }
 0xb3f   : > { %20751 = vmatpush3.msra.mxu0 %v21843_v24  ;;  %20752 = vmatprep.mubr.msk.f32.mxu0 %vm21581_vm0, %v21580_v0 }
 0xb40   : > { %20762 = vmatprep.subr.mxu0 %v21580_v0 }
 0xbda   : > { %v11097_v15 = vpop.f32.mrf.mxu1 }
 0xbdc   : > { %v20677_v16 = vpop.f32.mrf.mxu1 }
 0xbdd   : > { %v12436_v16 = vsub.f32 %v23106_v4, %v12435_v11 }
 0xbde   : > { %v11248_v17 = vpop.f32.mrf.mxu1 }
 0xbe0   : > { %v20691_v38 = vpop.f32.mrf.mxu1 }
 0xbe2   : > { %v11016_v40 = vpop.f32.mrf.mxu0  ;;  %v11398_v20 = vpop.f32.mrf.mxu1 }
 0xbe3   : > { %v11098_v22 = vadd.f32 %v11097_v15, %v11016_v40 }
 0xbe4   : > { %v20670_v53 = vpop.f32.mrf.mxu0  ;;  %v20705_v57 = vpop.f32.mrf.mxu1 }
 0xbe6   : > { %v11173_v39 = vpop.f32.mrf.mxu0 }
 0xbe7   : > { %v11174_v48 = vadd.f32 %v11173_v39, %v11098_v22 }
 0xbe8   : > { %v20684_v55 = vpop.f32.mrf.mxu0 }
 0xbe9   : > { %v11249_v27 = vadd.f32 %v11248_v17, %v11174_v48 }
 0xbea   : > { %v11325_v45 = vpop.f32.mrf.mxu0 }
 0xbeb   : > { %v11326_v46 = vadd.f32 %v11325_v45, %v11249_v27 }
 0xbec   : > { %v20698_v1 = vpop.f32.mrf.mxu0 }
 0xbed   : > { %v11399_v32 = vadd.f32 %v11398_v20, %v11326_v46  ;;  %v11558_v33 = vpop.f32.mrf.mxu1  ;;  %v12437_v20 = vand.u32 4294901760, %v12436_v16 }
 0xbee   : > { %v11477_v41 = vpop.f32.mrf.mxu0 }
 0xbef   : > { %v23090_v36 = vmul.f32 %v11399_v32, %v11399_v32  ;;  %v23093_v43 = vmul.f32 %v11399_v32, %v22991_v58  ;;  %v20719_v51 = vpop.f32.mrf.mxu1  ;;  %v11559_v56 = vadd.f32 %v11558_v33, %v11477_v41  ;;  %v12325_v58 = vmul.f32 %v22896_v42, %v22896_v42 }
 0xbf0   : > { %v20712_v52 = vpop.f32.mrf.mxu0 }
 0xbf1   : > { %v23097_v54 = vadd.f32 %v23090_v36, %v23088_v35  ;;  %v23108_v5 = vand.u32 4294901760, %v12325_v58 }
 0xbf2   : > { %v11634_v59 = vpop.f32.mrf.mxu0 }
 0xbf3   : > { %v11635_v18 = vadd.f32 %v11634_v59, %v11559_v56  ;;  %v23113_v12 = vsub.f32 %v12325_v58, %v23108_v5 }
 0xbf4   : > { %v11709_v34 = vpop.f32.mrf.mxu1  ;;  %v20726_v60 = vpop.f32.mrf.mxu0 }
 0xbf5   : > { %v11710_v37 = vadd.f32 %v11709_v34, %v11635_v18  ;;  %v12442_v17 = vand.u32 4294901760, %v23113_v12 }
 0xbf6   : > { %v20733_v61 = vpop.f32.mrf.mxu1 }
 0xbf7   : > { %v12443_v22 = vsub.f32 %v23113_v12, %v12442_v17 }
 0xbf8   : > { %v11786_v62 = vpop.f32.mrf.mxu0 }
 0xbf9   : > { %v11787_v44 = vadd.f32 %v11786_v62, %v11710_v37  ;;  %v12444_v53 = vand.u32 4294901760, %v12443_v22 }
 0xbfa   : > { %v11859_v63 = vpop.f32.mrf.mxu1  ;;  %v20740_v3 = vpop.f32.mrf.mxu0 }
 0xbfb   : > { %v11860_v47 = vadd.f32 %v11859_v63, %v11787_v44  ;;  %v21449_v63 = vld [vmem:[%s21770_s18 + $0x28] sm:$0xff] }
 0xbfc   : > { %v20747_v6 = vpop.f32.mrf.mxu1  ;;  %v13249_v3 = vmul.f32 %v21449_v63, %v22890_v2 }
 0xbfd   : > { %v11864_v8 = vsel %vm279_vm1, %v11860_v47, 0 }
 0xbfe   : > { %v11933_v9 = vand.u32 4294901760, %v11864_v8 }
 0xc00   : > { %v11934_v14 = vsub.f32 %v11864_v8, %v11933_v9  ;;  %20760 = vmatmul.mubr.f32.vlgmr.msra.gmra.mxu1 %v11933_v9  ;;  %v23198_v8 = vand.u32 4294901760, %v13249_v3 }
 0xc01   : > { %20770 = vmatpush3.msra.mxu1 %v21838_v21  ;;  %20773 = vmatprep.mubr.msk.f32.mxu1 %vm21581_vm0, %v21580_v0 }
 0xc02   : > { %v11935_v15 = vand.u32 4294901760, %v11934_v14  ;;  %20771 = vmatprep.subr.mxu1 %v21580_v0 }
 0xc03   : > { %20772 = vmatpush3.msra.mxu1 %v21843_v24 }
 0xc04   : > { %v11936_v38 = vsub.f32 %v11934_v14, %v11935_v15  ;;  %20774 = vmatmul.mubr.f32.vlgmr.msra.gmra.mxu1 %v11935_v15  ;;  %20783 = vmatprep.subr.mxu1 %v21580_v0 }
 0xc05   : > { %20784 = vmatpush3.msra.mxu1 %v21838_v21  ;;  %20787 = vmatprep.mubr.msk.f32.mxu1 %vm21581_vm0, %v21580_v0 }
 0xc06   : > { %v11937_v40 = vand.u32 4294901760, %v11936_v38  ;;  %20785 = vmatprep.subr.mxu1 %v21580_v0  ;;  %v23203_v38 = vsub.f32 %v13249_v3, %v23198_v8 }
 0xc07   : > { %20786 = vmatpush3.msra.mxu1 %v21843_v24 }
 0xc08   : > { %20753 = vmatmul.mubr.f32.vlgmr.msra.gmra.mxu0 %v11937_v40  ;;  %20788 = vmatmul.mubr.f32.vlgmr.msra.gmra.mxu1 %v11933_v9 }
 0xc09   : > { %20763 = vmatpush3.msra.mxu0 %v21841_v23  ;;  %20766 = vmatprep.mubr.msk.f32.mxu0 %vm21581_vm0, %v21580_v0 }
 0xc0a   : > { %20764 = vmatprep.subr.mxu0 %v21580_v0  ;;  %20797 = vmatprep.subr.mxu1 %v21580_v0 }
 0xc0b   : > { %20765 = vmatpush3.msra.mxu0 %v21851_v26  ;;  %20798 = vmatpush3.msra.mxu1 %v12437_v20 }
 0xc0c   : > { %20767 = vmatmul.mubr.f32.vlgmr.msra.gmra.mxu0 %v11934_v14  ;;  %20776 = vmatprep.subr.mxu0 %v21580_v0 }
 0xc0d   : > { %20777 = vmatpush3.msra.mxu0 %v21848_v25  ;;  %20780 = vmatprep.mubr.msk.f32.mxu0 %vm21581_vm0, %v21580_v0 }
 0xc0e   : > { %20778 = vmatprep.subr.mxu0 %v21580_v0  ;;  %20799 = vmatprep.subr.mxu1 %v21580_v0 }
 0xc0f   : > { %20779 = vmatpush3.msra.mxu0 %v21858_v28  ;;  %20800 = vmatpush3.msra.mxu1 %v12444_v53  ;;  %v13358_v53 = vand.u32 4294901760, %v23203_v38 }
 0xc10   : > { %20781 = vmatmul.mubr.f32.vlgmr.msra.gmra.mxu0 %v11933_v9  ;;  %20790 = vmatprep.subr.mxu0 %v21580_v0  ;;  %v21450_v9 = vld [vmem:[%s21770_s18 + $0x20] sm:$0xff] }
 0xc11   : > { %20791 = vmatpush3.msra.mxu0 %v23101_v30  ;;  %20794 = vmatprep.mubr.msk.f32.mxu0 %vm21581_vm0, %v21580_v0 }
 0xc12   : > { %20792 = vmatprep.subr.mxu0 %v21580_v0  ;;  %20801 = vmatprep.mubr.msk.f32.mxu1 %vm21581_vm0, %v21580_v0 }
 0xc13   : > { %20793 = vmatpush3.msra.mxu0 %v23108_v5  ;;  %20802 = vmatmul.mubr.f32.vlgmr.msra.gmra.mxu1 %v21794_v7 }
 0xc14   : > { %20795 = vmatmul.mubr.f32.vlgmr.msra.gmra.mxu0 %v21808_v19  ;;  %20804 = vmatprep.subr.mxu0 %v21580_v0 }
 0xc15   : > { %20805 = vmatpush3.msra.mxu0 %v23106_v4  ;;  %20811 = vmatprep.subr.mxu1 %v21580_v0 }
 0xc16   : > { %20806 = vmatprep.subr.mxu0 %v21580_v0  ;;  %20812 = vmatpush3.msra.mxu1 %v23101_v30 }
 0xc17   : > { %20807 = vmatpush3.msra.mxu0 %v23113_v12  ;;  %20808 = vmatprep.mubr.msk.f32.mxu0 %vm21581_vm0, %v21580_v0 }
 0xc18   : > { %20813 = vmatprep.subr.mxu1 %v21580_v0  ;;  %20809 = vmatmul.mubr.f32.vlgmr.msra.gmra.mxu0 %v21800_v10 }
 0xc19   : > { %20814 = vmatpush3.msra.mxu1 %v23108_v5  ;;  %20815 = vmatprep.mubr.msk.f32.mxu1 %vm21581_vm0, %v21580_v0 }
 0xc1a   : > { %20818 = vmatprep.subr.mxu0 %v21580_v0  ;;  %20816 = vmatmul.mubr.f32.vlgmr.msra.gmra.mxu1 %v21803_v13 }
 0xc1b   : > { %20819 = vmatpush3.msra.mxu0 %v12435_v11  ;;  %20825 = vmatprep.subr.mxu1 %v21580_v0  ;;  %v13248_v11 = vmul.f32 %v21450_v9, %v22896_v42 }
 0xc1c   : > { %20820 = vmatprep.subr.mxu0 %v21580_v0  ;;  %20826 = vmatpush3.msra.mxu1 %v23101_v30 }
 0xc1d   : > { %20821 = vmatpush3.msra.mxu0 %v12442_v17  ;;  %20822 = vmatprep.mubr.msk.f32.mxu0 %vm21581_vm0, %v21580_v0  ;;  %v23205_v40 = vand.u32 4294901760, %v13248_v11 }
 0xc1e   : > { %20827 = vmatprep.subr.mxu1 %v21580_v0  ;;  %20823 = vmatmul.mubr.f32.vlgmr.msra.gmra.mxu0 %v21794_v7 }
 0xc1f   : > { %20828 = vmatpush3.msra.mxu1 %v23108_v5  ;;  %20829 = vmatprep.mubr.msk.f32.mxu1 %vm21581_vm0, %v21580_v0 }
 0xc20   : > { %20830 = vmatmul.mubr.f32.vlgmr.msra.gmra.mxu1 %v21794_v7  ;;  %20839 = vmatprep.subr.mxu1 %v21580_v0 }
 0xc21   : > { %20840 = vmatpush3.msra.mxu1 %v21860_v29  ;;  %20843 = vmatprep.mubr.msk.f32.mxu1 %vm21581_vm0, %v21580_v0 }
 0xc22   : > { %20841 = vmatprep.subr.mxu1 %v21580_v0  ;;  %20832 = vmatprep.subr.mxu0 %v21580_v0 }
 0xc23   : > { %20842 = vmatpush3.msra.mxu1 %v21865_v31  ;;  %20833 = vmatpush3.msra.mxu0 %v21838_v21 }
 0xc24   : > { %20853 = vmatprep.subr.mxu1 %v21580_v0  ;;  %20834 = vmatprep.subr.mxu0 %v21580_v0 }
 0xc25   : > { %20835 = vmatpush3.msra.mxu0 %v21843_v24  ;;  %20836 = vmatprep.mubr.msk.f32.mxu0 %vm21581_vm0, %v21580_v0 }
 0xc26   : > { %20846 = vmatprep.subr.mxu0 %v21580_v0 }
 0xcc0   : > { %v12020_v57 = vpop.f32.mrf.mxu1 }
 0xcc2   : > { %v20761_v39 = vpop.f32.mrf.mxu1 }
 0xcc4   : > { %v12171_v48 = vpop.f32.mrf.mxu1 }
 0xcc6   : > { %v20775_v55 = vpop.f32.mrf.mxu1 }
 0xcc8   : > { %v11939_v27 = vpop.f32.mrf.mxu0  ;;  %v12321_v45 = vpop.f32.mrf.mxu1 }
 0xcc9   : > { %v12021_v46 = vadd.f32 %v12020_v57, %v11939_v27  ;;  %v23210_v57 = vsub.f32 %v13248_v11, %v23205_v40 }
 0xcca   : > { %v20754_v1 = vpop.f32.mrf.mxu0  ;;  %v20789_v32 = vpop.f32.mrf.mxu1 }
 0xccb   : > { %v13365_v55 = vand.u32 4294901760, %v23210_v57 }
 0xccc   : > { %v12096_v33 = vpop.f32.mrf.mxu0 }
 0xccd   : > { %v12097_v41 = vadd.f32 %v12096_v33, %v12021_v46  ;;  %v13366_v1 = vsub.f32 %v23210_v57, %v13365_v55 }
 0xcce   : > { %v20768_v51 = vpop.f32.mrf.mxu0 }
 0xccf   : > { %v12172_v52 = vadd.f32 %v12171_v48, %v12097_v41  ;;  %v13359_v48 = vsub.f32 %v23203_v38, %v13358_v53  ;;  %v13367_v32 = vand.u32 4294901760, %v13366_v1 }
 0xcd0   : > { %v12248_v56 = vpop.f32.mrf.mxu0 }
 0xcd1   : > { %v12249_v59 = vadd.f32 %v12248_v56, %v12172_v52  ;;  %v13360_v46 = vand.u32 4294901760, %v13359_v48 }
 0xcd2   : > { %v20782_v18 = vpop.f32.mrf.mxu0 }
 0xcd3   : > { %v23192_v50 = vadd.f32 %v12321_v45, %v12249_v59  ;;  %v12481_v34 = vpop.f32.mrf.mxu1 }
 0xcd4   : > { %v12400_v60 = vpop.f32.mrf.mxu0 }
 0xcd5   : > { %v14174_v37 = vsub.f32 %v23192_v50, %v23088_v35  ;;  %v20803_v61 = vpop.f32.mrf.mxu1  ;;  %v12482_v58 = vadd.f32 %v12481_v34, %v12400_v60  ;;  %v23303_v35 = vld [vmem:[%s21770_s18 + $0x30] sm:$0xff] }
 0xcd6   : > { %v20796_v30 = vpop.f32.mrf.mxu0  ;;  %v23310_v48 = vand.u32 4294901760, %v23303_v35 }
 0xcd8   : > { %v12557_v62 = vpop.f32.mrf.mxu0  ;;  %v23316_v1 = vsub.f32 %v23303_v35, %v23310_v48 }
 0xcd9   : > { %v12558_v44 = vadd.f32 %v12557_v62, %v12482_v58 }
 0xcda   : > { %v12632_v47 = vpop.f32.mrf.mxu1  ;;  %v20810_v4 = vpop.f32.mrf.mxu0 }
 0xcdb   : > { %v12633_v5 = vadd.f32 %v12632_v47, %v12558_v44 }
 0xcdc   : > { %v20817_v6 = vpop.f32.mrf.mxu1 }
 0xcde   : > { %v12709_v12 = vpop.f32.mrf.mxu0 }
 0xcdf   : > { %v12710_v14 = vadd.f32 %v12709_v12, %v12633_v5 }
 0xce0   : > { %v12782_v15 = vpop.f32.mrf.mxu1  ;;  %v20824_v16 = vpop.f32.mrf.mxu0 }
 0xce1   : > { %v12783_v17 = vadd.f32 %v12782_v15, %v12710_v14  ;;  %v14183_v15 = vadd.f32 0.0001, %v23097_v54 }
 0xce2   : > { %v20831_v2 = vpop.f32.mrf.mxu1 }
 0xce3   : > { %v12787_v20 = vsel %vm279_vm1, %v12783_v17, 0  ;;  %v23295_v2 = vld [vmem:[%s21770_s18 + $0x38] sm:$0xff] }
 0xce4   : > { %v12856_v22 = vand.u32 4294901760, %v12787_v20 }
 0xce6   : > { %v12857_v42 = vsub.f32 %v12787_v20, %v12856_v22  ;;  %20844 = vmatmul.mubr.f32.vlgmr.msra.gmra.mxu1 %v12856_v22 }
 0xce7   : > { %20854 = vmatpush3.msra.mxu1 %v21838_v21  ;;  %20857 = vmatprep.mubr.msk.f32.mxu1 %vm21581_vm0, %v21580_v0 }
 0xce8   : > { %v12858_v39 = vand.u32 4294901760, %v12857_v42  ;;  %20855 = vmatprep.subr.mxu1 %v21580_v0 }
 0xce9   : > { %20856 = vmatpush3.msra.mxu1 %v21843_v24 }
 0xcea   : > { %v12859_v27 = vsub.f32 %v12857_v42, %v12858_v39  ;;  %20858 = vmatmul.mubr.f32.vlgmr.msra.gmra.mxu1 %v12858_v39  ;;  %20867 = vmatprep.subr.mxu1 %v21580_v0 }
 0xceb   : > { %20868 = vmatpush3.msra.mxu1 %v21838_v21  ;;  %20871 = vmatprep.mubr.msk.f32.mxu1 %vm21581_vm0, %v21580_v0 }
 0xcec   : > { %v12860_v45 = vand.u32 4294901760, %v12859_v27  ;;  %20869 = vmatprep.subr.mxu1 %v21580_v0 }
 0xced   : > { %20870 = vmatpush3.msra.mxu1 %v21843_v24 }
 0xcee   : > { %20837 = vmatmul.mubr.f32.vlgmr.msra.gmra.mxu0 %v12860_v45  ;;  %20872 = vmatmul.mubr.f32.vlgmr.msra.gmra.mxu1 %v12856_v22 }
 0xcef   : > { %20847 = vmatpush3.msra.mxu0 %v21841_v23  ;;  %20850 = vmatprep.mubr.msk.f32.mxu0 %vm21581_vm0, %v21580_v0 }
 0xcf0   : > { %20848 = vmatprep.subr.mxu0 %v21580_v0  ;;  %20881 = vmatprep.subr.mxu1 %v21580_v0 }
 0xcf1   : > { %20849 = vmatpush3.msra.mxu0 %v21851_v26  ;;  %20882 = vmatpush3.msra.mxu1 %v13360_v46 }
 0xcf2   : > { %20851 = vmatmul.mubr.f32.vlgmr.msra.gmra.mxu0 %v12857_v42  ;;  %20860 = vmatprep.subr.mxu0 %v21580_v0 }
 0xcf3   : > { %20861 = vmatpush3.msra.mxu0 %v21848_v25  ;;  %20864 = vmatprep.mubr.msk.f32.mxu0 %vm21581_vm0, %v21580_v0 }
 0xcf4   : > { %20862 = vmatprep.subr.mxu0 %v21580_v0  ;;  %20883 = vmatprep.subr.mxu1 %v21580_v0 }
 0xcf5   : > { %20863 = vmatpush3.msra.mxu0 %v21858_v28  ;;  %20884 = vmatpush3.msra.mxu1 %v13367_v32 }
 0xcf6   : > { %20865 = vmatmul.mubr.f32.vlgmr.msra.gmra.mxu0 %v12856_v22  ;;  %20874 = vmatprep.subr.mxu0 %v21580_v0 }
 0xcf7   : > { %20875 = vmatpush3.msra.mxu0 %v23198_v8  ;;  %20878 = vmatprep.mubr.msk.f32.mxu0 %vm21581_vm0, %v21580_v0 }
 0xcf8   : > { %20876 = vmatprep.subr.mxu0 %v21580_v0  ;;  %20885 = vmatprep.mubr.msk.f32.mxu1 %vm21581_vm0, %v21580_v0 }
 0xcf9   : > { %20877 = vmatpush3.msra.mxu0 %v23205_v40  ;;  %20886 = vmatmul.mubr.f32.vlgmr.msra.gmra.mxu1 %v21794_v7 }
 0xcfa   : > { %20879 = vmatmul.mubr.f32.vlgmr.msra.gmra.mxu0 %v21808_v19  ;;  %20888 = vmatprep.subr.mxu0 %v21580_v0 }
 0xcfb   : > { %20889 = vmatpush3.msra.mxu0 %v23203_v38  ;;  %20895 = vmatprep.subr.mxu1 %v21580_v0 }
 0xcfc   : > { %20890 = vmatprep.subr.mxu0 %v21580_v0  ;;  %20896 = vmatpush3.msra.mxu1 %v23198_v8 }
 0xcfd   : > { %20891 = vmatpush3.msra.mxu0 %v23210_v57  ;;  %20892 = vmatprep.mubr.msk.f32.mxu0 %vm21581_vm0, %v21580_v0 }
 0xcfe   : > { %20897 = vmatprep.subr.mxu1 %v21580_v0  ;;  %20893 = vmatmul.mubr.f32.vlgmr.msra.gmra.mxu0 %v21800_v10 }
 0xcff   : > { %20898 = vmatpush3.msra.mxu1 %v23205_v40  ;;  %20899 = vmatprep.mubr.msk.f32.mxu1 %vm21581_vm0, %v21580_v0 }
 0xd00   : > { %20902 = vmatprep.subr.mxu0 %v21580_v0  ;;  %20900 = vmatmul.mubr.f32.vlgmr.msra.gmra.mxu1 %v21803_v13 }
 0xd01   : > { %20903 = vmatpush3.msra.mxu0 %v13358_v53  ;;  %20909 = vmatprep.subr.mxu1 %v21580_v0  ;;  %v23300_v53 = vand.u32 4294901760, %v23295_v2 }
 0xd02   : > { %20904 = vmatprep.subr.mxu0 %v21580_v0  ;;  %20910 = vmatpush3.msra.mxu1 %v23198_v8 }
 0xd03   : > { %20905 = vmatpush3.msra.mxu0 %v13365_v55  ;;  %20906 = vmatprep.mubr.msk.f32.mxu0 %vm21581_vm0, %v21580_v0  ;;  %v23307_v39 = vsub.f32 %v23295_v2, %v23300_v53 }
 0xd04   : > { %20911 = vmatprep.subr.mxu1 %v21580_v0  ;;  %20907 = vmatmul.mubr.f32.vlgmr.msra.gmra.mxu0 %v21794_v7 }
 0xd05   : > { %20912 = vmatpush3.msra.mxu1 %v23205_v40  ;;  %20913 = vmatprep.mubr.msk.f32.mxu1 %vm21581_vm0, %v21580_v0  ;;  %v14307_v46 = vand.u32 4294901760, %v23307_v39 }
 0xd06   : > { %20914 = vmatmul.mubr.f32.vlgmr.msra.gmra.mxu1 %v21794_v7  ;;  %20923 = vmatprep.subr.mxu1 %v21580_v0 }
 0xd07   : > { %20924 = vmatpush3.msra.mxu1 %v21860_v29  ;;  %20927 = vmatprep.mubr.msk.f32.mxu1 %vm21581_vm0, %v21580_v0 }
 0xd08   : > { %20925 = vmatprep.subr.mxu1 %v21580_v0  ;;  %20916 = vmatprep.subr.mxu0 %v21580_v0 }
 0xd09   : > { %20926 = vmatpush3.msra.mxu1 %v21865_v31  ;;  %20917 = vmatpush3.msra.mxu0 %v21838_v21 }
 0xd0a   : > { %20937 = vmatprep.subr.mxu1 %v21580_v0  ;;  %20918 = vmatprep.subr.mxu0 %v21580_v0 }
 0xd0b   : > { %20919 = vmatpush3.msra.mxu0 %v21843_v24  ;;  %20920 = vmatprep.mubr.msk.f32.mxu0 %vm21581_vm0, %v21580_v0 }
 0xd0c   : > { %20930 = vmatprep.subr.mxu0 %v21580_v0 }
 0xda6   : > { %v12943_v33 = vpop.f32.mrf.mxu1 }
 0xda8   : > { %v20845_v41 = vpop.f32.mrf.mxu1 }
 0xda9   : > { %v14308_v41 = vsub.f32 %v23307_v39, %v14307_v46 }
 0xdaa   : > { %v13094_v51 = vpop.f32.mrf.mxu1 }
 0xdac   : > { %v20859_v52 = vpop.f32.mrf.mxu1 }
 0xdae   : > { %v12862_v56 = vpop.f32.mrf.mxu0  ;;  %v13244_v59 = vpop.f32.mrf.mxu1 }
 0xdaf   : > { %v12944_v18 = vadd.f32 %v12943_v33, %v12862_v56 }
 0xdb0   : > { %v20838_v34 = vpop.f32.mrf.mxu0  ;;  %v20873_v60 = vpop.f32.mrf.mxu1 }
 0xdb2   : > { %v13019_v61 = vpop.f32.mrf.mxu0 }
 0xdb3   : > { %v13020_v30 = vadd.f32 %v13019_v61, %v12944_v18 }
 0xdb4   : > { %v20852_v58 = vpop.f32.mrf.mxu0 }
 0xdb5   : > { %v13095_v62 = vadd.f32 %v13094_v51, %v13020_v30  ;;  %v14314_v51 = vand.u32 4294901760, %v23316_v1 }
 0xdb6   : > { %v13171_v44 = vpop.f32.mrf.mxu0 }
 0xdb7   : > { %v13172_v63 = vadd.f32 %v13171_v44, %v13095_v62  ;;  %v14315_v18 = vsub.f32 %v23316_v1, %v14314_v51 }
 0xdb8   : > { %v20866_v3 = vpop.f32.mrf.mxu0 }
 0xdb9   : > { %v13245_v47 = vadd.f32 %v13244_v59, %v13172_v63  ;;  %v13404_v4 = vpop.f32.mrf.mxu1  ;;  %v14309_v59 = vand.u32 4294901760, %v14308_v41  ;;  %v14316_v34 = vand.u32 4294901760, %v14315_v18 }
 0xdba   : > { %v13323_v5 = vpop.f32.mrf.mxu0 }
 0xdbb   : > { %v14175_v6 = vsub.f32 %v13245_v47, %v23090_v36  ;;  %v20887_v8 = vpop.f32.mrf.mxu1  ;;  %v13405_v12 = vadd.f32 %v13404_v4, %v13323_v5 }
 0xdbc   : > { %v20880_v9 = vpop.f32.mrf.mxu0 }
 0xdbd   : > { %v14184_v11 = vadd.f32 %v14175_v6, %v14174_v37 }
 0xdbe   : > { %v13480_v14 = vpop.f32.mrf.mxu0 }
 0xdbf   : > { %v14185_v16 = vadd.f32 0.0009, %v14184_v11  ;;  %v13481_v17 = vadd.f32 %v13480_v14, %v13405_v12 }
 0xdc0   : > { %v13555_v38 = vpop.f32.mrf.mxu1  ;;  %v20894_v40 = vpop.f32.mrf.mxu0 }
 0xdc1   : > { %v23297_v20 = vmul.f32 %v14185_v16, %v14183_v15  ;;  %v13556_v36 = vadd.f32 %v13555_v38, %v13481_v17  ;;  %v14177_v40 = vmul.f32 2.0, %v23093_v43 }
 0xdc2   : > { %v20901_v22 = vpop.f32.mrf.mxu1 }
 0xdc3   : > { %21443 = vrcp.f32 %v23297_v20 }
 0xdc4   : > { %v13632_v57 = vpop.f32.mrf.mxu0 }
 0xdc5   : > { %v13633_v50 = vadd.f32 %v13632_v57, %v13556_v36 }
 0xdc6   : > { %v13705_v37 = vpop.f32.mrf.mxu1  ;;  %v20908_v42 = vpop.f32.mrf.mxu0 }
 0xdc7   : > { %v13706_v54 = vadd.f32 %v13705_v37, %v13633_v50 }
 0xdc8   : > { %v20915_v55 = vpop.f32.mrf.mxu1 }
 0xdc9   : > { %v13710_v27 = vsel %vm279_vm1, %v13706_v54, 0  ;;  %v14178_v54 = vadd.f32 0.0001, %v14177_v40 }
 0xdca   : > { %v13779_v45 = vand.u32 4294901760, %v13710_v27 }
 0xdcc   : > { %v13780_v32 = vsub.f32 %v13710_v27, %v13779_v45  ;;  %20928 = vmatmul.mubr.f32.vlgmr.msra.gmra.mxu1 %v13779_v45 }
 0xdcd   : > { %20938 = vmatpush3.msra.mxu1 %v21838_v21  ;;  %20941 = vmatprep.mubr.msk.f32.mxu1 %vm21581_vm0, %v21580_v0 }
 0xdce   : > { %v13781_v33 = vand.u32 4294901760, %v13780_v32  ;;  %20939 = vmatprep.subr.mxu1 %v21580_v0 }
 0xdcf   : > { %20940 = vmatpush3.msra.mxu1 %v21843_v24 }
 0xdd0   : > { %v13782_v52 = vsub.f32 %v13780_v32, %v13781_v33  ;;  %20942 = vmatmul.mubr.f32.vlgmr.msra.gmra.mxu1 %v13781_v33  ;;  %20951 = vmatprep.subr.mxu1 %v21580_v0  ;;  %v21444_v9 = vpop.eup %21443 }
 0xdd1   : > { %20952 = vmatpush3.msra.mxu1 %v21838_v21  ;;  %20955 = vmatprep.mubr.msk.f32.mxu1 %vm21581_vm0, %v21580_v0  ;;  %v14188_v17 = vmul.f32 %v21444_v9, %v23297_v20 }
 0xdd2   : > { %v13783_v56 = vand.u32 4294901760, %v13782_v52  ;;  %20953 = vmatprep.subr.mxu1 %v21580_v0 }
 0xdd3   : > { %20954 = vmatpush3.msra.mxu1 %v21843_v24  ;;  %v14189_v37 = vsub.f32 2.0, %v14188_v17 }
 0xdd4   : > { %20921 = vmatmul.mubr.f32.vlgmr.msra.gmra.mxu0 %v13783_v56  ;;  %20956 = vmatmul.mubr.f32.vlgmr.msra.gmra.mxu1 %v13779_v45 }
 0xdd5   : > { %20931 = vmatpush3.msra.mxu0 %v21841_v23  ;;  %20934 = vmatprep.mubr.msk.f32.mxu0 %vm21581_vm0, %v21580_v0 }
 0xdd6   : > { %20932 = vmatprep.subr.mxu0 %v21580_v0  ;;  %20965 = vmatprep.subr.mxu1 %v21580_v0 }
 0xdd7   : > { %20933 = vmatpush3.msra.mxu0 %v21851_v26  ;;  %20966 = vmatpush3.msra.mxu1 %v14309_v59 }
 0xdd8   : > { %20935 = vmatmul.mubr.f32.vlgmr.msra.gmra.mxu0 %v13780_v32  ;;  %20944 = vmatprep.subr.mxu0 %v21580_v0 }
 0xdd9   : > { %20945 = vmatpush3.msra.mxu0 %v21848_v25  ;;  %20948 = vmatprep.mubr.msk.f32.mxu0 %vm21581_vm0, %v21580_v0 }
 0xdda   : > { %20946 = vmatprep.subr.mxu0 %v21580_v0  ;;  %20967 = vmatprep.subr.mxu1 %v21580_v0 }
 0xddb   : > { %20947 = vmatpush3.msra.mxu0 %v21858_v28  ;;  %20968 = vmatpush3.msra.mxu1 %v14316_v34 }
 0xddc   : > { %20949 = vmatmul.mubr.f32.vlgmr.msra.gmra.mxu0 %v13779_v45  ;;  %20958 = vmatprep.subr.mxu0 %v21580_v0  ;;  %v23400_v45 = vld [vmem:[%s21871_s29 + $0x38] sm:$0xff] }
 0xddd   : > { %20959 = vmatpush3.msra.mxu0 %v23300_v53  ;;  %20962 = vmatprep.mubr.msk.f32.mxu0 %vm21581_vm0, %v21580_v0 }
 0xdde   : > { %20960 = vmatprep.subr.mxu0 %v21580_v0  ;;  %20969 = vmatprep.mubr.msk.f32.mxu1 %vm21581_vm0, %v21580_v0 }
 0xddf   : > { %20961 = vmatpush3.msra.mxu0 %v23310_v48  ;;  %20970 = vmatmul.mubr.f32.vlgmr.msra.gmra.mxu1 %v21794_v7 }
 0xde0   : > { %20963 = vmatmul.mubr.f32.vlgmr.msra.gmra.mxu0 %v21808_v19  ;;  %20972 = vmatprep.subr.mxu0 %v21580_v0 }
 0xde1   : > { %20973 = vmatpush3.msra.mxu0 %v23307_v39  ;;  %20979 = vmatprep.subr.mxu1 %v21580_v0 }
 0xde2   : > { %20974 = vmatprep.subr.mxu0 %v21580_v0  ;;  %20980 = vmatpush3.msra.mxu1 %v23300_v53 }
 0xde3   : > { %20975 = vmatpush3.msra.mxu0 %v23316_v1  ;;  %20976 = vmatprep.mubr.msk.f32.mxu0 %vm21581_vm0, %v21580_v0  ;;  %v14190_v1 = vmul.f32 %v21444_v9, %v14189_v37 }
 0xde4   : > { %20981 = vmatprep.subr.mxu1 %v21580_v0  ;;  %20977 = vmatmul.mubr.f32.vlgmr.msra.gmra.mxu0 %v21800_v10 }
 0xde5   : > { %20982 = vmatpush3.msra.mxu1 %v23310_v48  ;;  %20983 = vmatprep.mubr.msk.f32.mxu1 %vm21581_vm0, %v21580_v0 }
 0xde6   : > { %20986 = vmatprep.subr.mxu0 %v21580_v0  ;;  %20984 = vmatmul.mubr.f32.vlgmr.msra.gmra.mxu1 %v21803_v13 }
 0xde7   : > { %20987 = vmatpush3.msra.mxu0 %v14307_v46  ;;  %20993 = vmatprep.subr.mxu1 %v21580_v0 }
 0xde8   : > { %20988 = vmatprep.subr.mxu0 %v21580_v0  ;;  %20994 = vmatpush3.msra.mxu1 %v23300_v53 }
 0xde9   : > { %20989 = vmatpush3.msra.mxu0 %v14314_v51  ;;  %20990 = vmatprep.mubr.msk.f32.mxu0 %vm21581_vm0, %v21580_v0  ;;  %v23406_v51 = vld [vmem:[%s21871_s29 + $0x30] sm:$0xff] }
 0xdea   : > { %20995 = vmatprep.subr.mxu1 %v21580_v0  ;;  %20991 = vmatmul.mubr.f32.vlgmr.msra.gmra.mxu0 %v21794_v7 }
 0xdeb   : > { %20996 = vmatpush3.msra.mxu1 %v23310_v48  ;;  %20997 = vmatprep.mubr.msk.f32.mxu1 %vm21581_vm0, %v21580_v0 }
 0xdec   : > { %20998 = vmatmul.mubr.f32.vlgmr.msra.gmra.mxu1 %v21794_v7  ;;  %21007 = vmatprep.subr.mxu1 %v21580_v0 }
 0xded   : > { %21008 = vmatpush3.msra.mxu1 %v21860_v29  ;;  %21011 = vmatprep.mubr.msk.f32.mxu1 %vm21581_vm0, %v21580_v0 }
 0xdee   : > { %21009 = vmatprep.subr.mxu1 %v21580_v0  ;;  %21000 = vmatprep.subr.mxu0 %v21580_v0 }
 0xdef   : > { %21010 = vmatpush3.msra.mxu1 %v21865_v31  ;;  %21001 = vmatpush3.msra.mxu0 %v21838_v21 }
 0xdf0   : > { %21021 = vmatprep.subr.mxu1 %v21580_v0  ;;  %21002 = vmatprep.subr.mxu0 %v21580_v0 }
 0xdf1   : > { %21003 = vmatpush3.msra.mxu0 %v21843_v24  ;;  %21004 = vmatprep.mubr.msk.f32.mxu0 %vm21581_vm0, %v21580_v0 }
 0xdf2   : > { %21014 = vmatprep.subr.mxu0 %v21580_v0 }
 0xe8c   : > { %v13866_v60 = vpop.f32.mrf.mxu1 }
 0xe8e   : > { %v20929_v61 = vpop.f32.mrf.mxu1 }
 0xe8f   : > { %v23416_v61 = vand.u32 4294901760, %v23406_v51 }
 0xe90   : > { %v14017_v30 = vpop.f32.mrf.mxu1 }
 0xe92   : > { %v20943_v58 = vpop.f32.mrf.mxu1 }
 0xe94   : > { %v13785_v62 = vpop.f32.mrf.mxu0  ;;  %v14167_v44 = vpop.f32.mrf.mxu1 }
 0xe95   : > { %v13867_v63 = vadd.f32 %v13866_v60, %v13785_v62 }
 0xe96   : > { %v20922_v3 = vpop.f32.mrf.mxu0  ;;  %v20957_v47 = vpop.f32.mrf.mxu1 }
 0xe98   : > { %v13942_v4 = vpop.f32.mrf.mxu0 }
 0xe99   : > { %v13943_v5 = vadd.f32 %v13942_v4, %v13867_v63 }
 0xe9a   : > { %v20936_v6 = vpop.f32.mrf.mxu0 }
 0xe9b   : > { %v14018_v8 = vadd.f32 %v14017_v30, %v13943_v5 }
 0xe9c   : > { %v14094_v11 = vpop.f32.mrf.mxu0 }
 0xe9d   : > { %v14095_v12 = vadd.f32 %v14094_v11, %v14018_v8 }
 0xe9e   : > { %v20950_v14 = vpop.f32.mrf.mxu0 }
 0xe9f   : > { %v14168_v15 = vadd.f32 %v14167_v44, %v14095_v12  ;;  %v14353_v16 = vpop.f32.mrf.mxu1 }
 0xea0   : > { %v14272_v38 = vpop.f32.mrf.mxu0 }
 0xea1   : > { %v14176_v36 = vsub.f32 %v14168_v15, %v23093_v43  ;;  %v20971_v22 = vpop.f32.mrf.mxu1  ;;  %v14354_v50 = vadd.f32 %v14353_v16, %v14272_v38  ;;  %v23403_v43 = vand.u32 4294901760, %v23400_v45 }
 0xea2   : > { %v20964_v53 = vpop.f32.mrf.mxu0 }
 0xea3   : > { %v14179_v57 = vmul.f32 2.0, %v14176_v36  ;;  %v23413_v60 = vsub.f32 %v23400_v45, %v23403_v43 }
 0xea4   : > { %v14429_v42 = vpop.f32.mrf.mxu0 }
 0xea5   : > { %v14180_v39 = vadd.f32 0.0009, %v14179_v57  ;;  %v14430_v48 = vadd.f32 %v14429_v42, %v14354_v50  ;;  %v15228_v44 = vand.u32 4294901760, %v23413_v60 }
 0xea6   : > { %v14504_v55 = vpop.f32.mrf.mxu1  ;;  %v20978_v27 = vpop.f32.mrf.mxu0 }
 0xea7   : > { %v14181_v20 = vmul.f32 %v14180_v39, %v14178_v54  ;;  %v14505_v46 = vadd.f32 %v14504_v55, %v14430_v48  ;;  %v15229_v47 = vsub.f32 %v23413_v60, %v15228_v44 }
 0xea8   : > { %v20985_v32 = vpop.f32.mrf.mxu1 }
 0xea9   : > { %v14191_v33 = vmul.f32 %v14190_v1, %v14181_v20  ;;  %v15230_v8 = vand.u32 4294901760, %v15229_v47 }
 0xeaa   : > { %v14581_v41 = vpop.f32.mrf.mxu0 }
 0xeab   : > { %v14582_v52 = vadd.f32 %v14581_v41, %v14505_v46  ;;  %v23409_v56 = vadd.f32 %v14191_v33, %v22899_v49  ;;  %v23422_v49 = vsub.f32 %v23406_v51, %v23416_v61  ;;  %v16042_v33 = vmul.f32 %v23295_v2, %v23295_v2 }
 0xeac   : > { %v14654_v59 = vpop.f32.mrf.mxu1  ;;  %v20992_v18 = vpop.f32.mrf.mxu0 }
 0xead   : > { %v14655_v34 = vadd.f32 %v14654_v59, %v14582_v52  ;;  %v15235_v4 = vand.u32 4294901760, %v23422_v49 }
 0xeae   : > { %v20999_v30 = vpop.f32.mrf.mxu1 }
 0xeaf   : > { %v14659_v58 = vsel %vm279_vm1, %v14655_v34, 0  ;;  %v15236_v9 = vsub.f32 %v23422_v49, %v15235_v4  ;;  %v23505_v34 = vand.u32 4294901760, %v16042_v33 }
 0xeb0   : > { %v14728_v62 = vand.u32 4294901760, %v14659_v58 }
 0xeb1   : > { %v15237_v11 = vand.u32 4294901760, %v15236_v9 }
 0xeb2   : > { %v14729_v63 = vsub.f32 %v14659_v58, %v14728_v62  ;;  %21012 = vmatmul.mubr.f32.vlgmr.msra.gmra.mxu1 %v14728_v62 }
 0xeb3   : > { %21022 = vmatpush3.msra.mxu1 %v21838_v21  ;;  %21025 = vmatprep.mubr.msk.f32.mxu1 %vm21581_vm0, %v21580_v0 }
 0xeb4   : > { %v14730_v3 = vand.u32 4294901760, %v14729_v63  ;;  %21023 = vmatprep.subr.mxu1 %v21580_v0 }
 0xeb5   : > { %21024 = vmatpush3.msra.mxu1 %v21843_v24 }
 0xeb6   : > { %v14731_v5 = vsub.f32 %v14729_v63, %v14730_v3  ;;  %21026 = vmatmul.mubr.f32.vlgmr.msra.gmra.mxu1 %v14730_v3  ;;  %21035 = vmatprep.subr.mxu1 %v21580_v0 }
 0xeb7   : > { %21036 = vmatpush3.msra.mxu1 %v21838_v21  ;;  %21039 = vmatprep.mubr.msk.f32.mxu1 %vm21581_vm0, %v21580_v0 }
 0xeb8   : > { %v14732_v6 = vand.u32 4294901760, %v14731_v5  ;;  %21037 = vmatprep.subr.mxu1 %v21580_v0 }
 0xeb9   : > { %21038 = vmatpush3.msra.mxu1 %v21843_v24 }
 0xeba   : > { %21005 = vmatmul.mubr.f32.vlgmr.msra.gmra.mxu0 %v14732_v6  ;;  %21040 = vmatmul.mubr.f32.vlgmr.msra.gmra.mxu1 %v14728_v62 }
 0xebb   : > { %21015 = vmatpush3.msra.mxu0 %v21841_v23  ;;  %21018 = vmatprep.mubr.msk.f32.mxu0 %vm21581_vm0, %v21580_v0 }
 0xebc   : > { %21016 = vmatprep.subr.mxu0 %v21580_v0  ;;  %21049 = vmatprep.subr.mxu1 %v21580_v0 }
 0xebd   : > { %21017 = vmatpush3.msra.mxu0 %v21851_v26  ;;  %21050 = vmatpush3.msra.mxu1 %v15230_v8 }
 0xebe   : > { %21019 = vmatmul.mubr.f32.vlgmr.msra.gmra.mxu0 %v14729_v63  ;;  %21028 = vmatprep.subr.mxu0 %v21580_v0 }
 0xebf   : > { %21029 = vmatpush3.msra.mxu0 %v21848_v25  ;;  %21032 = vmatprep.mubr.msk.f32.mxu0 %vm21581_vm0, %v21580_v0 }
 0xec0   : > { %21030 = vmatprep.subr.mxu0 %v21580_v0  ;;  %21051 = vmatprep.subr.mxu1 %v21580_v0 }
 0xec1   : > { %21031 = vmatpush3.msra.mxu0 %v21858_v28  ;;  %21052 = vmatpush3.msra.mxu1 %v15237_v11 }
 0xec2   : > { %21033 = vmatmul.mubr.f32.vlgmr.msra.gmra.mxu0 %v14728_v62  ;;  %21042 = vmatprep.subr.mxu0 %v21580_v0 }
 0xec3   : > { %21043 = vmatpush3.msra.mxu0 %v23403_v43  ;;  %21046 = vmatprep.mubr.msk.f32.mxu0 %vm21581_vm0, %v21580_v0 }
 0xec4   : > { %21044 = vmatprep.subr.mxu0 %v21580_v0  ;;  %21053 = vmatprep.mubr.msk.f32.mxu1 %vm21581_vm0, %v21580_v0 }
 0xec5   : > { %21045 = vmatpush3.msra.mxu0 %v23416_v61  ;;  %21054 = vmatmul.mubr.f32.vlgmr.msra.gmra.mxu1 %v21794_v7 }
 0xec6   : > { %21047 = vmatmul.mubr.f32.vlgmr.msra.gmra.mxu0 %v21808_v19  ;;  %21056 = vmatprep.subr.mxu0 %v21580_v0 }
 0xec7   : > { %21057 = vmatpush3.msra.mxu0 %v23413_v60  ;;  %21063 = vmatprep.subr.mxu1 %v21580_v0  ;;  %v16041_v60 = vmul.f32 %v23303_v35, %v23303_v35 }
 0xec8   : > { %21058 = vmatprep.subr.mxu0 %v21580_v0  ;;  %21064 = vmatpush3.msra.mxu1 %v23403_v43 }
 0xec9   : > { %21059 = vmatpush3.msra.mxu0 %v23422_v49  ;;  %21060 = vmatprep.mubr.msk.f32.mxu0 %vm21581_vm0, %v21580_v0  ;;  %v23510_v49 = vsub.f32 %v16042_v33, %v23505_v34  ;;  %v23512_v63 = vand.u32 4294901760, %v16041_v60 }
 0xeca   : > { %21065 = vmatprep.subr.mxu1 %v21580_v0  ;;  %21061 = vmatmul.mubr.f32.vlgmr.msra.gmra.mxu0 %v21800_v10 }
 0xecb   : > { %21066 = vmatpush3.msra.mxu1 %v23416_v61  ;;  %21067 = vmatprep.mubr.msk.f32.mxu1 %vm21581_vm0, %v21580_v0  ;;  %v23517_v5 = vsub.f32 %v16041_v60, %v23512_v63 }
 0xecc   : > { %21070 = vmatprep.subr.mxu0 %v21580_v0  ;;  %21068 = vmatmul.mubr.f32.vlgmr.msra.gmra.mxu1 %v21803_v13 }
 0xecd   : > { %21071 = vmatpush3.msra.mxu0 %v15228_v44  ;;  %21077 = vmatprep.subr.mxu1 %v21580_v0  ;;  %v16158_v9 = vand.u32 4294901760, %v23517_v5 }
 0xece   : > { %21072 = vmatprep.subr.mxu0 %v21580_v0  ;;  %21078 = vmatpush3.msra.mxu1 %v23403_v43 }
 0xecf   : > { %21073 = vmatpush3.msra.mxu0 %v15235_v4  ;;  %21074 = vmatprep.mubr.msk.f32.mxu0 %vm21581_vm0, %v21580_v0  ;;  %v16151_v4 = vand.u32 4294901760, %v23510_v49 }
 0xed0   : > { %21079 = vmatprep.subr.mxu1 %v21580_v0  ;;  %21075 = vmatmul.mubr.f32.vlgmr.msra.gmra.mxu0 %v21794_v7 }
 0xed1   : > { %21080 = vmatpush3.msra.mxu1 %v23416_v61  ;;  %21081 = vmatprep.mubr.msk.f32.mxu1 %vm21581_vm0, %v21580_v0  ;;  %v16152_v8 = vsub.f32 %v23510_v49, %v16151_v4 }
 0xed2   : > { %21082 = vmatmul.mubr.f32.vlgmr.msra.gmra.mxu1 %v21794_v7  ;;  %21091 = vmatprep.subr.mxu1 %v21580_v0 }
 0xed3   : > { %21092 = vmatpush3.msra.mxu1 %v21860_v29  ;;  %21095 = vmatprep.mubr.msk.f32.mxu1 %vm21581_vm0, %v21580_v0 }
 0xed4   : > { %21093 = vmatprep.subr.mxu1 %v21580_v0  ;;  %21084 = vmatprep.subr.mxu0 %v21580_v0 }
 0xed5   : > { %21094 = vmatpush3.msra.mxu1 %v21865_v31  ;;  %21085 = vmatpush3.msra.mxu0 %v21838_v21 }
 0xed6   : > { %21105 = vmatprep.subr.mxu1 %v21580_v0  ;;  %21086 = vmatprep.subr.mxu0 %v21580_v0 }
 0xed7   : > { %21087 = vmatpush3.msra.mxu0 %v21843_v24  ;;  %21088 = vmatprep.mubr.msk.f32.mxu0 %vm21581_vm0, %v21580_v0 }
 0xed8   : > { %21098 = vmatprep.subr.mxu0 %v21580_v0 }
 0xf72   : > { %v14815_v12 = vpop.f32.mrf.mxu1 }
 0xf74   : > { %v21013_v14 = vpop.f32.mrf.mxu1 }
 0xf75   : > { %v16153_v14 = vand.u32 4294901760, %v16152_v8 }
 0xf76   : > { %v14966_v15 = vpop.f32.mrf.mxu1 }
 0xf78   : > { %v21027_v16 = vpop.f32.mrf.mxu1 }
 0xf7a   : > { %v14734_v17 = vpop.f32.mrf.mxu0  ;;  %v15116_v38 = vpop.f32.mrf.mxu1 }
 0xf7b   : > { %v14816_v40 = vadd.f32 %v14815_v12, %v14734_v17 }
 0xf7c   : > { %v21006_v36 = vpop.f32.mrf.mxu0  ;;  %v21041_v22 = vpop.f32.mrf.mxu1 }
 0xf7e   : > { %v14891_v53 = vpop.f32.mrf.mxu0 }
 0xf7f   : > { %v14892_v57 = vadd.f32 %v14891_v53, %v14816_v40 }
 0xf80   : > { %v21020_v50 = vpop.f32.mrf.mxu0 }
 0xf81   : > { %v14967_v37 = vadd.f32 %v14966_v15, %v14892_v57  ;;  %v16159_v15 = vsub.f32 %v23517_v5, %v16158_v9 }
 0xf82   : > { %v15043_v42 = vpop.f32.mrf.mxu0 }
 0xf83   : > { %v15044_v54 = vadd.f32 %v15043_v42, %v14967_v37  ;;  %v16160_v16 = vand.u32 4294901760, %v16159_v15 }
 0xf84   : > { %v21034_v39 = vpop.f32.mrf.mxu0 }
 0xf85   : > { %v23501_v48 = vadd.f32 %v15116_v38, %v15044_v54  ;;  %v15274_v55 = vpop.f32.mrf.mxu1 }
 0xf86   : > { %v15193_v27 = vpop.f32.mrf.mxu0 }
 0xf87   : > { %v21055_v20 = vpop.f32.mrf.mxu1  ;;  %v15275_v1 = vadd.f32 %v15274_v55, %v15193_v27  ;;  %v23598_v33 = vmul.f32 %v23501_v48, %v23501_v48 }
 0xf88   : > { %v21048_v46 = vpop.f32.mrf.mxu0 }
 0xf8a   : > { %v15350_v32 = vpop.f32.mrf.mxu0 }
 0xf8b   : > { %v15351_v43 = vadd.f32 %v15350_v32, %v15275_v1 }
 0xf8c   : > { %v15425_v41 = vpop.f32.mrf.mxu1  ;;  %v21062_v52 = vpop.f32.mrf.mxu0 }
 0xf8d   : > { %v15426_v59 = vadd.f32 %v15425_v41, %v15351_v43 }
 0xf8e   : > { %v21069_v18 = vpop.f32.mrf.mxu1 }
 0xf90   : > { %v15502_v61 = vpop.f32.mrf.mxu0 }
 0xf91   : > { %v15503_v30 = vadd.f32 %v15502_v61, %v15426_v59 }
 0xf92   : > { %v15575_v58 = vpop.f32.mrf.mxu1  ;;  %v21076_v62 = vpop.f32.mrf.mxu0 }
 0xf93   : > { %v15576_v44 = vadd.f32 %v15575_v58, %v15503_v30  ;;  %v16965_v58 = vmul.f32 %v23400_v45, %v23400_v45 }
 0xf94   : > { %v21083_v2 = vpop.f32.mrf.mxu1 }
 0xf95   : > { %v15580_v3 = vsel %vm279_vm1, %v15576_v44, 0  ;;  %v23611_v2 = vand.u32 4294901760, %v16965_v58 }
 0xf96   : > { %v15649_v47 = vand.u32 4294901760, %v15580_v3 }
 0xf98   : > { %v15650_v35 = vsub.f32 %v15580_v3, %v15649_v47  ;;  %21096 = vmatmul.mubr.f32.vlgmr.msra.gmra.mxu1 %v15649_v47 }
 0xf99   : > { %21106 = vmatpush3.msra.mxu1 %v21838_v21  ;;  %21109 = vmatprep.mubr.msk.f32.mxu1 %vm21581_vm0, %v21580_v0 }
 0xf9a   : > { %v15651_v6 = vand.u32 4294901760, %v15650_v35  ;;  %21107 = vmatprep.subr.mxu1 %v21580_v0 }
 0xf9b   : > { %21108 = vmatpush3.msra.mxu1 %v21843_v24 }
 0xf9c   : > { %v15652_v11 = vsub.f32 %v15650_v35, %v15651_v6  ;;  %21110 = vmatmul.mubr.f32.vlgmr.msra.gmra.mxu1 %v15651_v6  ;;  %21119 = vmatprep.subr.mxu1 %v21580_v0  ;;  %v23616_v6 = vsub.f32 %v16965_v58, %v23611_v2 }
 0xf9d   : > { %21120 = vmatpush3.msra.mxu1 %v21838_v21  ;;  %21123 = vmatprep.mubr.msk.f32.mxu1 %vm21581_vm0, %v21580_v0 }
 0xf9e   : > { %v15653_v12 = vand.u32 4294901760, %v15652_v11  ;;  %21121 = vmatprep.subr.mxu1 %v21580_v0 }
 0xf9f   : > { %21122 = vmatpush3.msra.mxu1 %v21843_v24 }
 0xfa0   : > { %21089 = vmatmul.mubr.f32.vlgmr.msra.gmra.mxu0 %v15653_v12  ;;  %21124 = vmatmul.mubr.f32.vlgmr.msra.gmra.mxu1 %v15649_v47 }
 0xfa1   : > { %21099 = vmatpush3.msra.mxu0 %v21841_v23  ;;  %21102 = vmatprep.mubr.msk.f32.mxu0 %vm21581_vm0, %v21580_v0 }
 0xfa2   : > { %21100 = vmatprep.subr.mxu0 %v21580_v0  ;;  %21133 = vmatprep.subr.mxu1 %v21580_v0 }
 0xfa3   : > { %21101 = vmatpush3.msra.mxu0 %v21851_v26  ;;  %21134 = vmatpush3.msra.mxu1 %v16153_v14  ;;  %v17074_v14 = vand.u32 4294901760, %v23616_v6 }
 0xfa4   : > { %21103 = vmatmul.mubr.f32.vlgmr.msra.gmra.mxu0 %v15650_v35  ;;  %21112 = vmatprep.subr.mxu0 %v21580_v0 }
 0xfa5   : > { %21113 = vmatpush3.msra.mxu0 %v21848_v25  ;;  %21116 = vmatprep.mubr.msk.f32.mxu0 %vm21581_vm0, %v21580_v0 }
 0xfa6   : > { %21114 = vmatprep.subr.mxu0 %v21580_v0  ;;  %21135 = vmatprep.subr.mxu1 %v21580_v0 }
 0xfa7   : > { %21115 = vmatpush3.msra.mxu0 %v21858_v28  ;;  %21136 = vmatpush3.msra.mxu1 %v16160_v16 }
 0xfa8   : > { %21117 = vmatmul.mubr.f32.vlgmr.msra.gmra.mxu0 %v15649_v47  ;;  %21126 = vmatprep.subr.mxu0 %v21580_v0 }
 0xfa9   : > { %21127 = vmatpush3.msra.mxu0 %v23505_v34  ;;  %21130 = vmatprep.mubr.msk.f32.mxu0 %vm21581_vm0, %v21580_v0 }
 0xfaa   : > { %21128 = vmatprep.subr.mxu0 %v21580_v0  ;;  %21137 = vmatprep.mubr.msk.f32.mxu1 %vm21581_vm0, %v21580_v0 }
 0xfab   : > { %21129 = vmatpush3.msra.mxu0 %v23512_v63  ;;  %21138 = vmatmul.mubr.f32.vlgmr.msra.gmra.mxu1 %v21794_v7 }
 0xfac   : > { %21131 = vmatmul.mubr.f32.vlgmr.msra.gmra.mxu0 %v21808_v19  ;;  %21140 = vmatprep.subr.mxu0 %v21580_v0 }
 0xfad   : > { %21141 = vmatpush3.msra.mxu0 %v23510_v49  ;;  %21147 = vmatprep.subr.mxu1 %v21580_v0 }
 0xfae   : > { %21142 = vmatprep.subr.mxu0 %v21580_v0  ;;  %21148 = vmatpush3.msra.mxu1 %v23505_v34 }
 0xfaf   : > { %21143 = vmatpush3.msra.mxu0 %v23517_v5  ;;  %21144 = vmatprep.mubr.msk.f32.mxu0 %vm21581_vm0, %v21580_v0 }
 0xfb0   : > { %21149 = vmatprep.subr.mxu1 %v21580_v0  ;;  %21145 = vmatmul.mubr.f32.vlgmr.msra.gmra.mxu0 %v21800_v10 }
 0xfb1   : > { %21150 = vmatpush3.msra.mxu1 %v23512_v63  ;;  %21151 = vmatprep.mubr.msk.f32.mxu1 %vm21581_vm0, %v21580_v0 }
 0xfb2   : > { %21154 = vmatprep.subr.mxu0 %v21580_v0  ;;  %21152 = vmatmul.mubr.f32.vlgmr.msra.gmra.mxu1 %v21803_v13 }
 0xfb3   : > { %21155 = vmatpush3.msra.mxu0 %v16151_v4  ;;  %21161 = vmatprep.subr.mxu1 %v21580_v0 }
 0xfb4   : > { %21156 = vmatprep.subr.mxu0 %v21580_v0  ;;  %21162 = vmatpush3.msra.mxu1 %v23505_v34 }
 0xfb5   : > { %21157 = vmatpush3.msra.mxu0 %v16158_v9  ;;  %21158 = vmatprep.mubr.msk.f32.mxu0 %vm21581_vm0, %v21580_v0 }
 0xfb6   : > { %21163 = vmatprep.subr.mxu1 %v21580_v0  ;;  %21159 = vmatmul.mubr.f32.vlgmr.msra.gmra.mxu0 %v21794_v7 }
 0xfb7   : > { %21164 = vmatpush3.msra.mxu1 %v23512_v63  ;;  %21165 = vmatprep.mubr.msk.f32.mxu1 %vm21581_vm0, %v21580_v0 }
 0xfb8   : > { %21166 = vmatmul.mubr.f32.vlgmr.msra.gmra.mxu1 %v21794_v7  ;;  %21175 = vmatprep.subr.mxu1 %v21580_v0 }
 0xfb9   : > { %21176 = vmatpush3.msra.mxu1 %v21860_v29  ;;  %21179 = vmatprep.mubr.msk.f32.mxu1 %vm21581_vm0, %v21580_v0 }
 0xfba   : > { %21177 = vmatprep.subr.mxu1 %v21580_v0  ;;  %21168 = vmatprep.subr.mxu0 %v21580_v0 }
 0xfbb   : > { %21178 = vmatpush3.msra.mxu1 %v21865_v31  ;;  %21169 = vmatpush3.msra.mxu0 %v21838_v21 }
 0xfbc   : > { %21189 = vmatprep.subr.mxu1 %v21580_v0  ;;  %21170 = vmatprep.subr.mxu0 %v21580_v0 }
 0xfbd   : > { %21171 = vmatpush3.msra.mxu0 %v21843_v24  ;;  %21172 = vmatprep.mubr.msk.f32.mxu0 %vm21581_vm0, %v21580_v0 }
 0xfbe   : > { %21182 = vmatprep.subr.mxu0 %v21580_v0 }
0x1058   : > { %v15736_v17 = vpop.f32.mrf.mxu1 }
0x105a   : > { %v21097_v38 = vpop.f32.mrf.mxu1 }
0x105b   : > { %v17075_v38 = vsub.f32 %v23616_v6, %v17074_v14 }
0x105c   : > { %v15887_v40 = vpop.f32.mrf.mxu1 }
0x105e   : > { %v21111_v36 = vpop.f32.mrf.mxu1 }
0x1060   : > { %v15655_v22 = vpop.f32.mrf.mxu0  ;;  %v16037_v53 = vpop.f32.mrf.mxu1 }
0x1061   : > { %v15737_v57 = vadd.f32 %v15736_v17, %v15655_v22 }
0x1062   : > { %v21090_v50 = vpop.f32.mrf.mxu0  ;;  %v21125_v37 = vpop.f32.mrf.mxu1 }
0x1064   : > { %v15812_v42 = vpop.f32.mrf.mxu0 }
0x1065   : > { %v15813_v54 = vadd.f32 %v15812_v42, %v15737_v57 }
0x1066   : > { %v21104_v39 = vpop.f32.mrf.mxu0 }
0x1067   : > { %v15888_v55 = vadd.f32 %v15887_v40, %v15813_v54 }
0x1068   : > { %v15964_v27 = vpop.f32.mrf.mxu0 }
0x1069   : > { %v15965_v20 = vadd.f32 %v15964_v27, %v15888_v55 }
0x106a   : > { %v21118_v46 = vpop.f32.mrf.mxu0 }
0x106b   : > { %v16038_v1 = vadd.f32 %v16037_v53, %v15965_v20  ;;  %v16197_v32 = vpop.f32.mrf.mxu1  ;;  %v17076_v53 = vand.u32 4294901760, %v17075_v38 }
0x106c   : > { %v16116_v43 = vpop.f32.mrf.mxu0 }
0x106d   : > { %v23600_v41 = vmul.f32 %v16038_v1, %v16038_v1  ;;  %v23603_v52 = vmul.f32 %v16038_v1, %v23501_v48  ;;  %v21139_v59 = vpop.f32.mrf.mxu1  ;;  %v16198_v60 = vadd.f32 %v16197_v32, %v16116_v43  ;;  %v16964_v48 = vmul.f32 %v23406_v51, %v23406_v51 }
0x106e   : > { %v21132_v18 = vpop.f32.mrf.mxu0 }
0x106f   : > { %v23607_v34 = vadd.f32 %v23600_v41, %v23598_v33  ;;  %v23618_v8 = vand.u32 4294901760, %v16964_v48 }
0x1070   : > { %v16273_v61 = vpop.f32.mrf.mxu0 }
0x1071   : > { %v16274_v30 = vadd.f32 %v16273_v61, %v16198_v60  ;;  %v23623_v15 = vsub.f32 %v16964_v48, %v23618_v8 }
0x1072   : > { %v16348_v62 = vpop.f32.mrf.mxu1  ;;  %v21146_v44 = vpop.f32.mrf.mxu0 }
0x1073   : > { %v16349_v49 = vadd.f32 %v16348_v62, %v16274_v30  ;;  %v17081_v40 = vand.u32 4294901760, %v23623_v15 }
0x1074   : > { %v21153_v63 = vpop.f32.mrf.mxu1 }
0x1075   : > { %v17082_v57 = vsub.f32 %v23623_v15, %v17081_v40 }
0x1076   : > { %v16425_v3 = vpop.f32.mrf.mxu0 }
0x1077   : > { %v16426_v47 = vadd.f32 %v16425_v3, %v16349_v49  ;;  %v17083_v50 = vand.u32 4294901760, %v17082_v57 }
0x1078   : > { %v16498_v4 = vpop.f32.mrf.mxu1  ;;  %v21160_v5 = vpop.f32.mrf.mxu0 }
0x1079   : > { %v16499_v35 = vadd.f32 %v16498_v4, %v16426_v47  ;;  %v21451_v4 = vld [vmem:[%s21770_s18 + $0x38] sm:$0xff] }
0x107a   : > { %v21167_v9 = vpop.f32.mrf.mxu1  ;;  %v17888_v5 = vmul.f32 %v21451_v4, %v23400_v45 }
0x107b   : > { %v16503_v11 = vsel %vm279_vm1, %v16499_v35, 0 }
0x107c   : > { %v16572_v12 = vand.u32 4294901760, %v16503_v11 }
0x107e   : > { %v16573_v16 = vsub.f32 %v16503_v11, %v16572_v12  ;;  %21180 = vmatmul.mubr.f32.vlgmr.msra.gmra.mxu1 %v16572_v12  ;;  %v23708_v11 = vand.u32 4294901760, %v17888_v5 }
0x107f   : > { %21190 = vmatpush3.msra.mxu1 %v21838_v21  ;;  %21193 = vmatprep.mubr.msk.f32.mxu1 %vm21581_vm0, %v21580_v0 }
0x1080   : > { %v16574_v17 = vand.u32 4294901760, %v16573_v16  ;;  %21191 = vmatprep.subr.mxu1 %v21580_v0 }
0x1081   : > { %21192 = vmatpush3.msra.mxu1 %v21843_v24 }
0x1082   : > { %v16575_v36 = vsub.f32 %v16573_v16, %v16574_v17  ;;  %21194 = vmatmul.mubr.f32.vlgmr.msra.gmra.mxu1 %v16574_v17  ;;  %21203 = vmatprep.subr.mxu1 %v21580_v0 }
0x1083   : > { %21204 = vmatpush3.msra.mxu1 %v21838_v21  ;;  %21207 = vmatprep.mubr.msk.f32.mxu1 %vm21581_vm0, %v21580_v0 }
0x1084   : > { %v16576_v22 = vand.u32 4294901760, %v16575_v36  ;;  %21205 = vmatprep.subr.mxu1 %v21580_v0  ;;  %v23713_v36 = vsub.f32 %v17888_v5, %v23708_v11 }
0x1085   : > { %21206 = vmatpush3.msra.mxu1 %v21843_v24 }
0x1086   : > { %21173 = vmatmul.mubr.f32.vlgmr.msra.gmra.mxu0 %v16576_v22  ;;  %21208 = vmatmul.mubr.f32.vlgmr.msra.gmra.mxu1 %v16572_v12 }
0x1087   : > { %21183 = vmatpush3.msra.mxu0 %v21841_v23  ;;  %21186 = vmatprep.mubr.msk.f32.mxu0 %vm21581_vm0, %v21580_v0 }
0x1088   : > { %21184 = vmatprep.subr.mxu0 %v21580_v0  ;;  %21217 = vmatprep.subr.mxu1 %v21580_v0 }
0x1089   : > { %21185 = vmatpush3.msra.mxu0 %v21851_v26  ;;  %21218 = vmatpush3.msra.mxu1 %v17076_v53 }
0x108a   : > { %21187 = vmatmul.mubr.f32.vlgmr.msra.gmra.mxu0 %v16573_v16  ;;  %21196 = vmatprep.subr.mxu0 %v21580_v0 }
0x108b   : > { %21197 = vmatpush3.msra.mxu0 %v21848_v25  ;;  %21200 = vmatprep.mubr.msk.f32.mxu0 %vm21581_vm0, %v21580_v0 }
0x108c   : > { %21198 = vmatprep.subr.mxu0 %v21580_v0  ;;  %21219 = vmatprep.subr.mxu1 %v21580_v0 }
0x108d   : > { %21199 = vmatpush3.msra.mxu0 %v21858_v28  ;;  %21220 = vmatpush3.msra.mxu1 %v17083_v50  ;;  %v17997_v50 = vand.u32 4294901760, %v23713_v36 }
0x108e   : > { %21201 = vmatmul.mubr.f32.vlgmr.msra.gmra.mxu0 %v16572_v12  ;;  %21210 = vmatprep.subr.mxu0 %v21580_v0  ;;  %v21452_v12 = vld [vmem:[%s21770_s18 + $0x30] sm:$0xff] }
0x108f   : > { %21211 = vmatpush3.msra.mxu0 %v23611_v2  ;;  %21214 = vmatprep.mubr.msk.f32.mxu0 %vm21581_vm0, %v21580_v0 }
0x1090   : > { %21212 = vmatprep.subr.mxu0 %v21580_v0  ;;  %21221 = vmatprep.mubr.msk.f32.mxu1 %vm21581_vm0, %v21580_v0 }
0x1091   : > { %21213 = vmatpush3.msra.mxu0 %v23618_v8  ;;  %21222 = vmatmul.mubr.f32.vlgmr.msra.gmra.mxu1 %v21794_v7 }
0x1092   : > { %21215 = vmatmul.mubr.f32.vlgmr.msra.gmra.mxu0 %v21808_v19  ;;  %21224 = vmatprep.subr.mxu0 %v21580_v0 }
0x1093   : > { %21225 = vmatpush3.msra.mxu0 %v23616_v6  ;;  %21231 = vmatprep.subr.mxu1 %v21580_v0 }
0x1094   : > { %21226 = vmatprep.subr.mxu0 %v21580_v0  ;;  %21232 = vmatpush3.msra.mxu1 %v23611_v2 }
0x1095   : > { %21227 = vmatpush3.msra.mxu0 %v23623_v15  ;;  %21228 = vmatprep.mubr.msk.f32.mxu0 %vm21581_vm0, %v21580_v0 }
0x1096   : > { %21233 = vmatprep.subr.mxu1 %v21580_v0  ;;  %21229 = vmatmul.mubr.f32.vlgmr.msra.gmra.mxu0 %v21800_v10 }
0x1097   : > { %21234 = vmatpush3.msra.mxu1 %v23618_v8  ;;  %21235 = vmatprep.mubr.msk.f32.mxu1 %vm21581_vm0, %v21580_v0 }
0x1098   : > { %21238 = vmatprep.subr.mxu0 %v21580_v0  ;;  %21236 = vmatmul.mubr.f32.vlgmr.msra.gmra.mxu1 %v21803_v13 }
0x1099   : > { %21239 = vmatpush3.msra.mxu0 %v17074_v14  ;;  %21245 = vmatprep.subr.mxu1 %v21580_v0  ;;  %v17887_v14 = vmul.f32 %v21452_v12, %v23406_v51 }
0x109a   : > { %21240 = vmatprep.subr.mxu0 %v21580_v0  ;;  %21246 = vmatpush3.msra.mxu1 %v23611_v2 }
0x109b   : > { %21241 = vmatpush3.msra.mxu0 %v17081_v40  ;;  %21242 = vmatprep.mubr.msk.f32.mxu0 %vm21581_vm0, %v21580_v0  ;;  %v23715_v22 = vand.u32 4294901760, %v17887_v14 }
0x109c   : > { %21247 = vmatprep.subr.mxu1 %v21580_v0  ;;  %21243 = vmatmul.mubr.f32.vlgmr.msra.gmra.mxu0 %v21794_v7 }
0x109d   : > { %21248 = vmatpush3.msra.mxu1 %v23618_v8  ;;  %21249 = vmatprep.mubr.msk.f32.mxu1 %vm21581_vm0, %v21580_v0 }
0x109e   : > { %21250 = vmatmul.mubr.f32.vlgmr.msra.gmra.mxu1 %v21794_v7  ;;  %21259 = vmatprep.subr.mxu1 %v21580_v0 }
0x109f   : > { %21260 = vmatpush3.msra.mxu1 %v21860_v29  ;;  %21263 = vmatprep.mubr.msk.f32.mxu1 %vm21581_vm0, %v21580_v0 }
0x10a0   : > { %21261 = vmatprep.subr.mxu1 %v21580_v0  ;;  %21252 = vmatprep.subr.mxu0 %v21580_v0 }
0x10a1   : > { %21262 = vmatpush3.msra.mxu1 %v21865_v31  ;;  %21253 = vmatpush3.msra.mxu0 %v21838_v21 }
0x10a2   : > { %21273 = vmatprep.subr.mxu1 %v21580_v0  ;;  %21254 = vmatprep.subr.mxu0 %v21580_v0 }
0x10a3   : > { %21255 = vmatpush3.msra.mxu0 %v21843_v24  ;;  %21256 = vmatprep.mubr.msk.f32.mxu0 %vm21581_vm0, %v21580_v0 }
0x10a4   : > { %21266 = vmatprep.subr.mxu0 %v21580_v0 }
0x113e   : > { %v16659_v37 = vpop.f32.mrf.mxu1 }
0x1140   : > { %v21181_v42 = vpop.f32.mrf.mxu1 }
0x1142   : > { %v16810_v54 = vpop.f32.mrf.mxu1 }
0x1144   : > { %v21195_v39 = vpop.f32.mrf.mxu1 }
0x1146   : > { %v16578_v55 = vpop.f32.mrf.mxu0  ;;  %v16960_v27 = vpop.f32.mrf.mxu1 }
0x1147   : > { %v16660_v20 = vadd.f32 %v16659_v37, %v16578_v55  ;;  %v23720_v37 = vsub.f32 %v17887_v14, %v23715_v22 }
0x1148   : > { %v21174_v46 = vpop.f32.mrf.mxu0  ;;  %v21209_v1 = vpop.f32.mrf.mxu1 }
0x1149   : > { %v18004_v39 = vand.u32 4294901760, %v23720_v37 }
0x114a   : > { %v16735_v32 = vpop.f32.mrf.mxu0 }
0x114b   : > { %v16736_v43 = vadd.f32 %v16735_v32, %v16660_v20  ;;  %v18005_v46 = vsub.f32 %v23720_v37, %v18004_v39 }
0x114c   : > { %v21188_v59 = vpop.f32.mrf.mxu0 }
0x114d   : > { %v16811_v18 = vadd.f32 %v16810_v54, %v16736_v43  ;;  %v17998_v54 = vsub.f32 %v23713_v36, %v17997_v50  ;;  %v18006_v1 = vand.u32 4294901760, %v18005_v46 }
0x114e   : > { %v16887_v60 = vpop.f32.mrf.mxu0 }
0x114f   : > { %v16888_v61 = vadd.f32 %v16887_v60, %v16811_v18  ;;  %v17999_v20 = vand.u32 4294901760, %v17998_v54 }
0x1150   : > { %v21202_v30 = vpop.f32.mrf.mxu0 }
0x1151   : > { %v23702_v58 = vadd.f32 %v16960_v27, %v16888_v61  ;;  %v17120_v62 = vpop.f32.mrf.mxu1 }
0x1152   : > { %v17039_v44 = vpop.f32.mrf.mxu0 }
0x1153   : > { %v18813_v49 = vsub.f32 %v23702_v58, %v23598_v33  ;;  %v21223_v63 = vpop.f32.mrf.mxu1  ;;  %v17121_v48 = vadd.f32 %v17120_v62, %v17039_v44 }
0x1154   : > { %v21216_v2 = vpop.f32.mrf.mxu0 }
0x1156   : > { %v17196_v3 = vpop.f32.mrf.mxu0 }
0x1157   : > { %v17197_v47 = vadd.f32 %v17196_v3, %v17121_v48 }
0x1158   : > { %v17271_v35 = vpop.f32.mrf.mxu1  ;;  %v21230_v6 = vpop.f32.mrf.mxu0 }
0x1159   : > { %v17272_v8 = vadd.f32 %v17271_v35, %v17197_v47 }
0x115a   : > { %v21237_v9 = vpop.f32.mrf.mxu1 }
0x115b   : > { %v18822_v9 = vadd.f32 0.0001, %v23607_v34 }
0x115c   : > { %v17348_v15 = vpop.f32.mrf.mxu0 }
0x115d   : > { %v17349_v16 = vadd.f32 %v17348_v15, %v17272_v8 }
0x115e   : > { %v17421_v17 = vpop.f32.mrf.mxu1  ;;  %v21244_v38 = vpop.f32.mrf.mxu0 }
0x115f   : > { %v17422_v40 = vadd.f32 %v17421_v17, %v17349_v16 }
0x1160   : > { %v21251_v45 = vpop.f32.mrf.mxu1 }
0x1161   : > { %v17426_v53 = vsel %vm279_vm1, %v17422_v40, 0 }
0x1162   : > { %v17495_v57 = vand.u32 4294901760, %v17426_v53 }
0x1164   : > { %v17496_v51 = vsub.f32 %v17426_v53, %v17495_v57  ;;  %21264 = vmatmul.mubr.f32.vlgmr.msra.gmra.mxu1 %v17495_v57 }
0x1165   : > { %21274 = vmatpush3.msra.mxu1 %v21838_v21  ;;  %21277 = vmatprep.mubr.msk.f32.mxu1 %vm21581_vm0, %v21580_v0 }
0x1166   : > { %v17497_v42 = vand.u32 4294901760, %v17496_v51  ;;  %21275 = vmatprep.subr.mxu1 %v21580_v0 }
0x1167   : > { %21276 = vmatpush3.msra.mxu1 %v21843_v24 }
0x1168   : > { %v17498_v55 = vsub.f32 %v17496_v51, %v17497_v42  ;;  %21278 = vmatmul.mubr.f32.vlgmr.msra.gmra.mxu1 %v17497_v42  ;;  %21287 = vmatprep.subr.mxu1 %v21580_v0 }
0x1169   : > { %21288 = vmatpush3.msra.mxu1 %v21838_v21  ;;  %21291 = vmatprep.mubr.msk.f32.mxu1 %vm21581_vm0, %v21580_v0 }
0x116a   : > { %v17499_v27 = vand.u32 4294901760, %v17498_v55  ;;  %21289 = vmatprep.subr.mxu1 %v21580_v0 }
0x116b   : > { %21290 = vmatpush3.msra.mxu1 %v21843_v24 }
0x116c   : > { %21257 = vmatmul.mubr.f32.vlgmr.msra.gmra.mxu0 %v17499_v27  ;;  %21292 = vmatmul.mubr.f32.vlgmr.msra.gmra.mxu1 %v17495_v57 }
0x116d   : > { %21267 = vmatpush3.msra.mxu0 %v21841_v23  ;;  %21270 = vmatprep.mubr.msk.f32.mxu0 %vm21581_vm0, %v21580_v0 }
0x116e   : > { %21268 = vmatprep.subr.mxu0 %v21580_v0  ;;  %21301 = vmatprep.subr.mxu1 %v21580_v0 }
0x116f   : > { %21269 = vmatpush3.msra.mxu0 %v21851_v26  ;;  %21302 = vmatpush3.msra.mxu1 %v17999_v20 }
0x1170   : > { %21271 = vmatmul.mubr.f32.vlgmr.msra.gmra.mxu0 %v17496_v51  ;;  %21280 = vmatprep.subr.mxu0 %v21580_v0 }
0x1171   : > { %21281 = vmatpush3.msra.mxu0 %v21848_v25  ;;  %21284 = vmatprep.mubr.msk.f32.mxu0 %vm21581_vm0, %v21580_v0 }
0x1172   : > { %21282 = vmatprep.subr.mxu0 %v21580_v0  ;;  %21303 = vmatprep.subr.mxu1 %v21580_v0 }
0x1173   : > { %21283 = vmatpush3.msra.mxu0 %v21858_v28  ;;  %21304 = vmatpush3.msra.mxu1 %v18006_v1 }
0x1174   : > { %21285 = vmatmul.mubr.f32.vlgmr.msra.gmra.mxu0 %v17495_v57  ;;  %21294 = vmatprep.subr.mxu0 %v21580_v0 }
0x1175   : > { %21295 = vmatpush3.msra.mxu0 %v23708_v11  ;;  %21298 = vmatprep.mubr.msk.f32.mxu0 %vm21581_vm0, %v21580_v0 }
0x1176   : > { %21296 = vmatprep.subr.mxu0 %v21580_v0  ;;  %21305 = vmatprep.mubr.msk.f32.mxu1 %vm21581_vm0, %v21580_v0 }
0x1177   : > { %21297 = vmatpush3.msra.mxu0 %v23715_v22  ;;  %21306 = vmatmul.mubr.f32.vlgmr.msra.gmra.mxu1 %v21794_v7 }
0x1178   : > { %21299 = vmatmul.mubr.f32.vlgmr.msra.gmra.mxu0 %v21808_v19  ;;  %21308 = vmatprep.subr.mxu0 %v21580_v0 }
0x1179   : > { %21309 = vmatpush3.msra.mxu0 %v23713_v36  ;;  %21315 = vmatprep.subr.mxu1 %v21580_v0 }
0x117a   : > { %21310 = vmatprep.subr.mxu0 %v21580_v0  ;;  %21316 = vmatpush3.msra.mxu1 %v23708_v11 }
0x117b   : > { %21311 = vmatpush3.msra.mxu0 %v23720_v37  ;;  %21312 = vmatprep.mubr.msk.f32.mxu0 %vm21581_vm0, %v21580_v0 }
0x117c   : > { %21317 = vmatprep.subr.mxu1 %v21580_v0  ;;  %21313 = vmatmul.mubr.f32.vlgmr.msra.gmra.mxu0 %v21800_v10 }
0x117d   : > { %21318 = vmatpush3.msra.mxu1 %v23715_v22  ;;  %21319 = vmatprep.mubr.msk.f32.mxu1 %vm21581_vm0, %v21580_v0 }
0x117e   : > { %21322 = vmatprep.subr.mxu0 %v21580_v0  ;;  %21320 = vmatmul.mubr.f32.vlgmr.msra.gmra.mxu1 %v21803_v13 }
0x117f   : > { %21323 = vmatpush3.msra.mxu0 %v17997_v50  ;;  %21329 = vmatprep.subr.mxu1 %v21580_v0 }
0x1180   : > { %21324 = vmatprep.subr.mxu0 %v21580_v0  ;;  %21330 = vmatpush3.msra.mxu1 %v23708_v11 }
0x1181   : > { %21325 = vmatpush3.msra.mxu0 %v18004_v39  ;;  %21326 = vmatprep.mubr.msk.f32.mxu0 %vm21581_vm0, %v21580_v0 }
0x1182   : > { %21331 = vmatprep.subr.mxu1 %v21580_v0  ;;  %21327 = vmatmul.mubr.f32.vlgmr.msra.gmra.mxu0 %v21794_v7 }
0x1183   : > { %21332 = vmatpush3.msra.mxu1 %v23715_v22  ;;  %21333 = vmatprep.mubr.msk.f32.mxu1 %vm21581_vm0, %v21580_v0 }
0x1184   : > { %21334 = vmatmul.mubr.f32.vlgmr.msra.gmra.mxu1 %v21794_v7  ;;  %21343 = vmatprep.subr.mxu1 %v21580_v0 }
0x1185   : > { %21344 = vmatpush3.msra.mxu1 %v21860_v29  ;;  %21347 = vmatprep.mubr.msk.f32.mxu1 %vm21581_vm0, %v21580_v0 }
0x1186   : > { %21345 = vmatprep.subr.mxu1 %v21580_v0  ;;  %21336 = vmatprep.subr.mxu0 %v21580_v0 }
0x1187   : > { %21346 = vmatpush3.msra.mxu1 %v21865_v31  ;;  %21337 = vmatpush3.msra.mxu0 %v21838_v21 }
0x1188   : > { %21357 = vmatprep.subr.mxu1 %v21580_v0  ;;  %21338 = vmatprep.subr.mxu0 %v21580_v0 }
0x1189   : > { %21339 = vmatpush3.msra.mxu0 %v21843_v24  ;;  %21340 = vmatprep.mubr.msk.f32.mxu0 %vm21581_vm0, %v21580_v0 }
0x118a   : > { %21350 = vmatprep.subr.mxu0 %v21580_v0 }
0x1224   : > { %v17582_v7 = vpop.f32.mrf.mxu1 }
0x1226   : > { %v21265_v10 = vpop.f32.mrf.mxu1 }
0x1228   : > { %v17733_v13 = vpop.f32.mrf.mxu1 }
0x122a   : > { %v21279_v19 = vpop.f32.mrf.mxu1 }
0x122c   : > { %v17501_v29 = vpop.f32.mrf.mxu0  ;;  %v17883_v32 = vpop.f32.mrf.mxu1 }
0x122d   : > { %v17583_v31 = vadd.f32 %v17582_v7, %v17501_v29 }
0x122e   : > { %v21258_v43 = vpop.f32.mrf.mxu0  ;;  %v21293_v59 = vpop.f32.mrf.mxu1 }
0x1230   : > { %v17658_v18 = vpop.f32.mrf.mxu0 }
0x1231   : > { %v17659_v60 = vadd.f32 %v17658_v18, %v17583_v31 }
0x1232   : > { %v21272_v61 = vpop.f32.mrf.mxu0 }
0x1233   : > { %v17734_v30 = vadd.f32 %v17733_v13, %v17659_v60  ;;  %v18816_v13 = vmul.f32 2.0, %v23603_v52 }
0x1234   : > { %v17810_v62 = vpop.f32.mrf.mxu0 }
0x1235   : > { %v17811_v44 = vadd.f32 %v17810_v62, %v17734_v30  ;;  %v18817_v31 = vadd.f32 0.0001, %v18816_v13 }
0x1236   : > { %v21286_v63 = vpop.f32.mrf.mxu0 }
0x1237   : > { %v17884_v2 = vadd.f32 %v17883_v32, %v17811_v44  ;;  %v18043_v48 = vpop.f32.mrf.mxu1 }
0x1238   : > { %v17962_v3 = vpop.f32.mrf.mxu0 }
0x1239   : > { %v18814_v47 = vsub.f32 %v17884_v2, %v23600_v41  ;;  %v21307_v4 = vpop.f32.mrf.mxu1  ;;  %v18044_v6 = vadd.f32 %v18043_v48, %v17962_v3 }
0x123a   : > { %v21300_v5 = vpop.f32.mrf.mxu0 }
0x123b   : > { %v18823_v35 = vadd.f32 %v18814_v47, %v18813_v49 }
0x123c   : > { %v18119_v8 = vpop.f32.mrf.mxu0 }
0x123d   : > { %v18824_v11 = vadd.f32 0.0009, %v18823_v35  ;;  %v18120_v12 = vadd.f32 %v18119_v8, %v18044_v6 }
0x123e   : > { %v18194_v14 = vpop.f32.mrf.mxu1  ;;  %v21314_v15 = vpop.f32.mrf.mxu0 }
0x123f   : > { %v18825_v16 = vmul.f32 %v18824_v11, %v18822_v9  ;;  %v18195_v17 = vadd.f32 %v18194_v14, %v18120_v12 }
0x1240   : > { %v21321_v38 = vpop.f32.mrf.mxu1 }
0x1241   : > { %21445 = vrcp.f32 %v18825_v16 }
0x1242   : > { %v18271_v40 = vpop.f32.mrf.mxu0 }
0x1243   : > { %v18272_v36 = vadd.f32 %v18271_v40, %v18195_v17 }
0x1244   : > { %v18344_v41 = vpop.f32.mrf.mxu1  ;;  %v21328_v22 = vpop.f32.mrf.mxu0 }
0x1245   : > { %v18345_v45 = vadd.f32 %v18344_v41, %v18272_v36 }
0x1246   : > { %v21335_v53 = vpop.f32.mrf.mxu1 }
0x1247   : > { %v18349_v33 = vsel %vm279_vm1, %v18345_v45, 0 }
0x1248   : > { %v18418_v58 = vand.u32 4294901760, %v18349_v33 }
0x124a   : > { %v18419_v49 = vsub.f32 %v18349_v33, %v18418_v58  ;;  %21348 = vmatmul.mubr.f32.vlgmr.msra.gmra.mxu1 %v18418_v58 }
0x124b   : > { %21358 = vmatpush3.msra.mxu1 %v21838_v21  ;;  %21361 = vmatprep.mubr.msk.f32.mxu1 %vm21581_vm0, %v21580_v0 }
0x124c   : > { %v18420_v34 = vand.u32 4294901760, %v18419_v49  ;;  %21359 = vmatprep.subr.mxu1 %v21580_v0 }
0x124d   : > { %21360 = vmatpush3.msra.mxu1 %v21843_v24 }
0x124e   : > { %v18421_v57 = vsub.f32 %v18419_v49, %v18420_v34  ;;  %21362 = vmatmul.mubr.f32.vlgmr.msra.gmra.mxu1 %v18420_v34  ;;  %21371 = vmatprep.subr.mxu1 %v21580_v0  ;;  %v21446_v46 = vpop.eup %21445 }
0x124f   : > { %21372 = vmatpush3.msra.mxu1 %v21838_v21  ;;  %21375 = vmatprep.mubr.msk.f32.mxu1 %vm21581_vm0, %v21580_v0  ;;  %v18827_v10 = vmul.f32 %v21446_v46, %v18825_v16 }
0x1250   : > { %v18422_v50 = vand.u32 4294901760, %v18421_v57  ;;  %21373 = vmatprep.subr.mxu1 %v21580_v0 }
0x1251   : > { %21374 = vmatpush3.msra.mxu1 %v21843_v24  ;;  %v18828_v32 = vsub.f32 2.0, %v18827_v10 }
0x1252   : > { %21341 = vmatmul.mubr.f32.vlgmr.msra.gmra.mxu0 %v18422_v50  ;;  %21376 = vmatmul.mubr.f32.vlgmr.msra.gmra.mxu1 %v18418_v58 }
0x1253   : > { %21351 = vmatpush3.msra.mxu0 %v21841_v23  ;;  %21354 = vmatprep.mubr.msk.f32.mxu0 %vm21581_vm0, %v21580_v0  ;;  %v18829_v18 = vmul.f32 %v21446_v46, %v18828_v32 }
0x1254   : > { %21352 = vmatprep.subr.mxu0 %v21580_v0 }
0x1255   : > { %21353 = vmatpush3.msra.mxu0 %v21851_v26 }
0x1256   : > { %21355 = vmatmul.mubr.f32.vlgmr.msra.gmra.mxu0 %v18419_v49  ;;  %21364 = vmatprep.subr.mxu0 %v21580_v0 }
0x1257   : > { %21365 = vmatpush3.msra.mxu0 %v21848_v25  ;;  %21368 = vmatprep.mubr.msk.f32.mxu0 %vm21581_vm0, %v21580_v0 }
0x1258   : > { %21366 = vmatprep.subr.mxu0 %v21580_v0 }
0x1259   : > { %21367 = vmatpush3.msra.mxu0 %v21858_v28 }
0x125a   : > { %21369 = vmatmul.mubr.f32.vlgmr.msra.gmra.mxu0 %v18418_v58 }
0x130a   : > { %v18505_v21 = vpop.f32.mrf.mxu1 }
0x130c   : > { %v21349_v23 = vpop.f32.mrf.mxu1 }
0x130e   : > { %v18656_v24 = vpop.f32.mrf.mxu1 }
0x1310   : > { %v21363_v37 = vpop.f32.mrf.mxu1 }
0x1312   : > { %v18424_v51 = vpop.f32.mrf.mxu0  ;;  %v18806_v26 = vpop.f32.mrf.mxu1 }
0x1313   : > { %v18506_v39 = vadd.f32 %v18505_v21, %v18424_v51 }
0x1314   : > { %v21342_v42 = vpop.f32.mrf.mxu0  ;;  %v21377_v54 = vpop.f32.mrf.mxu1 }
0x1316   : > { %v18581_v55 = vpop.f32.mrf.mxu0 }
0x1317   : > { %v18582_v25 = vadd.f32 %v18581_v55, %v18506_v39 }
0x1318   : > { %v21356_v27 = vpop.f32.mrf.mxu0 }
0x1319   : > { %v18657_v20 = vadd.f32 %v18656_v24, %v18582_v25 }
0x131a   : > { %v18733_v1 = vpop.f32.mrf.mxu0 }
0x131b   : > { %v18734_v0 = vadd.f32 %v18733_v1, %v18657_v20 }
0x131c   : > { %v21370_v7 = vpop.f32.mrf.mxu0 }
0x131d   : > { %v18807_v28 = vadd.f32 %v18806_v26, %v18734_v0 }
0x131f   : > { %v18815_v19 = vsub.f32 %v18807_v28, %v23603_v52 }
0x1321   : > { %v18818_v29 = vmul.f32 2.0, %v18815_v19 }
0x1323   : > { %v18819_v43 = vadd.f32 0.0009, %v18818_v29 }
0x1325   : > { %v18820_v59 = vmul.f32 %v18819_v43, %v18817_v31 }
0x1327   : > { %v18830_v60 = vmul.f32 %v18829_v18, %v18820_v59 }
0x1329   : > { %v18831_v61 = vadd.f32 %v18830_v60, %v23409_v56 }
0x132b   : > { %v18833_v30 = vsel %vm18832_vm2, %v18831_v61, 0.0 }
0x132c   : > { %18834 = vadd.xlane.f32.xlu0 %v18833_v30 }
0x13b5   : > { %v18835_v62 = vpop.xlane.xlu0 %18834 }
0x13b6   : > { %v18836_v44 = vrot.slane %v18835_v62, 4 }
0x13b8   : > { %v18837_v63 = vadd.f32 %v18836_v44, %v18835_v62 }
0x13ba   : > { %v18838_v2 = vrot.slane %v18837_v63, 2 }
0x13bc   : > { %v18839_v48 = vadd.f32 %v18838_v2, %v18837_v63 }
0x13be   : > { %v18840_v52 = vrot.slane %v18839_v48, 1 }
0x13c0   : > { %v18841_v3 = vadd.f32 %v18840_v52, %v18839_v48 }
0x13c2   : > { %21378 = vpush %v18841_v3 }
0x13f3   : > { %s21379_s14 = spop %21378 }
0x13f4   : > { %v18843_v47 = vstv %s21379_s14 }
0x13f5   : > { %18845 = vst [vmem:[%s271_s13] sm:$0xff] %v18843_v47 }
0x13f6 PF: > { %p15_p4 = scmp.ge.s32.totalorder %s21628_s19, 4   ;;  %s23863_s15 = smov %s21565_s16 }
0x13f7   : > { %s23864_s16 = smov %s21569_s17  ;;  %s23865_s17 = smov %s21637_s22 }
0x13f8   : > { %s23866_s18 = smov %s21628_s19  ;;  %17 = sbr.rel (!%p15_p4) target bundleno = 4 (0x4), region = 98 }
0x13fd   :  { %18865 = vsyncpa [#allocation3], 1 }
0x13fe   :  { %18867 = vsyncpa [#allocation3 + $0x1], 1 }
0x13ff   :  { %18868 = vsyncpa [#allocation5], 1 }
0x1400   :  { %18870 = vsyncpa [#allocation5 + $0x1], 1 }

</bundles_post_ra>
